<compile_context>
chip_gen: v7x
topology: tpu7x:2x2x1
jax: 0.10.0
libtpu: 0.0.40
codegen_flags: <defaults>
</compile_context>

<pallas_src>
import functools

import jax
import jax.numpy as jnp
from jax.experimental import pallas as pl
from jax.experimental.pallas import tpu as pltpu

STEM_C = 64          # stem output channels
BLOCK_C = 64         # bottleneck inner width
OUT_C = 256          # bottleneck output channels (feature dim fed to fc)
NUM_CLASSES = 10     # small stand-in for num_classes=1000

STEM_K = 7 * 7 * 3   # stem im2col K
STEM_KP = 160        # stem K padded once at init (16-aligned, single MXU step)
B1SC_N = BLOCK_C + OUT_C        # fused (b1 | shortcut) output width = 320
B1SC_NP = 384                   # padded to a multiple of 128
PAIR = 2                        # OW pairing so pooled stores are 128 lanes wide
VMEM_LIMIT = 32 * 1024 * 1024   # explicit budget; fits v7x's 64 MiB/TC VMEM

NEG_INF = jnp.float32(-jnp.inf)


# ----------------------------------------------------------------------------
# Pallas kernels
# ----------------------------------------------------------------------------
def _mm_bn_kernel(a_ref, b_ref, scale_ref, bias_ref, lb_ref, o_ref):
    """One full-K MXU matmul; epilogue = y*scale + bias, then max(y, lb).

    lb (per-column lower bound) encodes ReLU: 0.0 for ReLU columns, -inf for
    pass-through columns (lets one call fuse a ReLU'd conv and a non-ReLU'd
    projection shortcut that share the same A operand)."""
    acc = jnp.dot(a_ref[...], b_ref[...], preferred_element_type=jnp.float32)
    y = acc * scale_ref[...] + bias_ref[...]
    o_ref[...] = jnp.maximum(y, lb_ref[...]).astype(o_ref.dtype)


def _conv3x3_bn_kernel(xp_ref, w_ref, scale_ref, bias_ref, o_ref, *, oh, ow):
    """Implicit-GEMM 3x3/1 conv (+BN+ReLU) for one image.

    xp_ref: (1, oh+2, ow+2, Cin) spatially pre-padded activation (in VMEM),
    w_ref:  (9, Cin, Cout) tap-major weights.  Unrolled loop over the 9 taps,
    each a shifted VMEM view -> MXU matmul, accumulated in f32."""
    cin = xp_ref.shape[3]
    x = xp_ref[0]                                    # (oh+2, ow+2, Cin)
    acc = jnp.zeros((oh * ow, w_ref.shape[2]), jnp.float32)
    for t in range(9):                               # static -> fully unrolled
        dy, dx = t // 3, t % 3
        a = x[dy:dy + oh, dx:dx + ow, :].reshape(oh * ow, cin)
        acc = acc + jnp.dot(a, w_ref[t], preferred_element_type=jnp.float32)
    y = acc * scale_ref[...] + bias_ref[...]
    o_ref[...] = jnp.maximum(y, 0.0).astype(o_ref.dtype)


def _block_out_pool_kernel(a_ref, b_ref, scale_ref, bias_ref, res_ref,
                           feat_ref):
    """Final bottleneck 1x1 conv: BN + residual add + ReLU + global-avg-pool
    fused in the epilogue.  Each M block is exactly one image's spatial
    positions, so the pooled (1, tn) feature slice is the only HBM write."""
    acc = jnp.dot(a_ref[...], b_ref[...], preferred_element_type=jnp.float32)
    y = acc * scale_ref[...] + bias_ref[...] + res_ref[...]
    y = jnp.maximum(y, 0.0)
    feat_ref[...] = jnp.mean(y, axis=0).reshape(feat_ref.shape)


def _maxpool_kernel(x_ref, o_ref):
    """x_ref: (tp, 9, 128) -> o_ref: (tp, 128), max over the window axis."""
    o_ref[...] = jnp.max(x_ref[...], axis=1)


# ----------------------------------------------------------------------------
# pallas_call wrappers
# ----------------------------------------------------------------------------
def matmul_bn(a, b, scale, bias, lb, *, tm, tn, out_dtype=jnp.float32):
    """out = max(scale * (a @ b) + bias, lb); b/scale/bias/lb pre-padded at
    init, a is used as-is (single full-K step, bf16 operands, f32 epilogue).

    tn=128 fills v5e's 128-wide MXU; on v6e/v7x tn=256 would fill the 256-wide
    array for the N>=256 layers (kept at 128 here for a single code path)."""
    m, k = a.shape
    k2, n = b.shape
    assert k == k2 and n % tn == 0
    grid = (pl.cdiv(m, tm), n // tn)
    return pl.pallas_call(
        _mm_bn_kernel,
        out_shape=jax.ShapeDtypeStruct((m, n), out_dtype),
        grid_spec=pltpu.PrefetchScalarGridSpec(
            num_scalar_prefetch=0,
            grid=grid,
            in_specs=[
                pl.BlockSpec((tm, k), lambda i, j: (i, 0)),
                pl.BlockSpec((k, tn), lambda i, j: (0, j)),
                pl.BlockSpec((1, tn), lambda i, j: (0, j)),
                pl.BlockSpec((1, tn), lambda i, j: (0, j)),
                pl.BlockSpec((1, tn), lambda i, j: (0, j)),
            ],
            out_specs=pl.BlockSpec((tm, tn), lambda i, j: (i, j)),
        ),
        compiler_params=pltpu.CompilerParams(
            dimension_semantics=("parallel", "parallel"),
            vmem_limit_bytes=VMEM_LIMIT),
    )(a, b, scale, bias, lb)


def conv3x3_bn_relu(xp, w, scale, bias, *, oh, ow, out_dtype=jnp.bfloat16):
    """xp: (N, oh+2, ow+2, Cin) padded activations -> (N*oh*ow, Cout)."""
    n, hp, wp, cin = xp.shape
    cout = w.shape[2]
    return pl.pallas_call(
        functools.partial(_conv3x3_bn_kernel, oh=oh, ow=ow),
        out_shape=jax.ShapeDtypeStruct((n * oh * ow, cout), out_dtype),
        grid_spec=pltpu.PrefetchScalarGridSpec(
            num_scalar_prefetch=0,
            grid=(n,),                       # one image per step, 2-way parallel
            in_specs=[
                pl.BlockSpec((1, hp, wp, cin), lambda i: (i, 0, 0, 0)),
                pl.BlockSpec((9, cin, cout), lambda i: (0, 0, 0)),
                pl.BlockSpec((1, cout), lambda i: (0, 0)),
                pl.BlockSpec((1, cout), lambda i: (0, 0)),
            ],
            out_specs=pl.BlockSpec((oh * ow, cout), lambda i: (i, 0)),
        ),
        compiler_params=pltpu.CompilerParams(
            dimension_semantics=("parallel",),
            vmem_limit_bytes=VMEM_LIMIT),
    )(xp, w, scale, bias)


def bottleneck_out_pool(a, b, scale, bias, res, *, spatial, tn):
    """relu(scale*(a@b)+bias + res), mean-pooled over each image's `spatial`
    rows.  Returns per-image features (nb, Cout); the activation map itself
    never hits HBM."""
    m, k = a.shape
    _, c = b.shape
    nb = m // spatial
    assert m % spatial == 0 and c % tn == 0
    feats = pl.pallas_call(
        _block_out_pool_kernel,
        out_shape=jax.ShapeDtypeStruct((nb, 1, c), jnp.float32),
        grid_spec=pltpu.PrefetchScalarGridSpec(
            num_scalar_prefetch=0,
            grid=(nb, c // tn),
            in_specs=[
                pl.BlockSpec((spatial, k), lambda i, j: (i, 0)),
                pl.BlockSpec((k, tn), lambda i, j: (0, j)),
                pl.BlockSpec((1, tn), lambda i, j: (0, j)),
                pl.BlockSpec((1, tn), lambda i, j: (0, j)),
                pl.BlockSpec((spatial, tn), lambda i, j: (i, j)),
            ],
            out_specs=pl.BlockSpec((1, 1, tn), lambda i, j: (i, 0, j)),
        ),
        compiler_params=pltpu.CompilerParams(
            dimension_semantics=("parallel", "parallel"),
            vmem_limit_bytes=VMEM_LIMIT),
    )(a, b, scale, bias, res)
    return feats.reshape(nb, c)


def maxpool_window(patches):
    """patches: (P, 9, 128) lane-dense pairs -> (P, 128), max over window."""
    p2, w, c = patches.shape
    tp = p2 // 2 if p2 % 2 == 0 else p2     # >=2 blocks so v7x uses both TCs
    assert p2 % tp == 0
    return pl.pallas_call(
        _maxpool_kernel,
        out_shape=jax.ShapeDtypeStruct((p2, c), patches.dtype),
        grid_spec=pltpu.PrefetchScalarGridSpec(
            num_scalar_prefetch=0,
            grid=(p2 // tp,),
            in_specs=[pl.BlockSpec((tp, w, c), lambda i: (i, 0, 0))],
            out_specs=pl.BlockSpec((tp, c), lambda i: (i, 0)),
        ),
        compiler_params=pltpu.CompilerParams(
            dimension_semantics=("parallel",),
            vmem_limit_bytes=VMEM_LIMIT),
    )(patches)


# ----------------------------------------------------------------------------
# Glue: stem im2col (pure data movement, plain JAX)
# ----------------------------------------------------------------------------
def _im2col(x, kh, kw, stride, pad):
    """x: (N, H, W, C) -> patches (N, OH, OW, kh*kw, C).
    TODO(synk): replace with an implicit-GEMM stem kernel at real ResNet-50
    resolutions to avoid the 49x activation blow-up in HBM."""
    n, h, w, c = x.shape
    xp = jnp.pad(x, ((0, 0), (pad, pad), (pad, pad), (0, 0)))
    oh = (h + 2 * pad - kh) // stride + 1
    ow = (w + 2 * pad - kw) // stride + 1
    cols = [xp[:, i:i + stride * oh:stride, j:j + stride * ow:stride, :]
            for i in range(kh) for j in range(kw)]
    patches = jnp.stack(cols, axis=3)
    return patches, oh, ow


# ----------------------------------------------------------------------------
# Model forward:  model(x, apply_fc=True)
# ----------------------------------------------------------------------------
def linear_eval_forward(x_nchw, p):
    x = jnp.transpose(x_nchw, (0, 2, 3, 1)).astype(jnp.float32)   # NCHW->NHWC
    n = x.shape[0]

    # stem: 7x7/2 conv + folded BN + ReLU  (im2col + one full-K bf16 matmul)
    patches, oh, ow = _im2col(x, 7, 7, 2, 3)
    a = patches.reshape(n * oh * ow, -1).astype(jnp.bfloat16)
    a = jnp.pad(a, ((0, 0), (0, p["stem_w"].shape[0] - a.shape[1])))
    y = matmul_bn(a, p["stem_w"], p["stem_scale"], p["stem_shift"],
                  p["stem_lb"], tm=min(256, a.shape[0]), tn=STEM_C,
                  out_dtype=jnp.bfloat16)
    x = y.reshape(n, oh, ow, STEM_C)

    # 3x3/2 max pool, pad 1 — patches pre-paired along OW so the kernel reads
    # and stores lane-dense (..., 128) rows; un-pairing afterwards is a free
    # row-major reshape.
    oh2, ow2 = oh // 2, ow // 2
    assert ow2 % PAIR == 0 and PAIR * STEM_C == 128
    xp = jnp.pad(x, ((0, 0), (1, 1), (1, 1), (0, 0)),
                 constant_values=-jnp.inf)
    cols = [xp[:, i:i + 2 * oh2:2, j:j + 2 * ow2:2, :]
              .reshape(n, oh2, ow2 // PAIR, PAIR, STEM_C)
            for i in range(3) for j in range(3)]
    mp_patches = jnp.stack(cols, axis=3)                 # (n,oh2,ow2/2,9,2,C)
    mp_patches = mp_patches.reshape(n * oh2 * ow2 // PAIR, 9, PAIR * STEM_C)
    pooled = maxpool_window(mp_patches)                  # (P/2, 128) bf16
    rows = pooled.reshape(n * oh2 * ow2, STEM_C)         # (P, 64) bf16, free

    # bottleneck, fused (1x1 conv b1 | projection shortcut): one matmul over
    # the shared A slab; per-column lb applies ReLU only to the b1 half.
    hs = matmul_bn(rows, p["b1sc_w"], p["b1sc_scale"], p["b1sc_shift"],
                   p["b1sc_lb"], tm=oh2 * ow2, tn=128, out_dtype=jnp.float32)
    h1 = hs[:, :BLOCK_C]                                 # ReLU'd b1 output
    res = hs[:, BLOCK_C:BLOCK_C + OUT_C]                 # shortcut (no ReLU)

    # 3x3 conv + BN + ReLU as implicit GEMM (in-kernel tap loop, no im2col).
    hsp = jnp.pad(h1.reshape(n, oh2, ow2, BLOCK_C),
                  ((0, 0), (1, 1), (1, 1), (0, 0)))
    h2 = conv3x3_bn_relu(hsp, p["b2_w"], p["b2_scale"], p["b2_shift"],
                         oh=oh2, ow=ow2)                 # (P, 64) bf16

    # final 1x1 conv + BN + residual add + ReLU + global avg pool, fused.
    feats = bottleneck_out_pool(h2, p["b3_w"], p["b3_scale"], p["b3_shift"],
                                res, spatial=oh2 * ow2, tn=128)   # (n, 256)

    # fc: tiny (n,256)x(256,10) — XLA handles this better than a padded
    # 128x128 Pallas tile (perf review item 8).
    logits = feats @ p["fc_w"] + p["fc_b"]
    return logits


# ----------------------------------------------------------------------------
# Deterministic synthetic parameters (stand-in for the loaded state_dict)
# ----------------------------------------------------------------------------
def init_params(key):
    ks = jax.random.split(key, 16)

    def w(k, shape):
        fan_in = shape[0]
        return jax.random.normal(k, shape, jnp.float32) / jnp.sqrt(float(fan_in))

    def bn(k, c):
        k1, k2 = jax.random.split(k)
        scale = 1.0 + 0.1 * jax.random.normal(k1, (c,), jnp.float32)
        shift = 0.1 * jax.random.normal(k2, (c,), jnp.float32)
        return scale, shift

    p = {}
    p["stem_w"] = w(ks[0], (STEM_K, STEM_C))
    p["stem_scale"], p["stem_shift"] = bn(ks[1], STEM_C)
    p["b1_w"] = w(ks[2], (STEM_C, BLOCK_C))
    p["b1_scale"], p["b1_shift"] = bn(ks[3], BLOCK_C)
    p["b2_w"] = w(ks[4], (3 * 3 * BLOCK_C, BLOCK_C))
    p["b2_scale"], p["b2_shift"] = bn(ks[5], BLOCK_C)
    p["b3_w"] = w(ks[6], (BLOCK_C, OUT_C))
    p["b3_scale"], p["b3_shift"] = bn(ks[7], OUT_C)
    p["sc_w"] = w(ks[8], (STEM_C, OUT_C))
    p["sc_scale"], p["sc_shift"] = bn(ks[9], OUT_C)
    p["fc_w"] = w(ks[10], (OUT_C, NUM_CLASSES))
    p["fc_b"] = 0.01 * jax.random.normal(ks[11], (NUM_CLASSES,), jnp.float32)
    return p


def prepare_params(raw):
    """One-time kernel-ready packing: pad / concat / bf16-cast the weights so
    the forward pass never materializes zero-padded HBM copies per call."""
    p = {}
    # stem: pad K 147 -> 160 once; bf16 MXU operand.
    kpad = STEM_KP - raw["stem_w"].shape[0]
    p["stem_w"] = jnp.pad(raw["stem_w"], ((0, kpad), (0, 0))).astype(jnp.bfloat16)
    p["stem_scale"] = raw["stem_scale"][None, :]
    p["stem_shift"] = raw["stem_shift"][None, :]
    p["stem_lb"] = jnp.zeros((1, STEM_C), jnp.float32)            # ReLU

    # fused (b1 | projection shortcut): N = 64 + 256 = 320, padded to 384.
    wcat = jnp.concatenate([raw["b1_w"], raw["sc_w"]], axis=1)    # (64, 320)
    npad = B1SC_NP - wcat.shape[1]
    p["b1sc_w"] = jnp.pad(wcat, ((0, 0), (0, npad))).astype(jnp.bfloat16)
    zeros_pad = jnp.zeros((npad,), jnp.float32)
    p["b1sc_scale"] = jnp.concatenate(
        [raw["b1_scale"], raw["sc_scale"], zeros_pad])[None, :]
    p["b1sc_shift"] = jnp.concatenate(
        [raw["b1_shift"], raw["sc_shift"], zeros_pad])[None, :]
    # ReLU only on the b1 half; shortcut + pad columns pass through.
    p["b1sc_lb"] = jnp.concatenate(
        [jnp.zeros((BLOCK_C,), jnp.float32),
         jnp.full((OUT_C + npad,), NEG_INF, jnp.float32)])[None, :]

    # 3x3 conv weights in tap-major (9, Cin, Cout) layout for implicit GEMM
    # (kept f32: the in-kernel shifted views are f32 for robust layouts).
    p["b2_w"] = raw["b2_w"].reshape(9, BLOCK_C, BLOCK_C).astype(jnp.float32)
    p["b2_scale"] = raw["b2_scale"][None, :]
    p["b2_shift"] = raw["b2_shift"][None, :]

    p["b3_w"] = raw["b3_w"].astype(jnp.bfloat16)
    p["b3_scale"] = raw["b3_scale"][None, :]
    p["b3_shift"] = raw["b3_shift"][None, :]

    p["fc_w"] = raw["fc_w"]
    p["fc_b"] = raw["fc_b"]
    return p


if __name__ == "__main__":
    params = prepare_params(init_params(jax.random.PRNGKey(42)))
    x = jax.random.normal(jax.random.PRNGKey(0), (2, 3, 32, 32), jnp.float32)

    fwd = jax.jit(functools.partial(linear_eval_forward, p=params))
    logits = fwd(x)
    jax.block_until_ready(logits)

    assert logits.shape == (2, NUM_CLASSES), logits.shape
    assert bool(jnp.all(jnp.isfinite(logits)))
    print("KERNEL_OK")
</pallas_src>

<mosaic_0001>
module attributes {stable_mosaic.version = 11 : i64} {
  func.func @_mm_bn_kernel(%arg0: i32, %arg1: i32, %arg2: memref<256x160xbf16, #tpu.memory_space<vmem>>, %arg3: memref<160x64xbf16, #tpu.memory_space<vmem>>, %arg4: memref<1x64xf32, #tpu.memory_space<vmem>>, %arg5: memref<1x64xf32, #tpu.memory_space<vmem>>, %arg6: memref<1x64xf32, #tpu.memory_space<vmem>>, %arg7: memref<256x64xbf16, #tpu.memory_space<vmem>>) attributes {dimension_semantics = [#tpu.dimension_semantics<parallel>, #tpu.dimension_semantics<parallel>], iteration_bounds = array<i64: 2, 1>, scalar_prefetch = 0 : i64, scratch_operands = 0 : i64, tpu.core_type = #tpu.core_type<tc>, window_params = [{transform_indices = @transform_0, window_bounds = array<i64: 256, 160>}, {transform_indices = @transform_1, window_bounds = array<i64: 160, 64>}, {transform_indices = @transform_2, window_bounds = array<i64: 1, 64>}, {transform_indices = @transform_3, window_bounds = array<i64: 1, 64>}, {transform_indices = @transform_4, window_bounds = array<i64: 1, 64>}, {transform_indices = @transform_5, window_bounds = array<i64: 256, 64>}]} {
    %c0 = arith.constant 0 : index
    %c0_0 = arith.constant 0 : index
    %0 = vector.load %arg2[%c0, %c0_0] : memref<256x160xbf16, #tpu.memory_space<vmem>>, vector<256x160xbf16>
    %c0_1 = arith.constant 0 : index
    %c0_2 = arith.constant 0 : index
    %1 = vector.load %arg3[%c0_1, %c0_2] : memref<160x64xbf16, #tpu.memory_space<vmem>>, vector<160x64xbf16>
    %cst = arith.constant dense<0.000000e+00> : vector<256x64xf32>
    %2 = tpu.matmul %0, %1, %cst {dimension_numbers = #tpu.dot_dimension_numbers<[1], [0], [0], [1], [0, 0, 1, 1], [], []>} : vector<256x160xbf16>, vector<160x64xbf16>, vector<256x64xf32> -> vector<256x64xf32>
    %c0_3 = arith.constant 0 : index
    %c0_4 = arith.constant 0 : index
    %3 = vector.load %arg4[%c0_3, %c0_4] : memref<1x64xf32, #tpu.memory_space<vmem>>, vector<1x64xf32>
    %4 = vector.broadcast %3 : vector<1x64xf32> to vector<256x64xf32>
    %5 = arith.mulf %2, %4 : vector<256x64xf32>
    %c0_5 = arith.constant 0 : index
    %c0_6 = arith.constant 0 : index
    %6 = vector.load %arg5[%c0_5, %c0_6] : memref<1x64xf32, #tpu.memory_space<vmem>>, vector<1x64xf32>
    %7 = vector.broadcast %6 : vector<1x64xf32> to vector<256x64xf32>
    %8 = arith.addf %5, %7 : vector<256x64xf32>
    %c0_7 = arith.constant 0 : index
    %c0_8 = arith.constant 0 : index
    %9 = vector.load %arg6[%c0_7, %c0_8] : memref<1x64xf32, #tpu.memory_space<vmem>>, vector<1x64xf32>
    %10 = vector.broadcast %9 : vector<1x64xf32> to vector<256x64xf32>
    %11 = arith.maximumf %8, %10 : vector<256x64xf32>
    %12 = arith.truncf %11 : vector<256x64xf32> to vector<256x64xbf16>
    %c0_9 = arith.constant 0 : index
    %c0_10 = arith.constant 0 : index
    %13 = vector.load %arg7[%c0_9, %c0_10] : memref<256x64xbf16, #tpu.memory_space<vmem>>, vector<256x64xbf16>
    tpu.vector_store %arg7[%c0_9, %c0_10], %12 {strides = array<i32>} : memref<256x64xbf16, #tpu.memory_space<vmem>>, vector<256x64xbf16>,
    return
  }
  func.func @transform_0(%arg0: i32, %arg1: i32) -> (i32, i32) {
    %c0_i32 = arith.constant 0 : i32
    %c0_i32_0 = arith.constant 0 : i32
    return %arg0, %c0_i32 : i32, i32
  }
  func.func @transform_1(%arg0: i32, %arg1: i32) -> (i32, i32) {
    %c0_i32 = arith.constant 0 : i32
    %c0_i32_0 = arith.constant 0 : i32
    return %c0_i32, %arg1 : i32, i32
  }
  func.func @transform_2(%arg0: i32, %arg1: i32) -> (i32, i32) {
    %c0_i32 = arith.constant 0 : i32
    %c0_i32_0 = arith.constant 0 : i32
    return %c0_i32, %arg1 : i32, i32
  }
  func.func @transform_3(%arg0: i32, %arg1: i32) -> (i32, i32) {
    %c0_i32 = arith.constant 0 : i32
    %c0_i32_0 = arith.constant 0 : i32
    return %c0_i32, %arg1 : i32, i32
  }
  func.func @transform_4(%arg0: i32, %arg1: i32) -> (i32, i32) {
    %c0_i32 = arith.constant 0 : i32
    %c0_i32_0 = arith.constant 0 : i32
    return %c0_i32, %arg1 : i32, i32
  }
  func.func @transform_5(%arg0: i32, %arg1: i32) -> (i32, i32) {
    %c0_i32 = arith.constant 0 : i32
    return %arg0, %arg1 : i32, i32
  }
}

module attributes {stable_mosaic.version = 11 : i64} {
  func.func @_maxpool_kernel(%arg0: i32, %arg1: memref<32x9x128xbf16, #tpu.memory_space<vmem>>, %arg2: memref<32x128xbf16, #tpu.memory_space<vmem>>) attributes {dimension_semantics = [#tpu.dimension_semantics<parallel>], iteration_bounds = array<i64: 2>, scalar_prefetch = 0 : i64, scratch_operands = 0 : i64, tpu.core_type = #tpu.core_type<tc>, window_params = [{transform_indices = @transform_0, window_bounds = array<i64: 32, 9, 128>}, {transform_indices = @transform_1, window_bounds = array<i64: 32, 128>}]} {
    %c0 = arith.constant 0 : index
    %c0_0 = arith.constant 0 : index
    %c0_1 = arith.constant 0 : index
    %0 = vector.load %arg1[%c0, %c0_0, %c0_1] : memref<32x9x128xbf16, #tpu.memory_space<vmem>>, vector<32x9x128xbf16>
    %cst = arith.constant dense<0xFF80> : vector<32x128xbf16>
    %1 = vector.multi_reduction <maximumf>, %0, %cst [1] : vector<32x9x128xbf16> to vector<32x128xbf16>
    %c0_2 = arith.constant 0 : index
    %c0_3 = arith.constant 0 : index
    %2 = vector.load %arg2[%c0_2, %c0_3] : memref<32x128xbf16, #tpu.memory_space<vmem>>, vector<32x128xbf16>
    tpu.vector_store %arg2[%c0_2, %c0_3], %1 {strides = array<i32>} : memref<32x128xbf16, #tpu.memory_space<vmem>>, vector<32x128xbf16>,
    return
  }
  func.func @transform_0(%arg0: i32) -> (i32, i32, i32) {
    %c0_i32 = arith.constant 0 : i32
    %c0_i32_0 = arith.constant 0 : i32
    %c0_i32_1 = arith.constant 0 : i32
    return %arg0, %c0_i32, %c0_i32_0 : i32, i32, i32
  }
  func.func @transform_1(%arg0: i32) -> (i32, i32) {
    %c0_i32 = arith.constant 0 : i32
    %c0_i32_0 = arith.constant 0 : i32
    return %arg0, %c0_i32 : i32, i32
  }
}

module attributes {stable_mosaic.version = 11 : i64} {
  func.func @_mm_bn_kernel(%arg0: i32, %arg1: i32, %arg2: memref<64x64xbf16, #tpu.memory_space<vmem>>, %arg3: memref<64x128xbf16, #tpu.memory_space<vmem>>, %arg4: memref<1x128xf32, #tpu.memory_space<vmem>>, %arg5: memref<1x128xf32, #tpu.memory_space<vmem>>, %arg6: memref<1x128xf32, #tpu.memory_space<vmem>>, %arg7: memref<64x128xf32, #tpu.memory_space<vmem>>) attributes {dimension_semantics = [#tpu.dimension_semantics<parallel>, #tpu.dimension_semantics<parallel>], iteration_bounds = array<i64: 2, 3>, scalar_prefetch = 0 : i64, scratch_operands = 0 : i64, tpu.core_type = #tpu.core_type<tc>, window_params = [{transform_indices = @transform_0, window_bounds = array<i64: 64, 64>}, {transform_indices = @transform_1, window_bounds = array<i64: 64, 128>}, {transform_indices = @transform_2, window_bounds = array<i64: 1, 128>}, {transform_indices = @transform_3, window_bounds = array<i64: 1, 128>}, {transform_indices = @transform_4, window_bounds = array<i64: 1, 128>}, {transform_indices = @transform_5, window_bounds = array<i64: 64, 128>}]} {
    %c0 = arith.constant 0 : index
    %c0_0 = arith.constant 0 : index
    %0 = vector.load %arg2[%c0, %c0_0] : memref<64x64xbf16, #tpu.memory_space<vmem>>, vector<64x64xbf16>
    %c0_1 = arith.constant 0 : index
    %c0_2 = arith.constant 0 : index
    %1 = vector.load %arg3[%c0_1, %c0_2] : memref<64x128xbf16, #tpu.memory_space<vmem>>, vector<64x128xbf16>
    %cst = arith.constant dense<0.000000e+00> : vector<64x128xf32>
    %2 = tpu.matmul %0, %1, %cst {dimension_numbers = #tpu.dot_dimension_numbers<[1], [0], [0], [1], [0, 0, 1, 1], [], []>} : vector<64x64xbf16>, vector<64x128xbf16>, vector<64x128xf32> -> vector<64x128xf32>
    %c0_3 = arith.constant 0 : index
    %c0_4 = arith.constant 0 : index
    %3 = vector.load %arg4[%c0_3, %c0_4] : memref<1x128xf32, #tpu.memory_space<vmem>>, vector<1x128xf32>
    %4 = vector.broadcast %3 : vector<1x128xf32> to vector<64x128xf32>
    %5 = arith.mulf %2, %4 : vector<64x128xf32>
    %c0_5 = arith.constant 0 : index
    %c0_6 = arith.constant 0 : index
    %6 = vector.load %arg5[%c0_5, %c0_6] : memref<1x128xf32, #tpu.memory_space<vmem>>, vector<1x128xf32>
    %7 = vector.broadcast %6 : vector<1x128xf32> to vector<64x128xf32>
    %8 = arith.addf %5, %7 : vector<64x128xf32>
    %c0_7 = arith.constant 0 : index
    %c0_8 = arith.constant 0 : index
    %9 = vector.load %arg6[%c0_7, %c0_8] : memref<1x128xf32, #tpu.memory_space<vmem>>, vector<1x128xf32>
    %10 = vector.broadcast %9 : vector<1x128xf32> to vector<64x128xf32>
    %11 = arith.maximumf %8, %10 : vector<64x128xf32>
    %c0_9 = arith.constant 0 : index
    %c0_10 = arith.constant 0 : index
    %12 = vector.load %arg7[%c0_9, %c0_10] : memref<64x128xf32, #tpu.memory_space<vmem>>, vector<64x128xf32>
    tpu.vector_store %arg7[%c0_9, %c0_10], %11 {strides = array<i32>} : memref<64x128xf32, #tpu.memory_space<vmem>>, vector<64x128xf32>,
    return
  }
  func.func @transform_0(%arg0: i32, %arg1: i32) -> (i32, i32) {
    %c0_i32 = arith.constant 0 : i32
    %c0_i32_0 = arith.constant 0 : i32
    return %arg0, %c0_i32 : i32, i32
  }
  func.func @transform_1(%arg0: i32, %arg1: i32) -> (i32, i32) {
    %c0_i32 = arith.constant 0 : i32
    %c0_i32_0 = arith.constant 0 : i32
    return %c0_i32, %arg1 : i32, i32
  }
  func.func @transform_2(%arg0: i32, %arg1: i32) -> (i32, i32) {
    %c0_i32 = arith.constant 0 : i32
    %c0_i32_0 = arith.constant 0 : i32
    return %c0_i32, %arg1 : i32, i32
  }
  func.func @transform_3(%arg0: i32, %arg1: i32) -> (i32, i32) {
    %c0_i32 = arith.constant 0 : i32
    %c0_i32_0 = arith.constant 0 : i32
    return %c0_i32, %arg1 : i32, i32
  }
  func.func @transform_4(%arg0: i32, %arg1: i32) -> (i32, i32) {
    %c0_i32 = arith.constant 0 : i32
    %c0_i32_0 = arith.constant 0 : i32
    return %c0_i32, %arg1 : i32, i32
  }
  func.func @transform_5(%arg0: i32, %arg1: i32) -> (i32, i32) {
    %c0_i32 = arith.constant 0 : i32
    return %arg0, %arg1 : i32, i32
  }
}

module attributes {stable_mosaic.version = 11 : i64} {
  func.func @_conv3x3_bn_kernel(%arg0: i32, %arg1: memref<1x10x10x64xf32, #tpu.memory_space<vmem>>, %arg2: memref<9x64x64xf32, #tpu.memory_space<vmem>>, %arg3: memref<1x64xf32, #tpu.memory_space<vmem>>, %arg4: memref<1x64xf32, #tpu.memory_space<vmem>>, %arg5: memref<64x64xbf16, #tpu.memory_space<vmem>>) attributes {dimension_semantics = [#tpu.dimension_semantics<parallel>], iteration_bounds = array<i64: 2>, scalar_prefetch = 0 : i64, scratch_operands = 0 : i64, tpu.core_type = #tpu.core_type<tc>, window_params = [{transform_indices = @transform_0, window_bounds = array<i64: 1, 10, 10, 64>}, {pipeline_mode = #tpu.pipeline_mode<synchronous>, transform_indices = @transform_1, window_bounds = array<i64: 9, 64, 64>}, {pipeline_mode = #tpu.pipeline_mode<synchronous>, transform_indices = @transform_2, window_bounds = array<i64: 1, 64>}, {pipeline_mode = #tpu.pipeline_mode<synchronous>, transform_indices = @transform_3, window_bounds = array<i64: 1, 64>}, {transform_indices = @transform_4, window_bounds = array<i64: 64, 64>}]} {
    %c0 = arith.constant 0 : index
    %c0_0 = arith.constant 0 : index
    %c0_1 = arith.constant 0 : index
    %c0_2 = arith.constant 0 : index
    %0 = vector.load %arg1[%c0, %c0_0, %c0_1, %c0_2] : memref<1x10x10x64xf32, #tpu.memory_space<vmem>>, vector<1x10x10x64xf32>
    %1 = vector.shape_cast %0 : vector<1x10x10x64xf32> to vector<10x10x64xf32>
    %cst = arith.constant 0.000000e+00 : f32
    %2 = vector.broadcast %cst : f32 to vector<64x64xf32>
    %3 = vector.extract_strided_slice %1 {offsets = [0, 0, 0], sizes = [8, 8, 64], strides = [1, 1, 1]} : vector<10x10x64xf32> to vector<8x8x64xf32>
    %4 = vector.shape_cast %3 : vector<8x8x64xf32> to vector<64x64xf32>
    %c0_3 = arith.constant 0 : index
    %c0_4 = arith.constant 0 : index
    %c0_5 = arith.constant 0 : index
    %5 = vector.load %arg2[%c0_3, %c0_4, %c0_5] : memref<9x64x64xf32, #tpu.memory_space<vmem>>, vector<1x64x64xf32>
    %6 = vector.shape_cast %5 : vector<1x64x64xf32> to vector<64x64xf32>
    %cst_6 = arith.constant dense<0.000000e+00> : vector<64x64xf32>
    %7 = tpu.matmul %4, %6, %cst_6 {dimension_numbers = #tpu.dot_dimension_numbers<[1], [0], [0], [1], [0, 0, 1, 1], [], []>} : vector<64x64xf32>, vector<64x64xf32>, vector<64x64xf32> -> vector<64x64xf32>
    %8 = arith.addf %2, %7 : vector<64x64xf32>
    %9 = vector.extract_strided_slice %1 {offsets = [0, 1, 0], sizes = [8, 8, 64], strides = [1, 1, 1]} : vector<10x10x64xf32> to vector<8x8x64xf32>
    %10 = vector.shape_cast %9 : vector<8x8x64xf32> to vector<64x64xf32>
    %c1 = arith.constant 1 : index
    %c0_7 = arith.constant 0 : index
    %c0_8 = arith.constant 0 : index
    %11 = vector.load %arg2[%c1, %c0_7, %c0_8] : memref<9x64x64xf32, #tpu.memory_space<vmem>>, vector<1x64x64xf32>
    %12 = vector.shape_cast %11 : vector<1x64x64xf32> to vector<64x64xf32>
    %cst_9 = arith.constant dense<0.000000e+00> : vector<64x64xf32>
    %13 = tpu.matmul %10, %12, %cst_9 {dimension_numbers = #tpu.dot_dimension_numbers<[1], [0], [0], [1], [0, 0, 1, 1], [], []>} : vector<64x64xf32>, vector<64x64xf32>, vector<64x64xf32> -> vector<64x64xf32>
    %14 = arith.addf %8, %13 : vector<64x64xf32>
    %15 = vector.extract_strided_slice %1 {offsets = [0, 2, 0], sizes = [8, 8, 64], strides = [1, 1, 1]} : vector<10x10x64xf32> to vector<8x8x64xf32>
    %16 = vector.shape_cast %15 : vector<8x8x64xf32> to vector<64x64xf32>
    %c2 = arith.constant 2 : index
    %c0_10 = arith.constant 0 : index
    %c0_11 = arith.constant 0 : index
    %17 = vector.load %arg2[%c2, %c0_10, %c0_11] : memref<9x64x64xf32, #tpu.memory_space<vmem>>, vector<1x64x64xf32>
    %18 = vector.shape_cast %17 : vector<1x64x64xf32> to vector<64x64xf32>
    %cst_12 = arith.constant dense<0.000000e+00> : vector<64x64xf32>
    %19 = tpu.matmul %16, %18, %cst_12 {dimension_numbers = #tpu.dot_dimension_numbers<[1], [0], [0], [1], [0, 0, 1, 1], [], []>} : vector<64x64xf32>, vector<64x64xf32>, vector<64x64xf32> -> vector<64x64xf32>
    %20 = arith.addf %14, %19 : vector<64x64xf32>
    %21 = vector.extract_strided_slice %1 {offsets = [1, 0, 0], sizes = [8, 8, 64], strides = [1, 1, 1]} : vector<10x10x64xf32> to vector<8x8x64xf32>
    %22 = vector.shape_cast %21 : vector<8x8x64xf32> to vector<64x64xf32>
    %c3 = arith.constant 3 : index
    %c0_13 = arith.constant 0 : index
    %c0_14 = arith.constant 0 : index
    %23 = vector.load %arg2[%c3, %c0_13, %c0_14] : memref<9x64x64xf32, #tpu.memory_space<vmem>>, vector<1x64x64xf32>
    %24 = vector.shape_cast %23 : vector<1x64x64xf32> to vector<64x64xf32>
    %cst_15 = arith.constant dense<0.000000e+00> : vector<64x64xf32>
    %25 = tpu.matmul %22, %24, %cst_15 {dimension_numbers = #tpu.dot_dimension_numbers<[1], [0], [0], [1], [0, 0, 1, 1], [], []>} : vector<64x64xf32>, vector<64x64xf32>, vector<64x64xf32> -> vector<64x64xf32>
    %26 = arith.addf %20, %25 : vector<64x64xf32>
    %27 = vector.extract_strided_slice %1 {offsets = [1, 1, 0], sizes = [8, 8, 64], strides = [1, 1, 1]} : vector<10x10x64xf32> to vector<8x8x64xf32>
    %28 = vector.shape_cast %27 : vector<8x8x64xf32> to vector<64x64xf32>
    %c4 = arith.constant 4 : index
    %c0_16 = arith.constant 0 : index
    %c0_17 = arith.constant 0 : index
    %29 = vector.load %arg2[%c4, %c0_16, %c0_17] : memref<9x64x64xf32, #tpu.memory_space<vmem>>, vector<1x64x64xf32>
    %30 = vector.shape_cast %29 : vector<1x64x64xf32> to vector<64x64xf32>
    %cst_18 = arith.constant dense<0.000000e+00> : vector<64x64xf32>
    %31 = tpu.matmul %28, %30, %cst_18 {dimension_numbers = #tpu.dot_dimension_numbers<[1], [0], [0], [1], [0, 0, 1, 1], [], []>} : vector<64x64xf32>, vector<64x64xf32>, vector<64x64xf32> -> vector<64x64xf32>
    %32 = arith.addf %26, %31 : vector<64x64xf32>
    %33 = vector.extract_strided_slice %1 {offsets = [1, 2, 0], sizes = [8, 8, 64], strides = [1, 1, 1]} : vector<10x10x64xf32> to vector<8x8x64xf32>
    %34 = vector.shape_cast %33 : vector<8x8x64xf32> to vector<64x64xf32>
    %c5 = arith.constant 5 : index
    %c0_19 = arith.constant 0 : index
    %c0_20 = arith.constant 0 : index
    %35 = vector.load %arg2[%c5, %c0_19, %c0_20] : memref<9x64x64xf32, #tpu.memory_space<vmem>>, vector<1x64x64xf32>
    %36 = vector.shape_cast %35 : vector<1x64x64xf32> to vector<64x64xf32>
    %cst_21 = arith.constant dense<0.000000e+00> : vector<64x64xf32>
    %37 = tpu.matmul %34, %36, %cst_21 {dimension_numbers = #tpu.dot_dimension_numbers<[1], [0], [0], [1], [0, 0, 1, 1], [], []>} : vector<64x64xf32>, vector<64x64xf32>, vector<64x64xf32> -> vector<64x64xf32>
    %38 = arith.addf %32, %37 : vector<64x64xf32>
    %39 = vector.extract_strided_slice %1 {offsets = [2, 0, 0], sizes = [8, 8, 64], strides = [1, 1, 1]} : vector<10x10x64xf32> to vector<8x8x64xf32>
    %40 = vector.shape_cast %39 : vector<8x8x64xf32> to vector<64x64xf32>
    %c6 = arith.constant 6 : index
    %c0_22 = arith.constant 0 : index
    %c0_23 = arith.constant 0 : index
    %41 = vector.load %arg2[%c6, %c0_22, %c0_23] : memref<9x64x64xf32, #tpu.memory_space<vmem>>, vector<1x64x64xf32>
    %42 = vector.shape_cast %41 : vector<1x64x64xf32> to vector<64x64xf32>
    %cst_24 = arith.constant dense<0.000000e+00> : vector<64x64xf32>
    %43 = tpu.matmul %40, %42, %cst_24 {dimension_numbers = #tpu.dot_dimension_numbers<[1], [0], [0], [1], [0, 0, 1, 1], [], []>} : vector<64x64xf32>, vector<64x64xf32>, vector<64x64xf32> -> vector<64x64xf32>
    %44 = arith.addf %38, %43 : vector<64x64xf32>
    %45 = vector.extract_strided_slice %1 {offsets = [2, 1, 0], sizes = [8, 8, 64], strides = [1, 1, 1]} : vector<10x10x64xf32> to vector<8x8x64xf32>
    %46 = vector.shape_cast %45 : vector<8x8x64xf32> to vector<64x64xf32>
    %c7 = arith.constant 7 : index
    %c0_25 = arith.constant 0 : index
    %c0_26 = arith.constant 0 : index
    %47 = vector.load %arg2[%c7, %c0_25, %c0_26] : memref<9x64x64xf32, #tpu.memory_space<vmem>>, vector<1x64x64xf32>
    %48 = vector.shape_cast %47 : vector<1x64x64xf32> to vector<64x64xf32>
    %cst_27 = arith.constant dense<0.000000e+00> : vector<64x64xf32>
    %49 = tpu.matmul %46, %48, %cst_27 {dimension_numbers = #tpu.dot_dimension_numbers<[1], [0], [0], [1], [0, 0, 1, 1], [], []>} : vector<64x64xf32>, vector<64x64xf32>, vector<64x64xf32> -> vector<64x64xf32>
    %50 = arith.addf %44, %49 : vector<64x64xf32>
    %51 = vector.extract_strided_slice %1 {offsets = [2, 2, 0], sizes = [8, 8, 64], strides = [1, 1, 1]} : vector<10x10x64xf32> to vector<8x8x64xf32>
    %52 = vector.shape_cast %51 : vector<8x8x64xf32> to vector<64x64xf32>
    %c8 = arith.constant 8 : index
    %c0_28 = arith.constant 0 : index
    %c0_29 = arith.constant 0 : index
    %53 = vector.load %arg2[%c8, %c0_28, %c0_29] : memref<9x64x64xf32, #tpu.memory_space<vmem>>, vector<1x64x64xf32>
    %54 = vector.shape_cast %53 : vector<1x64x64xf32> to vector<64x64xf32>
    %cst_30 = arith.constant dense<0.000000e+00> : vector<64x64xf32>
    %55 = tpu.matmul %52, %54, %cst_30 {dimension_numbers = #tpu.dot_dimension_numbers<[1], [0], [0], [1], [0, 0, 1, 1], [], []>} : vector<64x64xf32>, vector<64x64xf32>, vector<64x64xf32> -> vector<64x64xf32>
    %56 = arith.addf %50, %55 : vector<64x64xf32>
    %c0_31 = arith.constant 0 : index
    %c0_32 = arith.constant 0 : index
    %57 = vector.load %arg3[%c0_31, %c0_32] : memref<1x64xf32, #tpu.memory_space<vmem>>, vector<1x64xf32>
    %58 = vector.broadcast %57 : vector<1x64xf32> to vector<64x64xf32>
    %59 = arith.mulf %56, %58 : vector<64x64xf32>
    %c0_33 = arith.constant 0 : index
    %c0_34 = arith.constant 0 : index
    %60 = vector.load %arg4[%c0_33, %c0_34] : memref<1x64xf32, #tpu.memory_space<vmem>>, vector<1x64xf32>
    %61 = vector.broadcast %60 : vector<1x64xf32> to vector<64x64xf32>
    %62 = arith.addf %59, %61 : vector<64x64xf32>
    %cst_35 = arith.constant 0.000000e+00 : f32
    %63 = vector.broadcast %cst_35 : f32 to vector<64x64xf32>
    %64 = arith.maximumf %62, %63 : vector<64x64xf32>
    %65 = arith.truncf %64 : vector<64x64xf32> to vector<64x64xbf16>
    %c0_36 = arith.constant 0 : index
    %c0_37 = arith.constant 0 : index
    %66 = vector.load %arg5[%c0_36, %c0_37] : memref<64x64xbf16, #tpu.memory_space<vmem>>, vector<64x64xbf16>
    tpu.vector_store %arg5[%c0_36, %c0_37], %65 {strides = array<i32>} : memref<64x64xbf16, #tpu.memory_space<vmem>>, vector<64x64xbf16>,
    return
  }
  func.func @transform_0(%arg0: i32) -> (i32, i32, i32, i32) {
    %c0_i32 = arith.constant 0 : i32
    %c0_i32_0 = arith.constant 0 : i32
    %c0_i32_1 = arith.constant 0 : i32
    %c0_i32_2 = arith.constant 0 : i32
    return %arg0, %c0_i32, %c0_i32_0, %c0_i32_1 : i32, i32, i32, i32
  }
  func.func @transform_1(%arg0: i32) -> (i32, i32, i32) {
    %c0_i32 = arith.constant 0 : i32
    %c0_i32_0 = arith.constant 0 : i32
    %c0_i32_1 = arith.constant 0 : i32
    %c0_i32_2 = arith.constant 0 : i32
    return %c0_i32, %c0_i32_0, %c0_i32_1 : i32, i32, i32
  }
  func.func @transform_2(%arg0: i32) -> (i32, i32) {
    %c0_i32 = arith.constant 0 : i32
    %c0_i32_0 = arith.constant 0 : i32
    %c0_i32_1 = arith.constant 0 : i32
    return %c0_i32, %c0_i32_0 : i32, i32
  }
  func.func @transform_3(%arg0: i32) -> (i32, i32) {
    %c0_i32 = arith.constant 0 : i32
    %c0_i32_0 = arith.constant 0 : i32
    %c0_i32_1 = arith.constant 0 : i32
    return %c0_i32, %c0_i32_0 : i32, i32
  }
  func.func @transform_4(%arg0: i32) -> (i32, i32) {
    %c0_i32 = arith.constant 0 : i32
    %c0_i32_0 = arith.constant 0 : i32
    return %arg0, %c0_i32 : i32, i32
  }
}

module attributes {stable_mosaic.version = 11 : i64} {
  func.func @_block_out_pool_kernel(%arg0: i32, %arg1: i32, %arg2: memref<64x64xbf16, #tpu.memory_space<vmem>>, %arg3: memref<64x128xbf16, #tpu.memory_space<vmem>>, %arg4: memref<1x128xf32, #tpu.memory_space<vmem>>, %arg5: memref<1x128xf32, #tpu.memory_space<vmem>>, %arg6: memref<64x128xf32, #tpu.memory_space<vmem>>, %arg7: memref<1x1x128xf32, #tpu.memory_space<vmem>>) attributes {dimension_semantics = [#tpu.dimension_semantics<parallel>, #tpu.dimension_semantics<parallel>], iteration_bounds = array<i64: 2, 2>, scalar_prefetch = 0 : i64, scratch_operands = 0 : i64, tpu.core_type = #tpu.core_type<tc>, window_params = [{transform_indices = @transform_0, window_bounds = array<i64: 64, 64>}, {transform_indices = @transform_1, window_bounds = array<i64: 64, 128>}, {transform_indices = @transform_2, window_bounds = array<i64: 1, 128>}, {transform_indices = @transform_3, window_bounds = array<i64: 1, 128>}, {transform_indices = @transform_4, window_bounds = array<i64: 64, 128>}, {transform_indices = @transform_5, window_bounds = array<i64: 1, 1, 128>}]} {
    %c0 = arith.constant 0 : index
    %c0_0 = arith.constant 0 : index
    %0 = vector.load %arg2[%c0, %c0_0] : memref<64x64xbf16, #tpu.memory_space<vmem>>, vector<64x64xbf16>
    %c0_1 = arith.constant 0 : index
    %c0_2 = arith.constant 0 : index
    %1 = vector.load %arg3[%c0_1, %c0_2] : memref<64x128xbf16, #tpu.memory_space<vmem>>, vector<64x128xbf16>
    %cst = arith.constant dense<0.000000e+00> : vector<64x128xf32>
    %2 = tpu.matmul %0, %1, %cst {dimension_numbers = #tpu.dot_dimension_numbers<[1], [0], [0], [1], [0, 0, 1, 1], [], []>} : vector<64x64xbf16>, vector<64x128xbf16>, vector<64x128xf32> -> vector<64x128xf32>
    %c0_3 = arith.constant 0 : index
    %c0_4 = arith.constant 0 : index
    %3 = vector.load %arg4[%c0_3, %c0_4] : memref<1x128xf32, #tpu.memory_space<vmem>>, vector<1x128xf32>
    %4 = vector.broadcast %3 : vector<1x128xf32> to vector<64x128xf32>
    %5 = arith.mulf %2, %4 : vector<64x128xf32>
    %c0_5 = arith.constant 0 : index
    %c0_6 = arith.constant 0 : index
    %6 = vector.load %arg5[%c0_5, %c0_6] : memref<1x128xf32, #tpu.memory_space<vmem>>, vector<1x128xf32>
    %7 = vector.broadcast %6 : vector<1x128xf32> to vector<64x128xf32>
    %8 = arith.addf %5, %7 : vector<64x128xf32>
    %c0_7 = arith.constant 0 : index
    %c0_8 = arith.constant 0 : index
    %9 = vector.load %arg6[%c0_7, %c0_8] : memref<64x128xf32, #tpu.memory_space<vmem>>, vector<64x128xf32>
    %10 = arith.addf %8, %9 : vector<64x128xf32>
    %cst_9 = arith.constant 0.000000e+00 : f32
    %11 = vector.broadcast %cst_9 : f32 to vector<64x128xf32>
    %12 = arith.maximumf %10, %11 : vector<64x128xf32>
    %cst_10 = arith.constant dense<0.000000e+00> : vector<128xf32>
    %13 = vector.multi_reduction <add>, %12, %cst_10 [0] : vector<64x128xf32> to vector<128xf32>
    %cst_11 = arith.constant 6.400000e+01 : f32
    %14 = vector.broadcast %cst_11 : f32 to vector<128xf32>
    %15 = arith.divf %13, %14 : vector<128xf32>
    %16 = vector.shape_cast %15 : vector<128xf32> to vector<1x1x128xf32>
    %c0_12 = arith.constant 0 : index
    %c0_13 = arith.constant 0 : index
    %c0_14 = arith.constant 0 : index
    %17 = vector.load %arg7[%c0_12, %c0_13, %c0_14] : memref<1x1x128xf32, #tpu.memory_space<vmem>>, vector<1x1x128xf32>
    tpu.vector_store %arg7[%c0_12, %c0_13, %c0_14], %16 {strides = array<i32>} : memref<1x1x128xf32, #tpu.memory_space<vmem>>, vector<1x1x128xf32>,
    return
  }
  func.func @transform_0(%arg0: i32, %arg1: i32) -> (i32, i32) {
    %c0_i32 = arith.constant 0 : i32
    %c0_i32_0 = arith.constant 0 : i32
    return %arg0, %c0_i32 : i32, i32
  }
  func.func @transform_1(%arg0: i32, %arg1: i32) -> (i32, i32) {
    %c0_i32 = arith.constant 0 : i32
    %c0_i32_0 = arith.constant 0 : i32
    return %c0_i32, %arg1 : i32, i32
  }
  func.func @transform_2(%arg0: i32, %arg1: i32) -> (i32, i32) {
    %c0_i32 = arith.constant 0 : i32
    %c0_i32_0 = arith.constant 0 : i32
    return %c0_i32, %arg1 : i32, i32
  }
  func.func @transform_3(%arg0: i32, %arg1: i32) -> (i32, i32) {
    %c0_i32 = arith.constant 0 : i32
    %c0_i32_0 = arith.constant 0 : i32
    return %c0_i32, %arg1 : i32, i32
  }
  func.func @transform_4(%arg0: i32, %arg1: i32) -> (i32, i32) {
    %c0_i32 = arith.constant 0 : i32
    return %arg0, %arg1 : i32, i32
  }
  func.func @transform_5(%arg0: i32, %arg1: i32) -> (i32, i32, i32) {
    %c0_i32 = arith.constant 0 : i32
    %c0_i32_0 = arith.constant 0 : i32
    return %arg0, %c0_i32, %arg1 : i32, i32, i32
  }
}

</mosaic_0001>

<bundles_post_ra>
// kernel: linear_eval_forward.5
= control target key start
LH: loop header
LB: loop body
LE: loop exit
PB: predicated region body
PF: predicated region fallthrough
CT: control target
= control target key end

     0   :  { %s1481_s18 = smov 0   ;;  %s1483_s19 = smov 0   ;;  %s1775_s0 = inlined_call_operand.vmem [shape: bf16[512,160], index: 0, kind: input, shape index: {}]   ;;  %s1776_s1 = inlined_call_operand.vmem [shape: bf16[160,64], index: 1, kind: input, shape index: {}]   ;;  %s1777_s2 = inlined_call_operand.vmem [shape: f32[1,64], index: 2, kind: input, shape index: {}]   ;;  %s1778_s3 = inlined_call_operand.vmem [shape: f32[1,64], index: 3, kind: input, shape index: {}]   ;;  %s1779_s4 = inlined_call_operand.vmem [shape: f32[1,64], index: 4, kind: input, shape index: {}]   ;;  %s1780_s5 = inlined_call_operand.vmem [shape: bf16[512,64], index: 5, kind: output, shape index: {}]  }
   0x1   :  { %s1485_s20 = smov 0  }
   0x2 LB: > { %s27_s21 = sadd.s32 1, %s1444_s19  ;;  %p1189_p0 = scmp.ge.s32.totalorder %s1448_s20, 1  ;;  %s1448_s20 = sphi %s1485_s20, %s15_s20   ;;  %s1444_s19 = sphi %s1483_s19, %s1782_s19   ;;  %s1440_s18 = sphi %s1481_s18, %s1781_s18  }
   0x3   : > { %p29_p1 = scmp.ge.s32.totalorder %s27_s21, 2  ;;  %p236_p2 = scmp.lt.s32.totalorder %s1448_s20, 3 }
   0x5   : > { %s1784_s21 = smov (%p29_p1, %s27_s21), 0  ;;  %p237_p3 = pnand %p1189_p0, %p236_p2 }
   0x6   : > { %v1368_v0 = vld [vmem:[%s1776_s1] sm:$0xff] (!%p237_p3)   ;;  %v1450_v1 = vmov (!%p237_p3), 0   ;;  %s1190_s24 = sshll.u32 (!%p237_p3), %s1440_s18, 5  ;;  %v1369_v2 = vld [vmem:[%s1776_s1 + $0x8] sm:$0xff] (!%p237_p3)   ;;  %v1370_v3 = vld [vmem:[%s1776_s1 + $0x10] sm:$0xff] (!%p237_p3)   ;;  %vm567_vm0 = vcmask (!%p237_p3), 261120  }
   0x7   : > { %240 = sbr.rel (%p237_p3) target bundleno = 326 (0x146), region = 40  ;;  %616 = vmatprep.subr.bf16.mxu0 (!%p237_p3), %v1450_v1  ;;  %1323 = vmatprep.subr.bf16.mxu1 (!%p237_p3), %v1450_v1  ;;  %p282_p4 = scmp.lt.s32.totalorder (!%p237_p3), %s1190_s24, 63  ;;  %v1371_v4 = vld [vmem:[%s1776_s1 + $0x18] sm:$0xff] (!%p237_p3)   ;;  %v1372_v7 = vld [vmem:[%s1776_s1 + $0x20] sm:$0xff] (!%p237_p3)   ;;  %v1373_v8 = vld [vmem:[%s1776_s1 + $0x28] sm:$0xff] (!%p237_p3)   ;;  %vm1022_vm1 = vcmask (!%p237_p3), 519168  }
   0x8   : > { %617 = vmatpush1.bf16.msra.mxu0 (!%p237_p3), %v1368_v0  ;;  %1333 = vmatpush1.bf16.msra.mxu1 (!%p237_p3), %v1368_v0  ;;  %v1374_v9 = vld [vmem:[%s1776_s1 + $0x30] sm:$0xff] (!%p237_p3)   ;;  %v1375_v10 = vld [vmem:[%s1776_s1 + $0x38] sm:$0xff] (!%p237_p3)   ;;  %v1376_v11 = vld [vmem:[%s1776_s1 + $0x40] sm:$0xff] (!%p237_p3)  }
   0x9   : > { %618 = vmatprep.subr.bf16.mxu0 (!%p237_p3), %v1450_v1  ;;  %1324 = vmatprep.subr.bf16.mxu1 (!%p237_p3), %v1450_v1  ;;  %v1377_v12 = vld [vmem:[%s1776_s1 + $0x48] sm:$0xff] (!%p237_p3)   ;;  %v1588_v43 = vld [vmem:[%s1777_s2] ss:$0 sm:$0xff] (!%p237_p3) }
   0xa   : > { %v1593_v45 = vld [vmem:[%s1778_s3] ss:$0 sm:$0xff] (!%p237_p3) }
   0xb   : > { %v1600_v51 = vld [vmem:[%s1779_s4] ss:$0 sm:$0xff] (!%p237_p3) }
   0xc   : > { %619 = vmatpush1.bf16.msra.mxu0 (!%p237_p3), %v1369_v2  ;;  %1334 = vmatpush1.bf16.msra.mxu1 (!%p237_p3), %v1369_v2 }
   0xd   : > { %620 = vmatprep.subr.bf16.mxu0 (!%p237_p3), %v1450_v1  ;;  %1325 = vmatprep.subr.bf16.mxu1 (!%p237_p3), %v1450_v1 }
   0xe   : > { %s1786_s24 = smov (!%p282_p4, %s1190_s24), 63 }
   0xf   : > { %s1290_s29 = sshll.u32 %s1786_s24, 3 }
  0x10   : > { %s1514_s7 = scalar_lea.vmem %s1775_s0, %s1290_s29  ;;  %621 = vmatpush1.bf16.msra.mxu0 %v1370_v3  ;;  %1335 = vmatpush1.bf16.msra.mxu1 %v1370_v3 }
  0x11   : > { %622 = vmatprep.subr.bf16.mxu0 %v1450_v1  ;;  %1326 = vmatprep.subr.bf16.mxu1 %v1450_v1  ;;  %v1380_v5 = vld [vmem:[%s1514_s7 + $0x4] ss:$8 sps:$4 sm:$0xff]   ;;  %v1378_v13 = vld [vmem:[%s1514_s7] ss:$8 sps:$4 sm:$0xff]   ;;  %v1384_v15 = vld [vmem:[%s1514_s7 + $0x14] ss:$8 sps:$4 sm:$0xff]  }
  0x12   : > { %v1383_v6 = vld [vmem:[%s1514_s7 + $0x84] ss:$8 sps:$4 sm:$0xff]   ;;  %1237 = vmatprep.mubr.msk.bf16.mxu0 %vm567_vm0, %v1380_v5  ;;  %v1381_v14 = vld [vmem:[%s1514_s7 + $0x80] ss:$8 sps:$4 sm:$0xff]   ;;  %v1386_v16 = vld [vmem:[%s1514_s7 + $0x94] ss:$8 sps:$4 sm:$0xff]  }
  0x13   : > { %1245 = vmatprep.mubr.msk.bf16.mxu1 %vm567_vm0, %v1383_v6  ;;  %v1388_v17 = vld [vmem:[%s1514_s7 + $0x10] ss:$8 sps:$4 sm:$0xff]   ;;  %v1390_v19 = vld [vmem:[%s1514_s7 + $0x24] ss:$8 sps:$4 sm:$0xff]   ;;  %v1394_v21 = vld [vmem:[%s1514_s7 + $0x20] ss:$8 sps:$4 sm:$0xff]  }
  0x14   : > { %623 = vmatpush1.bf16.msra.mxu0 %v1371_v4  ;;  %1336 = vmatpush1.bf16.msra.mxu1 %v1371_v4  ;;  %v1389_v18 = vld [vmem:[%s1514_s7 + $0x90] ss:$8 sps:$4 sm:$0xff]   ;;  %v1392_v20 = vld [vmem:[%s1514_s7 + $0xa4] ss:$8 sps:$4 sm:$0xff]   ;;  %v1395_v22 = vld [vmem:[%s1514_s7 + $0xa0] ss:$8 sps:$4 sm:$0xff]  }
  0x15   : > { %624 = vmatprep.subr.bf16.mxu0 %v1450_v1  ;;  %1327 = vmatprep.subr.bf16.mxu1 %v1450_v1  ;;  %v1396_v23 = vld [vmem:[%s1514_s7 + $0x34] ss:$8 sps:$4 sm:$0xff]   ;;  %v1400_v25 = vld [vmem:[%s1514_s7 + $0x30] ss:$8 sps:$4 sm:$0xff]   ;;  %v1402_v27 = vld [vmem:[%s1514_s7 + $0x44] ss:$8 sps:$4 sm:$0xff]  }
  0x16   : > { %v1398_v24 = vld [vmem:[%s1514_s7 + $0xb4] ss:$8 sps:$4 sm:$0xff]   ;;  %v1401_v26 = vld [vmem:[%s1514_s7 + $0xb0] ss:$8 sps:$4 sm:$0xff]   ;;  %v1404_v28 = vld [vmem:[%s1514_s7 + $0xc4] ss:$8 sps:$4 sm:$0xff]  }
  0x17   : > { %v1406_v29 = vld [vmem:[%s1514_s7 + $0x40] ss:$8 sps:$4 sm:$0xff]   ;;  %v1408_v31 = vld [vmem:[%s1514_s7 + $0x54] ss:$8 sps:$4 sm:$0xff]   ;;  %v1412_v33 = vld [vmem:[%s1514_s7 + $0x50] ss:$8 sps:$4 sm:$0xff]  }
  0x18   : > { %625 = vmatpush1.bf16.msra.mxu0 %v1372_v7  ;;  %1337 = vmatpush1.bf16.msra.mxu1 %v1372_v7  ;;  %v1407_v30 = vld [vmem:[%s1514_s7 + $0xc0] ss:$8 sps:$4 sm:$0xff]   ;;  %v1410_v32 = vld [vmem:[%s1514_s7 + $0xd4] ss:$8 sps:$4 sm:$0xff]   ;;  %v1413_v34 = vld [vmem:[%s1514_s7 + $0xd0] ss:$8 sps:$4 sm:$0xff]  }
  0x19   : > { %626 = vmatprep.subr.bf16.mxu0 %v1450_v1  ;;  %1328 = vmatprep.subr.bf16.mxu1 %v1450_v1  ;;  %v1414_v35 = vld [vmem:[%s1514_s7 + $0x64] ss:$8 sps:$4 sm:$0xff]   ;;  %v1418_v37 = vld [vmem:[%s1514_s7 + $0x60] ss:$8 sps:$4 sm:$0xff]   ;;  %v1420_v39 = vld [vmem:[%s1514_s7 + $0x74] ss:$8 sps:$4 sm:$0xff]  }
  0x1a   : > { %v1416_v36 = vld [vmem:[%s1514_s7 + $0xe4] ss:$8 sps:$4 sm:$0xff]   ;;  %v1419_v38 = vld [vmem:[%s1514_s7 + $0xe0] ss:$8 sps:$4 sm:$0xff]   ;;  %v1422_v40 = vld [vmem:[%s1514_s7 + $0xf4] ss:$8 sps:$4 sm:$0xff]  }
  0x1b   : > { %v1424_v41 = vld [vmem:[%s1514_s7 + $0x70] ss:$8 sps:$4 sm:$0xff]  }
  0x1c   : > { %627 = vmatpush1.bf16.msra.mxu0 %v1373_v8  ;;  %1338 = vmatpush1.bf16.msra.mxu1 %v1373_v8  ;;  %v1425_v42 = vld [vmem:[%s1514_s7 + $0xf0] ss:$8 sps:$4 sm:$0xff]   ;;  %s1194_s7 = sshll.u32 %s1786_s24, 2 }
  0x1d   : > { %628 = vmatprep.subr.bf16.mxu0 %v1450_v1  ;;  %1329 = vmatprep.subr.bf16.mxu1 %v1450_v1  ;;  %s1614_s9 = scalar_lea.vmem %s1780_s5, %s1194_s7 }
  0x20   : > { %629 = vmatpush1.bf16.msra.mxu0 %v1374_v9  ;;  %1339 = vmatpush1.bf16.msra.mxu1 %v1374_v9 }
  0x21   : > { %630 = vmatprep.subr.bf16.mxu0 %v1450_v1  ;;  %1330 = vmatprep.subr.bf16.mxu1 %v1450_v1 }
  0x24   : > { %631 = vmatpush1.bf16.msra.mxu0 %v1375_v10  ;;  %1340 = vmatpush1.bf16.msra.mxu1 %v1375_v10 }
  0x25   : > { %632 = vmatprep.subr.bf16.mxu0 %v1450_v1  ;;  %1331 = vmatprep.subr.bf16.mxu1 %v1450_v1 }
  0x28   : > { %633 = vmatpush1.bf16.msra.mxu0 %v1376_v11  ;;  %1341 = vmatpush1.bf16.msra.mxu1 %v1376_v11 }
  0x29   : > { %634 = vmatprep.subr.bf16.mxu0 %v1450_v1  ;;  %1332 = vmatprep.subr.bf16.mxu1 %v1450_v1 }
  0x2c   : > { %635 = vmatpush1.bf16.msra.mxu0 %v1377_v12  ;;  %1342 = vmatpush1.bf16.msra.mxu1 %v1377_v12 }
  0x2f   : > { %649 = vmatmul.mubr.bf16.vlgmr.msra.gmra.mrb[0].mxu0 %v1378_v13  ;;  %713 = vmatmul.mubr.bf16.vlgmr.msra.gmra.mrb[0].mxu1 %v1381_v14 }
  0x30   : > { %1238 = vmatprep.mubr.msk.bf16.mxu0 %vm567_vm0, %v1384_v15  ;;  %1246 = vmatprep.mubr.msk.bf16.mxu1 %vm567_vm0, %v1386_v16 }
  0x37   : > { %657 = vmatmul.mubr.bf16.gmra.mrb[4].mxu0 %v1388_v17  ;;  %721 = vmatmul.mubr.bf16.gmra.mrb[4].mxu1 %v1389_v18 }
  0x38   : > { %1239 = vmatprep.mubr.msk.bf16.mxu0 %vm567_vm0, %v1390_v19  ;;  %1247 = vmatprep.mubr.msk.bf16.mxu1 %vm567_vm0, %v1392_v20 }
  0x3f   : > { %665 = vmatmul.mubr.bf16.gmra.mrb[8].mxu0 %v1394_v21  ;;  %729 = vmatmul.mubr.bf16.gmra.mrb[8].mxu1 %v1395_v22 }
  0x40   : > { %1240 = vmatprep.mubr.msk.bf16.mxu0 %vm567_vm0, %v1396_v23  ;;  %1248 = vmatprep.mubr.msk.bf16.mxu1 %vm567_vm0, %v1398_v24 }
  0x47   : > { %673 = vmatmul.mubr.bf16.gmra.mrb[12].mxu0 %v1400_v25  ;;  %737 = vmatmul.mubr.bf16.gmra.mrb[12].mxu1 %v1401_v26 }
  0x48   : > { %1241 = vmatprep.mubr.msk.bf16.mxu0 %vm567_vm0, %v1402_v27  ;;  %1249 = vmatprep.mubr.msk.bf16.mxu1 %vm567_vm0, %v1404_v28 }
  0x4f   : > { %681 = vmatmul.mubr.bf16.gmra.mrb[16].mxu0 %v1406_v29  ;;  %745 = vmatmul.mubr.bf16.gmra.mrb[16].mxu1 %v1407_v30 }
  0x50   : > { %1242 = vmatprep.mubr.msk.bf16.mxu0 %vm567_vm0, %v1408_v31  ;;  %1250 = vmatprep.mubr.msk.bf16.mxu1 %vm567_vm0, %v1410_v32 }
  0x57   : > { %689 = vmatmul.mubr.bf16.gmra.mrb[20].mxu0 %v1412_v33  ;;  %753 = vmatmul.mubr.bf16.gmra.mrb[20].mxu1 %v1413_v34 }
  0x58   : > { %1243 = vmatprep.mubr.msk.bf16.mxu0 %vm567_vm0, %v1414_v35  ;;  %1251 = vmatprep.mubr.msk.bf16.mxu1 %vm567_vm0, %v1416_v36 }
  0x5f   : > { %697 = vmatmul.mubr.bf16.gmra.mrb[24].mxu0 %v1418_v37  ;;  %761 = vmatmul.mubr.bf16.gmra.mrb[24].mxu1 %v1419_v38 }
  0x60   : > { %1244 = vmatprep.mubr.msk.bf16.mxu0 %vm567_vm0, %v1420_v39  ;;  %1252 = vmatprep.mubr.msk.bf16.mxu1 %vm567_vm0, %v1422_v40 }
  0x67   : > { %705 = vmatmul.mubr.bf16.gmra.mrb[28].mxu0 %v1424_v41  ;;  %769 = vmatmul.mubr.bf16.gmra.mrb[28].mxu1 %v1425_v42 }
 0x102   : > { %v650_v44 = vpop.f32.mrb[0].mxu0  ;;  %v714_v46 = vpop.f32.mrb[0].mxu1 }
 0x103   : > { %v784_v47 = vmul.f32 %v1588_v43, %v650_v44  ;;  %v800_v48 = vmul.f32 %v1588_v43, %v714_v46  ;;  %v652_v49 = vpop.f32.mrb[1].mxu0  ;;  %v716_v50 = vpop.f32.mrb[1].mxu1 }
 0x104   : > { %v653_v52 = vpop.f32.mrb[2].mxu0  ;;  %v717_v53 = vpop.f32.mrb[2].mxu1 }
 0x105   : > { %v823_v54 = vadd.f32 %v1593_v45, %v784_v47  ;;  %v839_v55 = vadd.f32 %v1593_v45, %v800_v48  ;;  %v785_v56 = vmul.f32 %v1588_v43, %v653_v52  ;;  %v801_v57 = vmul.f32 %v1588_v43, %v717_v53  ;;  %v655_v58 = vpop.f32.mrb[3].mxu0  ;;  %v719_v59 = vpop.f32.mrb[3].mxu1 }
 0x107   : > { %v862_v60 = vmax.f32 %v823_v54, %v1600_v51  ;;  %v878_v61 = vmax.f32 %v839_v55, %v1600_v51  ;;  %v824_v62 = vadd.f32 %v1593_v45, %v785_v56  ;;  %v840_v63 = vadd.f32 %v1593_v45, %v801_v57 }
 0x109   : > { %v1291_v0 = vpack.c.bf16 %v862_v60, %v862_v60  ;;  %v1307_v1 = vpack.c.bf16 %v878_v61, %v878_v61  ;;  %v863_v2 = vmax.f32 %v824_v62, %v1600_v51  ;;  %v879_v3 = vmax.f32 %v840_v63, %v1600_v51 }
 0x10a   : > { %v658_v4 = vpop.f32.mrb[4].mxu0  ;;  %v722_v5 = vpop.f32.mrb[4].mxu1 }
 0x10b   : > { %1023 = vst.msk [vmem:[%s1614_s9] sm:$0xf] %vm1022_vm1, %v1291_v0  ;;  %1039 = vst.msk [vmem:[%s1614_s9 + $0x40] sm:$0xf] %vm1022_vm1, %v1307_v1  ;;  %v1292_v6 = vpack.c.bf16 %v863_v2, %v863_v2  ;;  %v1308_v7 = vpack.c.bf16 %v879_v3, %v879_v3  ;;  %v786_v8 = vmul.f32 %v1588_v43, %v658_v4  ;;  %v660_v10 = vpop.f32.mrb[5].mxu0  ;;  %v724_v11 = vpop.f32.mrb[5].mxu1 }
 0x10c   : > { %v802_v9 = vmul.f32 %v1588_v43, %v722_v5  ;;  %v661_v12 = vpop.f32.mrb[6].mxu0  ;;  %v725_v13 = vpop.f32.mrb[6].mxu1 }
 0x10d   : > { %1024 = vst.msk [vmem:[%s1614_s9 + $0x4] sm:$0xf] %vm1022_vm1, %v1292_v6  ;;  %1040 = vst.msk [vmem:[%s1614_s9 + $0x44] sm:$0xf] %vm1022_vm1, %v1308_v7  ;;  %v825_v14 = vadd.f32 %v1593_v45, %v786_v8  ;;  %v787_v16 = vmul.f32 %v1588_v43, %v661_v12  ;;  %v803_v17 = vmul.f32 %v1588_v43, %v725_v13  ;;  %v663_v18 = vpop.f32.mrb[7].mxu0  ;;  %v727_v19 = vpop.f32.mrb[7].mxu1 }
 0x10e   : > { %v841_v15 = vadd.f32 %v1593_v45, %v802_v9 }
 0x10f   : > { %v864_v20 = vmax.f32 %v825_v14, %v1600_v51  ;;  %v826_v22 = vadd.f32 %v1593_v45, %v787_v16  ;;  %v842_v23 = vadd.f32 %v1593_v45, %v803_v17 }
 0x110   : > { %v880_v21 = vmax.f32 %v841_v15, %v1600_v51 }
 0x111   : > { %v1293_v24 = vpack.c.bf16 %v864_v20, %v864_v20  ;;  %v865_v26 = vmax.f32 %v826_v22, %v1600_v51  ;;  %v881_v27 = vmax.f32 %v842_v23, %v1600_v51 }
 0x112   : > { %v1309_v25 = vpack.c.bf16 %v880_v21, %v880_v21  ;;  %v666_v28 = vpop.f32.mrb[8].mxu0  ;;  %v730_v29 = vpop.f32.mrb[8].mxu1 }
 0x113   : > { %1025 = vst.msk [vmem:[%s1614_s9 + $0x8] sm:$0xf] %vm1022_vm1, %v1293_v24  ;;  %v1294_v30 = vpack.c.bf16 %v865_v26, %v865_v26  ;;  %v1310_v31 = vpack.c.bf16 %v881_v27, %v881_v27  ;;  %v788_v32 = vmul.f32 %v1588_v43, %v666_v28  ;;  %v804_v33 = vmul.f32 %v1588_v43, %v730_v29  ;;  %v668_v34 = vpop.f32.mrb[9].mxu0  ;;  %v732_v35 = vpop.f32.mrb[9].mxu1 }
 0x114   : > { %1041 = vst.msk [vmem:[%s1614_s9 + $0x48] sm:$0xf] %vm1022_vm1, %v1309_v25  ;;  %v669_v36 = vpop.f32.mrb[10].mxu0  ;;  %v733_v37 = vpop.f32.mrb[10].mxu1 }
 0x115   : > { %1026 = vst.msk [vmem:[%s1614_s9 + $0xc] sm:$0xf] %vm1022_vm1, %v1294_v30  ;;  %1042 = vst.msk [vmem:[%s1614_s9 + $0x4c] sm:$0xf] %vm1022_vm1, %v1310_v31  ;;  %v827_v38 = vadd.f32 %v1593_v45, %v788_v32  ;;  %v843_v39 = vadd.f32 %v1593_v45, %v804_v33  ;;  %v789_v40 = vmul.f32 %v1588_v43, %v669_v36  ;;  %v671_v42 = vpop.f32.mrb[11].mxu0  ;;  %v735_v44 = vpop.f32.mrb[11].mxu1 }
 0x116   : > { %v805_v41 = vmul.f32 %v1588_v43, %v733_v37 }
 0x117   : > { %v866_v46 = vmax.f32 %v827_v38, %v1600_v51  ;;  %v882_v47 = vmax.f32 %v843_v39, %v1600_v51  ;;  %v828_v48 = vadd.f32 %v1593_v45, %v789_v40 }
 0x118   : > { %v844_v49 = vadd.f32 %v1593_v45, %v805_v41 }
 0x119   : > { %v1295_v50 = vpack.c.bf16 %v866_v46, %v866_v46  ;;  %v1311_v52 = vpack.c.bf16 %v882_v47, %v882_v47  ;;  %v867_v53 = vmax.f32 %v828_v48, %v1600_v51 }
 0x11a   : > { %v883_v54 = vmax.f32 %v844_v49, %v1600_v51  ;;  %v674_v55 = vpop.f32.mrb[12].mxu0  ;;  %v738_v56 = vpop.f32.mrb[12].mxu1 }
 0x11b   : > { %1027 = vst.msk [vmem:[%s1614_s9 + $0x10] sm:$0xf] %vm1022_vm1, %v1295_v50  ;;  %1043 = vst.msk [vmem:[%s1614_s9 + $0x50] sm:$0xf] %vm1022_vm1, %v1311_v52  ;;  %v1296_v57 = vpack.c.bf16 %v867_v53, %v867_v53  ;;  %v790_v59 = vmul.f32 %v1588_v43, %v674_v55  ;;  %v806_v60 = vmul.f32 %v1588_v43, %v738_v56  ;;  %v676_v61 = vpop.f32.mrb[13].mxu0  ;;  %v740_v62 = vpop.f32.mrb[13].mxu1 }
 0x11c   : > { %v1312_v58 = vpack.c.bf16 %v883_v54, %v883_v54  ;;  %v677_v63 = vpop.f32.mrb[14].mxu0  ;;  %v741_v0 = vpop.f32.mrb[14].mxu1 }
 0x11d   : > { %1028 = vst.msk [vmem:[%s1614_s9 + $0x14] sm:$0xf] %vm1022_vm1, %v1296_v57  ;;  %v829_v1 = vadd.f32 %v1593_v45, %v790_v59  ;;  %v845_v2 = vadd.f32 %v1593_v45, %v806_v60  ;;  %v791_v3 = vmul.f32 %v1588_v43, %v677_v63  ;;  %v807_v4 = vmul.f32 %v1588_v43, %v741_v0  ;;  %v679_v5 = vpop.f32.mrb[15].mxu0  ;;  %v743_v6 = vpop.f32.mrb[15].mxu1 }
 0x11e   : > { %1044 = vst.msk [vmem:[%s1614_s9 + $0x54] sm:$0xf] %vm1022_vm1, %v1312_v58 }
 0x11f   : > { %v868_v7 = vmax.f32 %v829_v1, %v1600_v51  ;;  %v884_v8 = vmax.f32 %v845_v2, %v1600_v51  ;;  %v830_v9 = vadd.f32 %v1593_v45, %v791_v3  ;;  %v846_v10 = vadd.f32 %v1593_v45, %v807_v4 }
 0x121   : > { %v1297_v11 = vpack.c.bf16 %v868_v7, %v868_v7  ;;  %v1313_v12 = vpack.c.bf16 %v884_v8, %v884_v8  ;;  %v869_v13 = vmax.f32 %v830_v9, %v1600_v51  ;;  %v885_v14 = vmax.f32 %v846_v10, %v1600_v51 }
 0x122   : > { %v682_v15 = vpop.f32.mrb[16].mxu0  ;;  %v746_v16 = vpop.f32.mrb[16].mxu1 }
 0x123   : > { %1029 = vst.msk [vmem:[%s1614_s9 + $0x18] sm:$0xf] %vm1022_vm1, %v1297_v11  ;;  %1045 = vst.msk [vmem:[%s1614_s9 + $0x58] sm:$0xf] %vm1022_vm1, %v1313_v12  ;;  %v1298_v17 = vpack.c.bf16 %v869_v13, %v869_v13  ;;  %v1314_v18 = vpack.c.bf16 %v885_v14, %v885_v14  ;;  %v792_v19 = vmul.f32 %v1588_v43, %v682_v15  ;;  %v684_v21 = vpop.f32.mrb[17].mxu0  ;;  %v748_v22 = vpop.f32.mrb[17].mxu1 }
 0x124   : > { %v808_v20 = vmul.f32 %v1588_v43, %v746_v16  ;;  %v685_v23 = vpop.f32.mrb[18].mxu0  ;;  %v749_v24 = vpop.f32.mrb[18].mxu1 }
 0x125   : > { %1030 = vst.msk [vmem:[%s1614_s9 + $0x1c] sm:$0xf] %vm1022_vm1, %v1298_v17  ;;  %1046 = vst.msk [vmem:[%s1614_s9 + $0x5c] sm:$0xf] %vm1022_vm1, %v1314_v18  ;;  %v831_v25 = vadd.f32 %v1593_v45, %v792_v19  ;;  %v793_v27 = vmul.f32 %v1588_v43, %v685_v23  ;;  %v809_v28 = vmul.f32 %v1588_v43, %v749_v24  ;;  %v687_v29 = vpop.f32.mrb[19].mxu0  ;;  %v751_v30 = vpop.f32.mrb[19].mxu1 }
 0x126   : > { %v847_v26 = vadd.f32 %v1593_v45, %v808_v20 }
 0x127   : > { %v870_v31 = vmax.f32 %v831_v25, %v1600_v51  ;;  %v832_v33 = vadd.f32 %v1593_v45, %v793_v27  ;;  %v848_v34 = vadd.f32 %v1593_v45, %v809_v28 }
 0x128   : > { %v886_v32 = vmax.f32 %v847_v26, %v1600_v51 }
 0x129   : > { %v1299_v35 = vpack.c.bf16 %v870_v31, %v870_v31  ;;  %v871_v37 = vmax.f32 %v832_v33, %v1600_v51  ;;  %v887_v38 = vmax.f32 %v848_v34, %v1600_v51 }
 0x12a   : > { %v1315_v36 = vpack.c.bf16 %v886_v32, %v886_v32  ;;  %v690_v39 = vpop.f32.mrb[20].mxu0  ;;  %v754_v40 = vpop.f32.mrb[20].mxu1 }
 0x12b   : > { %1031 = vst.msk [vmem:[%s1614_s9 + $0x20] sm:$0xf] %vm1022_vm1, %v1299_v35  ;;  %v1300_v41 = vpack.c.bf16 %v871_v37, %v871_v37  ;;  %v1316_v42 = vpack.c.bf16 %v887_v38, %v887_v38  ;;  %v794_v44 = vmul.f32 %v1588_v43, %v690_v39  ;;  %v810_v46 = vmul.f32 %v1588_v43, %v754_v40  ;;  %v692_v47 = vpop.f32.mrb[21].mxu0  ;;  %v756_v48 = vpop.f32.mrb[21].mxu1 }
 0x12c   : > { %1047 = vst.msk [vmem:[%s1614_s9 + $0x60] sm:$0xf] %vm1022_vm1, %v1315_v36  ;;  %v693_v49 = vpop.f32.mrb[22].mxu0  ;;  %v757_v50 = vpop.f32.mrb[22].mxu1 }
 0x12d   : > { %1032 = vst.msk [vmem:[%s1614_s9 + $0x24] sm:$0xf] %vm1022_vm1, %v1300_v41  ;;  %1048 = vst.msk [vmem:[%s1614_s9 + $0x64] sm:$0xf] %vm1022_vm1, %v1316_v42  ;;  %v833_v52 = vadd.f32 %v1593_v45, %v794_v44  ;;  %v849_v53 = vadd.f32 %v1593_v45, %v810_v46  ;;  %v795_v54 = vmul.f32 %v1588_v43, %v693_v49  ;;  %v695_v56 = vpop.f32.mrb[23].mxu0  ;;  %v759_v57 = vpop.f32.mrb[23].mxu1 }
 0x12e   : > { %v811_v55 = vmul.f32 %v1588_v43, %v757_v50 }
 0x12f   : > { %v872_v58 = vmax.f32 %v833_v52, %v1600_v51  ;;  %v888_v59 = vmax.f32 %v849_v53, %v1600_v51  ;;  %v834_v60 = vadd.f32 %v1593_v45, %v795_v54 }
 0x130   : > { %v850_v61 = vadd.f32 %v1593_v45, %v811_v55 }
 0x131   : > { %v1301_v62 = vpack.c.bf16 %v872_v58, %v872_v58  ;;  %v1317_v63 = vpack.c.bf16 %v888_v59, %v888_v59  ;;  %v873_v0 = vmax.f32 %v834_v60, %v1600_v51 }
 0x132   : > { %v889_v1 = vmax.f32 %v850_v61, %v1600_v51  ;;  %v698_v2 = vpop.f32.mrb[24].mxu0  ;;  %v762_v3 = vpop.f32.mrb[24].mxu1 }
 0x133   : > { %1033 = vst.msk [vmem:[%s1614_s9 + $0x28] sm:$0xf] %vm1022_vm1, %v1301_v62  ;;  %1049 = vst.msk [vmem:[%s1614_s9 + $0x68] sm:$0xf] %vm1022_vm1, %v1317_v63  ;;  %v1302_v4 = vpack.c.bf16 %v873_v0, %v873_v0  ;;  %v796_v6 = vmul.f32 %v1588_v43, %v698_v2  ;;  %v812_v7 = vmul.f32 %v1588_v43, %v762_v3  ;;  %v700_v8 = vpop.f32.mrb[25].mxu0  ;;  %v764_v9 = vpop.f32.mrb[25].mxu1 }
 0x134   : > { %v1318_v5 = vpack.c.bf16 %v889_v1, %v889_v1  ;;  %v701_v10 = vpop.f32.mrb[26].mxu0  ;;  %v765_v11 = vpop.f32.mrb[26].mxu1 }
 0x135   : > { %1034 = vst.msk [vmem:[%s1614_s9 + $0x2c] sm:$0xf] %vm1022_vm1, %v1302_v4  ;;  %v835_v12 = vadd.f32 %v1593_v45, %v796_v6  ;;  %v851_v13 = vadd.f32 %v1593_v45, %v812_v7  ;;  %v797_v14 = vmul.f32 %v1588_v43, %v701_v10  ;;  %v813_v15 = vmul.f32 %v1588_v43, %v765_v11  ;;  %v703_v16 = vpop.f32.mrb[27].mxu0  ;;  %v767_v17 = vpop.f32.mrb[27].mxu1 }
 0x136   : > { %1050 = vst.msk [vmem:[%s1614_s9 + $0x6c] sm:$0xf] %vm1022_vm1, %v1318_v5 }
 0x137   : > { %v874_v18 = vmax.f32 %v835_v12, %v1600_v51  ;;  %v890_v19 = vmax.f32 %v851_v13, %v1600_v51  ;;  %v836_v20 = vadd.f32 %v1593_v45, %v797_v14  ;;  %v852_v21 = vadd.f32 %v1593_v45, %v813_v15 }
 0x139   : > { %v1303_v22 = vpack.c.bf16 %v874_v18, %v874_v18  ;;  %v1319_v23 = vpack.c.bf16 %v890_v19, %v890_v19  ;;  %v875_v24 = vmax.f32 %v836_v20, %v1600_v51  ;;  %v891_v25 = vmax.f32 %v852_v21, %v1600_v51 }
 0x13a   : > { %v706_v26 = vpop.f32.mrb[28].mxu0  ;;  %v770_v27 = vpop.f32.mrb[28].mxu1 }
 0x13b   : > { %1035 = vst.msk [vmem:[%s1614_s9 + $0x30] sm:$0xf] %vm1022_vm1, %v1303_v22  ;;  %1051 = vst.msk [vmem:[%s1614_s9 + $0x70] sm:$0xf] %vm1022_vm1, %v1319_v23  ;;  %v1304_v28 = vpack.c.bf16 %v875_v24, %v875_v24  ;;  %v1320_v29 = vpack.c.bf16 %v891_v25, %v891_v25  ;;  %v798_v30 = vmul.f32 %v1588_v43, %v706_v26  ;;  %v708_v32 = vpop.f32.mrb[29].mxu0  ;;  %v772_v33 = vpop.f32.mrb[29].mxu1 }
 0x13c   : > { %v814_v31 = vmul.f32 %v1588_v43, %v770_v27  ;;  %v709_v34 = vpop.f32.mrb[30].mxu0  ;;  %v773_v35 = vpop.f32.mrb[30].mxu1 }
 0x13d   : > { %1036 = vst.msk [vmem:[%s1614_s9 + $0x34] sm:$0xf] %vm1022_vm1, %v1304_v28  ;;  %1052 = vst.msk [vmem:[%s1614_s9 + $0x74] sm:$0xf] %vm1022_vm1, %v1320_v29  ;;  %v837_v36 = vadd.f32 %v1593_v45, %v798_v30  ;;  %v799_v38 = vmul.f32 %v1588_v43, %v709_v34  ;;  %v815_v39 = vmul.f32 %v1588_v43, %v773_v35  ;;  %v711_v40 = vpop.f32.mrb[31].mxu0  ;;  %v775_v41 = vpop.f32.mrb[31].mxu1 }
 0x13e   : > { %v853_v37 = vadd.f32 %v1593_v45, %v814_v31 }
 0x13f   : > { %v876_v42 = vmax.f32 %v837_v36, %v1600_v51  ;;  %v838_v46 = vadd.f32 %v1593_v45, %v799_v38  ;;  %v854_v47 = vadd.f32 %v1593_v45, %v815_v39 }
 0x140   : > { %v892_v44 = vmax.f32 %v853_v37, %v1600_v51 }
 0x141   : > { %v1305_v48 = vpack.c.bf16 %v876_v42, %v876_v42  ;;  %v877_v50 = vmax.f32 %v838_v46, %v1600_v51  ;;  %v893_v52 = vmax.f32 %v854_v47, %v1600_v51 }
 0x142   : > { %v1321_v49 = vpack.c.bf16 %v892_v44, %v892_v44 }
 0x143   : > { %1037 = vst.msk [vmem:[%s1614_s9 + $0x38] sm:$0xf] %vm1022_vm1, %v1305_v48  ;;  %v1306_v43 = vpack.c.bf16 %v877_v50, %v877_v50  ;;  %v1322_v53 = vpack.c.bf16 %v893_v52, %v893_v52 }
 0x144   : > { %1053 = vst.msk [vmem:[%s1614_s9 + $0x78] sm:$0xf] %vm1022_vm1, %v1321_v49 }
 0x145   : > { %1038 = vst.msk [vmem:[%s1614_s9 + $0x3c] sm:$0xf] %vm1022_vm1, %v1306_v43  ;;  %1054 = vst.msk [vmem:[%s1614_s9 + $0x7c] sm:$0xf] %vm1022_vm1, %v1322_v53 }
 0x146 PF: > { %s15_s20 = sadd.s32 1, %s1448_s20   ;;  %s1781_s18 = smov %s1444_s19 }
 0x147   : > { %p12_p5 = scmp.ge.s32.totalorder %s15_s20, 4   ;;  %s1782_s19 = smov %s1784_s21 }
 0x149   :  { %14 = sbr.rel (!%p12_p5) target bundleno = 2 (0x2), region = 82 }

// kernel: linear_eval_forward.6
= control target key start
LH: loop header
LB: loop body
LE: loop exit
PB: predicated region body
PF: predicated region fallthrough
CT: control target
= control target key end

     0   :  { %s1101_s6 = smov 0   ;;  %s1373_s0 = inlined_call_operand.vmem [shape: bf16[64,9,128], index: 0, kind: input, shape index: {}]   ;;  %s1374_s1 = inlined_call_operand.vmem [shape: bf16[64,128], index: 1, kind: output, shape index: {}]  }
   0x1 LB: > { %s966_s7 = sadd.s32 4294967295, %s1089_s6   ;;  %p970_p0 = scmp.ge.s32.totalorder %s1089_s6, 1  ;;  %s1089_s6 = sphi %s1101_s6, %s11_s6  }
   0x2   : > { %p89_p1 = scmp.lt.s32.totalorder %s1089_s6, 3 }
   0x4   : > { %p90_p2 = pnand %p970_p0, %p89_p1 }
   0x5   : > { %s971_s8 = sshll.u32 (!%p90_p2), %s966_s7, 5  ;;  %vm380_vm0 = vcmask (!%p90_p2), 1044480   ;;  %vm381_vm1 = vsmask.f32 (!%p90_p2), 4352  ;;  %s1334_s13 = sshll.u32 (!%p90_p2), %s966_s7, 2  ;;  %vm863_vm3 = vcmask (!%p90_p2), 1041409  }
   0x6   : > { %93 = sbr.rel (%p90_p2) target bundleno = 133 (0x85), region = 24  ;;  %p111_p3 = scmp.lt.s32.totalorder (!%p90_p2), %s971_s8, 63  ;;  %vm1119_vm2 = vmand (!%p90_p2), %vm380_vm0, %vm381_vm1  ;;  %vm865_vm4 = vcmask (!%p90_p2), 1042434   ;;  %vm867_vm5 = vcmask (!%p90_p2), 1043459   ;;  %vm869_vm6 = vcmask (!%p90_p2), 1044484   ;;  %vm871_vm7 = vcmask (!%p90_p2), 1045509  }
   0x7   : > { %p118_p4 = scmp.lt.s32.totalorder (!%p90_p2), %s1334_s13, 7  ;;  %vm873_vm8 = vcmask (!%p90_p2), 1046534   ;;  %vm875_vm9 = vcmask (!%p90_p2), 1047559  }
   0xd   : > { %s1378_s8 = smov (!%p111_p3, %s971_s8), 63  ;;  %s1380_s13 = smov (!%p118_p4, %s1334_s13), 7 }
   0xe   : > { %s1042_s9 = sshll.u32 %s1378_s8, 3  ;;  %s975_s14 = sshll.u32 %s1380_s13, 2 }
   0xf   : > { %s1114_s12 = scalar_lea.vmem %s1373_s0, %s1042_s9  ;;  %s121_s17 = scalar_lea.vmem %s1374_s1, %s975_s14 }
  0x10   : > { %v1051_v0 = vld [vmem:[%s1114_s12] sm:$0x1f]   ;;  %v1052_v1 = vld [vmem:[%s1114_s12 + $0x8] sm:$0x1f]   ;;  %v1053_v2 = vld [vmem:[%s1114_s12 + $0x10] sm:$0x1f]  }
  0x11   : > { %v1054_v4 = vld [vmem:[%s1114_s12 + $0x18] sm:$0x1f]   ;;  %v1055_v5 = vld [vmem:[%s1114_s12 + $0x20] sm:$0x1f]   ;;  %v1056_v6 = vld [vmem:[%s1114_s12 + $0x28] sm:$0x1f]  }
  0x12   : > { %v383_v7 = vsel %vm1119_vm2, %v1051_v0, 4286644096  ;;  %v394_v8 = vsel %vm1119_vm2, %v1052_v1, 4286644096  ;;  %v405_v9 = vsel %vm1119_vm2, %v1053_v2, 4286644096 }
  0x13   : > { %v384_v10 = vunpack.i.l.bf16 %v383_v7  ;;  %v385_v11 = vunpack.i.h.bf16 %v383_v7  ;;  %v395_v12 = vunpack.i.l.bf16 %v394_v8  ;;  %v396_v13 = vunpack.i.h.bf16 %v394_v8  ;;  %v1057_v14 = vld [vmem:[%s1114_s12 + $0x30] sm:$0x1f]   ;;  %v1058_v27 = vld [vmem:[%s1114_s12 + $0x38] sm:$0x1f]  }
  0x14   : > { %v406_v15 = vunpack.i.l.bf16 %v405_v9  ;;  %v407_v16 = vunpack.i.h.bf16 %v405_v9  ;;  %v416_v17 = vsel %vm1119_vm2, %v1054_v4, 4286644096  ;;  %v427_v18 = vsel %vm1119_vm2, %v1055_v5, 4286644096  ;;  %v1059_v5 = vld [vmem:[%s1114_s12 + $0x40] sm:$0x1f]  }
  0x15   : > { %v386_v19 = vmax.f32 %v384_v10, %v385_v11  ;;  %v397_v20 = vmax.f32 %v395_v12, %v396_v13  ;;  %v417_v21 = vunpack.i.l.bf16 %v416_v17  ;;  %v418_v22 = vunpack.i.h.bf16 %v416_v17 }
  0x16   : > { %v408_v23 = vmax.f32 %v406_v15, %v407_v16  ;;  %v428_v24 = vunpack.i.l.bf16 %v427_v18  ;;  %v429_v25 = vunpack.i.h.bf16 %v427_v18  ;;  %v438_v26 = vsel %vm1119_vm2, %v1056_v6, 4286644096  ;;  %v1060_v6 = vld [vmem:[%s1114_s12 + $0x48] sm:$0x1f]  }
  0x17   : > { %v387_v28 = vrot.slane %v386_v19, 4  ;;  %v398_v29 = vrot.slane %v397_v20, 4  ;;  %v419_v30 = vmax.f32 %v417_v21, %v418_v22  ;;  %v439_v31 = vunpack.i.l.bf16 %v438_v26 }
  0x18   : > { %v409_v32 = vrot.slane %v408_v23, 4  ;;  %v430_v33 = vmax.f32 %v428_v24, %v429_v25  ;;  %v440_v34 = vunpack.i.h.bf16 %v438_v26  ;;  %v449_v35 = vsel %vm1119_vm2, %v1057_v14, 4286644096 }
  0x19   : > { %v388_v36 = vmax.f32 %v386_v19, %v387_v28  ;;  %v399_v37 = vmax.f32 %v397_v20, %v398_v29  ;;  %v420_v38 = vrot.slane %v419_v30, 4  ;;  %v450_v39 = vunpack.i.l.bf16 %v449_v35  ;;  %v1061_v19 = vld [vmem:[%s1114_s12 + $0x50] sm:$0x1f]   ;;  %v1062_v20 = vld [vmem:[%s1114_s12 + $0x58] sm:$0x1f]  }
  0x1a   : > { %v410_v40 = vmax.f32 %v408_v23, %v409_v32  ;;  %v431_v41 = vrot.slane %v430_v33, 4  ;;  %v441_v42 = vmax.f32 %v439_v31, %v440_v34  ;;  %v451_v43 = vunpack.i.h.bf16 %v449_v35 }
  0x1b   : > { %v389_v44 = vrot.slane %v388_v36, 2  ;;  %v400_v45 = vrot.slane %v399_v37, 2  ;;  %v421_v46 = vmax.f32 %v419_v30, %v420_v38  ;;  %v460_v47 = vsel %vm1119_vm2, %v1058_v27, 4286644096 }
  0x1c   : > { %v411_v48 = vrot.slane %v410_v40, 2  ;;  %v432_v49 = vmax.f32 %v430_v33, %v431_v41  ;;  %v442_v50 = vrot.slane %v441_v42, 4  ;;  %v452_v51 = vmax.f32 %v450_v39, %v451_v43  ;;  %v1063_v33 = vld [vmem:[%s1114_s12 + $0x60] sm:$0x1f]  }
  0x1d   : > { %v390_v52 = vmax.f32 %v388_v36, %v389_v44  ;;  %v401_v53 = vmax.f32 %v399_v37, %v400_v45  ;;  %v422_v54 = vrot.slane %v421_v46, 2  ;;  %v461_v55 = vunpack.i.l.bf16 %v460_v47 }
  0x1e   : > { %v412_v56 = vmax.f32 %v410_v40, %v411_v48  ;;  %v433_v57 = vrot.slane %v432_v49, 2  ;;  %v443_v58 = vmax.f32 %v441_v42, %v442_v50  ;;  %v453_v59 = vrot.slane %v452_v51, 4  ;;  %v1064_v42 = vld [vmem:[%s1114_s12 + $0x68] sm:$0x1f]  }
  0x1f   : > { %v391_v60 = vrot.slane %v390_v52, 1  ;;  %v402_v61 = vrot.slane %v401_v53, 1  ;;  %v423_v62 = vmax.f32 %v421_v46, %v422_v54  ;;  %v462_v63 = vunpack.i.h.bf16 %v460_v47 }
  0x20   : > { %v413_v0 = vrot.slane %v412_v56, 1  ;;  %v434_v1 = vmax.f32 %v432_v49, %v433_v57  ;;  %v444_v2 = vrot.slane %v443_v58, 2  ;;  %v454_v4 = vmax.f32 %v452_v51, %v453_v59 }
  0x21   : > { %v392_v7 = vmax.f32 %v390_v52, %v391_v60  ;;  %v403_v8 = vmax.f32 %v401_v53, %v402_v61  ;;  %v424_v9 = vrot.slane %v423_v62, 1  ;;  %v463_v10 = vmax.f32 %v461_v55, %v462_v63  ;;  %v1065_v55 = vld [vmem:[%s1114_s12 + $0x70] sm:$0x1f]  }
  0x22   : > { %v414_v11 = vmax.f32 %v412_v56, %v413_v0  ;;  %v435_v12 = vrot.slane %v434_v1, 1  ;;  %v445_v13 = vmax.f32 %v443_v58, %v444_v2  ;;  %v455_v14 = vrot.slane %v454_v4, 2 }
  0x23   : > { %v1146_v15 = vpack.i.bf16 %v392_v7, %v392_v7  ;;  %v1148_v16 = vpack.i.bf16 %v403_v8, %v403_v8  ;;  %v425_v17 = vmax.f32 %v423_v62, %v424_v9  ;;  %v464_v18 = vrot.slane %v463_v10, 4 }
  0x24   : > { %v1152_v21 = vpack.i.bf16 %v414_v11, %v414_v11  ;;  %v436_v22 = vmax.f32 %v434_v1, %v435_v12  ;;  %v446_v23 = vrot.slane %v445_v13, 1  ;;  %v456_v24 = vmax.f32 %v454_v4, %v455_v14 }
  0x25   : > { %v1154_v25 = vpack.i.bf16 %v425_v17, %v425_v17  ;;  %v465_v26 = vmax.f32 %v463_v10, %v464_v18  ;;  %v471_v27 = vsel %vm1119_vm2, %v1059_v5, 4286644096  ;;  %v482_v28 = vsel %vm1119_vm2, %v1060_v6, 4286644096  ;;  %v1066_v5 = vld [vmem:[%s1114_s12 + $0x78] sm:$0x1f]  }
  0x26   : > { %v1160_v29 = vpack.i.bf16 %v436_v22, %v436_v22  ;;  %v447_v30 = vmax.f32 %v445_v13, %v446_v23  ;;  %v457_v31 = vrot.slane %v456_v24, 1  ;;  %v472_v32 = vunpack.i.l.bf16 %v471_v27 }
  0x27   : > { %v466_v34 = vrot.slane %v465_v26, 2  ;;  %v473_v35 = vunpack.i.h.bf16 %v471_v27  ;;  %v483_v36 = vunpack.i.l.bf16 %v482_v28  ;;  %v484_v37 = vunpack.i.h.bf16 %v482_v28 }
  0x28   : > { %v1163_v38 = vpack.i.bf16 %v447_v30, %v447_v30  ;;  %v458_v39 = vmax.f32 %v456_v24, %v457_v31  ;;  %v493_v40 = vsel %vm1119_vm2, %v1061_v19, 4286644096  ;;  %v504_v41 = vsel %vm1119_vm2, %v1062_v20, 4286644096 }
  0x29   : > { %v467_v43 = vmax.f32 %v465_v26, %v466_v34  ;;  %v474_v44 = vmax.f32 %v472_v32, %v473_v35  ;;  %v485_v45 = vmax.f32 %v483_v36, %v484_v37  ;;  %v494_v46 = vunpack.i.l.bf16 %v493_v40  ;;  %v1067_v35 = vld [vmem:[%s1114_s12 + $0x80] sm:$0x1f]   ;;  %v1068_v36 = vld [vmem:[%s1114_s12 + $0x88] sm:$0x1f]  }
  0x2a   : > { %v1170_v47 = vpack.i.bf16 %v458_v39, %v458_v39  ;;  %v495_v48 = vunpack.i.h.bf16 %v493_v40  ;;  %v505_v49 = vunpack.i.l.bf16 %v504_v41  ;;  %v506_v50 = vunpack.i.h.bf16 %v504_v41 }
  0x2b   : > { %v468_v51 = vrot.slane %v467_v43, 1  ;;  %v475_v52 = vrot.slane %v474_v44, 4  ;;  %v486_v53 = vrot.slane %v485_v45, 4  ;;  %v515_v54 = vsel %vm1119_vm2, %v1063_v33, 4286644096 }
  0x2c   : > { %v496_v56 = vmax.f32 %v494_v46, %v495_v48  ;;  %v507_v57 = vmax.f32 %v505_v49, %v506_v50  ;;  %v516_v58 = vunpack.i.l.bf16 %v515_v54  ;;  %v517_v59 = vunpack.i.h.bf16 %v515_v54 }
  0x2d   : > { %v469_v60 = vmax.f32 %v467_v43, %v468_v51  ;;  %v476_v61 = vmax.f32 %v474_v44, %v475_v52  ;;  %v487_v62 = vmax.f32 %v485_v45, %v486_v53  ;;  %v526_v63 = vsel %vm1119_vm2, %v1064_v42, 4286644096 }
  0x2e   : > { %v497_v0 = vrot.slane %v496_v56, 4  ;;  %v508_v1 = vrot.slane %v507_v57, 4  ;;  %v518_v2 = vmax.f32 %v516_v58, %v517_v59  ;;  %v527_v4 = vunpack.i.l.bf16 %v526_v63 }
  0x2f   : > { %v1178_v6 = vpack.i.bf16 %v469_v60, %v469_v60  ;;  %v477_v7 = vrot.slane %v476_v61, 2  ;;  %v488_v8 = vrot.slane %v487_v62, 2  ;;  %v528_v9 = vunpack.i.h.bf16 %v526_v63 }
  0x30   : > { %v498_v10 = vmax.f32 %v496_v56, %v497_v0  ;;  %v509_v11 = vmax.f32 %v507_v57, %v508_v1  ;;  %v519_v12 = vrot.slane %v518_v2, 4  ;;  %v537_v13 = vsel %vm1119_vm2, %v1065_v55, 4286644096  ;;  %v1069_v55 = vld [vmem:[%s1114_s12 + $0x90] sm:$0x1f]  }
  0x31   : > { %v478_v14 = vmax.f32 %v476_v61, %v477_v7  ;;  %v489_v17 = vmax.f32 %v487_v62, %v488_v8  ;;  %v529_v18 = vmax.f32 %v527_v4, %v528_v9  ;;  %v538_v19 = vunpack.i.l.bf16 %v537_v13  ;;  %v1070_v0 = vld [vmem:[%s1114_s12 + $0x98] sm:$0x1f]  }
  0x32   : > { %v499_v20 = vrot.slane %v498_v10, 2  ;;  %v510_v22 = vrot.slane %v509_v11, 2  ;;  %v520_v23 = vmax.f32 %v518_v2, %v519_v12  ;;  %v539_v24 = vunpack.i.h.bf16 %v537_v13 }
  0x33   : > { %v479_v26 = vrot.slane %v478_v14, 1  ;;  %v490_v27 = vrot.slane %v489_v17, 1  ;;  %v530_v28 = vrot.slane %v529_v18, 4  ;;  %v548_v30 = vsel %vm1119_vm2, %v1066_v5, 4286644096 }
  0x34   : > { %v500_v31 = vmax.f32 %v498_v10, %v499_v20  ;;  %v511_v32 = vmax.f32 %v509_v11, %v510_v22  ;;  %v521_v33 = vrot.slane %v520_v23, 2  ;;  %v540_v34 = vmax.f32 %v538_v19, %v539_v24  ;;  %v1071_v11 = vld [vmem:[%s1114_s12 + $0xa0] sm:$0x1f]  }
  0x35   : > { %v480_v37 = vmax.f32 %v478_v14, %v479_v26  ;;  %v491_v39 = vmax.f32 %v489_v17, %v490_v27  ;;  %v531_v40 = vmax.f32 %v529_v18, %v530_v28  ;;  %v549_v41 = vunpack.i.l.bf16 %v548_v30  ;;  %v1072_v28 = vld [vmem:[%s1114_s12 + $0xa8] sm:$0x1f]  }
  0x36   : > { %v501_v42 = vrot.slane %v500_v31, 1  ;;  %v512_v43 = vrot.slane %v511_v32, 1  ;;  %v522_v44 = vmax.f32 %v520_v23, %v521_v33  ;;  %v541_v45 = vrot.slane %v540_v34, 4 }
  0x37   : > { %v1186_v46 = vpack.i.bf16 %v480_v37, %v480_v37  ;;  %v1188_v48 = vpack.i.bf16 %v491_v39, %v491_v39  ;;  %v532_v49 = vrot.slane %v531_v40, 2  ;;  %v550_v50 = vunpack.i.h.bf16 %v548_v30  ;;  %v1073_v30 = vld [vmem:[%s1114_s12 + $0xb0] sm:$0x1f]  }
  0x38   : > { %v502_v51 = vmax.f32 %v500_v31, %v501_v42  ;;  %v513_v52 = vmax.f32 %v511_v32, %v512_v43  ;;  %v523_v53 = vrot.slane %v522_v44, 1  ;;  %v542_v54 = vmax.f32 %v540_v34, %v541_v45 }
  0x39   : > { %v533_v56 = vmax.f32 %v531_v40, %v532_v49  ;;  %v551_v57 = vmax.f32 %v549_v41, %v550_v50  ;;  %v559_v58 = vsel %vm1119_vm2, %v1067_v35, 4286644096  ;;  %v570_v59 = vsel %vm1119_vm2, %v1068_v36, 4286644096 }
  0x3a   : > { %v1195_v60 = vpack.i.bf16 %v502_v51, %v502_v51  ;;  %v1197_v61 = vpack.i.bf16 %v513_v52, %v513_v52  ;;  %v524_v62 = vmax.f32 %v522_v44, %v523_v53  ;;  %v543_v63 = vrot.slane %v542_v54, 2 }
  0x3b   : > { %v534_v1 = vrot.slane %v533_v56, 1  ;;  %v552_v2 = vrot.slane %v551_v57, 4  ;;  %v560_v4 = vunpack.i.l.bf16 %v559_v58  ;;  %v561_v5 = vunpack.i.h.bf16 %v559_v58 }
  0x3c   : > { %v1200_v7 = vpack.i.bf16 %v524_v62, %v524_v62  ;;  %v544_v8 = vmax.f32 %v542_v54, %v543_v63  ;;  %v571_v9 = vunpack.i.l.bf16 %v570_v59  ;;  %v572_v10 = vunpack.i.h.bf16 %v570_v59  ;;  %v1074_v59 = vld [vmem:[%s1114_s12 + $0xb8] sm:$0x1f]  }
  0x3d   : > { %v535_v12 = vmax.f32 %v533_v56, %v534_v1  ;;  %v553_v13 = vmax.f32 %v551_v57, %v552_v2  ;;  %v562_v14 = vmax.f32 %v560_v4, %v561_v5  ;;  %v581_v17 = vsel %vm1119_vm2, %v1069_v55, 4286644096 }
  0x3e   : > { %v545_v18 = vrot.slane %v544_v8, 1  ;;  %v573_v19 = vmax.f32 %v571_v9, %v572_v10  ;;  %v582_v20 = vunpack.i.l.bf16 %v581_v17  ;;  %v583_v22 = vunpack.i.h.bf16 %v581_v17 }
  0x3f   : > { %v1205_v23 = vpack.i.bf16 %v535_v12, %v535_v12  ;;  %v554_v24 = vrot.slane %v553_v13, 2  ;;  %v563_v26 = vrot.slane %v562_v14, 4  ;;  %v592_v27 = vsel %vm1119_vm2, %v1070_v0, 4286644096 }
  0x40   : > { %v546_v31 = vmax.f32 %v544_v8, %v545_v18  ;;  %v574_v32 = vrot.slane %v573_v19, 4  ;;  %v584_v33 = vmax.f32 %v582_v20, %v583_v22  ;;  %v593_v34 = vunpack.i.l.bf16 %v592_v27  ;;  %v1076_v20 = vld [vmem:[%s1114_s12 + $0xc8] sm:$0x1f]  }
  0x41   : > { %v555_v35 = vmax.f32 %v553_v13, %v554_v24  ;;  %v564_v36 = vmax.f32 %v562_v14, %v563_v26  ;;  %v594_v37 = vunpack.i.h.bf16 %v592_v27  ;;  %v603_v39 = vsel %vm1119_vm2, %v1071_v11, 4286644096  ;;  %v1075_v13 = vld [vmem:[%s1114_s12 + $0xc0] sm:$0x1f]  }
  0x42   : > { %v1213_v40 = vpack.i.bf16 %v546_v31, %v546_v31  ;;  %v575_v41 = vmax.f32 %v573_v19, %v574_v32  ;;  %v585_v42 = vrot.slane %v584_v33, 4  ;;  %v604_v43 = vunpack.i.l.bf16 %v603_v39 }
  0x43   : > { %v556_v44 = vrot.slane %v555_v35, 1  ;;  %v565_v45 = vrot.slane %v564_v36, 2  ;;  %v595_v49 = vmax.f32 %v593_v34, %v594_v37  ;;  %v605_v50 = vunpack.i.h.bf16 %v603_v39  ;;  %v1077_v37 = vld [vmem:[%s1114_s12 + $0xd0] sm:$0x1f]  }
  0x44   : > { %v576_v51 = vrot.slane %v575_v41, 2  ;;  %v586_v52 = vmax.f32 %v584_v33, %v585_v42  ;;  %v614_v53 = vsel %vm1119_vm2, %v1072_v28, 4286644096  ;;  %v625_v54 = vsel %vm1119_vm2, %v1073_v30, 4286644096 }
  0x45   : > { %v557_v55 = vmax.f32 %v555_v35, %v556_v44  ;;  %v566_v56 = vmax.f32 %v564_v36, %v565_v45  ;;  %v596_v57 = vrot.slane %v595_v49, 4  ;;  %v606_v58 = vmax.f32 %v604_v43, %v605_v50 }
  0x46   : > { %v577_v62 = vmax.f32 %v575_v41, %v576_v51  ;;  %v587_v63 = vrot.slane %v586_v52, 2  ;;  %v615_v0 = vunpack.i.l.bf16 %v614_v53  ;;  %v616_v1 = vunpack.i.h.bf16 %v614_v53 }
  0x47   : > { %v1220_v2 = vpack.i.bf16 %v557_v55, %v557_v55  ;;  %v567_v4 = vrot.slane %v566_v56, 1  ;;  %v597_v5 = vmax.f32 %v595_v49, %v596_v57  ;;  %v607_v8 = vrot.slane %v606_v58, 4 }
  0x48   : > { %v578_v9 = vrot.slane %v577_v62, 1  ;;  %v588_v10 = vmax.f32 %v586_v52, %v587_v63  ;;  %v617_v11 = vmax.f32 %v615_v0, %v616_v1  ;;  %v626_v12 = vunpack.i.l.bf16 %v625_v54 }
  0x49   : > { %v568_v14 = vmax.f32 %v566_v56, %v567_v4  ;;  %v598_v17 = vrot.slane %v597_v5, 2  ;;  %v608_v18 = vmax.f32 %v606_v58, %v607_v8  ;;  %v627_v19 = vunpack.i.h.bf16 %v625_v54 }
  0x4a   : > { %v579_v22 = vmax.f32 %v577_v62, %v578_v9  ;;  %v589_v24 = vrot.slane %v588_v10, 1  ;;  %v618_v26 = vrot.slane %v617_v11, 4  ;;  %v636_v27 = vsel %vm1119_vm2, %v1074_v59, 4286644096  ;;  %v1078_v59 = vld [vmem:[%s1114_s12 + $0xd8] sm:$0x1f]  }
  0x4b   : > { %v1226_v28 = vpack.i.bf16 %v568_v14, %v568_v14  ;;  %v599_v30 = vmax.f32 %v597_v5, %v598_v17  ;;  %v609_v31 = vrot.slane %v608_v18, 2  ;;  %v628_v32 = vmax.f32 %v626_v12, %v627_v19  ;;  %v1079_v62 = vld [vmem:[%s1114_s12 + $0xe0] sm:$0x1f]  }
  0x4c   : > { %v1228_v33 = vpack.i.bf16 %v579_v22, %v579_v22  ;;  %v590_v34 = vmax.f32 %v588_v10, %v589_v24  ;;  %v619_v35 = vmax.f32 %v617_v11, %v618_v26  ;;  %v637_v36 = vunpack.i.l.bf16 %v636_v27 }
  0x4d   : > { %v600_v39 = vrot.slane %v599_v30, 1  ;;  %v610_v41 = vmax.f32 %v608_v18, %v609_v31  ;;  %v629_v42 = vrot.slane %v628_v32, 4  ;;  %v638_v43 = vunpack.i.h.bf16 %v636_v27 }
  0x4e   : > { %v1231_v44 = vpack.i.bf16 %v590_v34, %v590_v34  ;;  %v620_v45 = vrot.slane %v619_v35, 2  ;;  %v647_v49 = vsel %vm1119_vm2, %v1075_v13, 4286644096  ;;  %v658_v50 = vsel %vm1119_vm2, %v1076_v20, 4286644096 }
  0x4f   : > { %v601_v51 = vmax.f32 %v599_v30, %v600_v39  ;;  %v611_v52 = vrot.slane %v610_v41, 1  ;;  %v630_v53 = vmax.f32 %v628_v32, %v629_v42  ;;  %v639_v54 = vmax.f32 %v637_v36, %v638_v43  ;;  %v1080_v30 = vld [vmem:[%s1114_s12 + $0xe8] sm:$0x1f]  }
  0x50   : > { %v621_v55 = vmax.f32 %v619_v35, %v620_v45  ;;  %v648_v56 = vunpack.i.l.bf16 %v647_v49  ;;  %v649_v57 = vunpack.i.h.bf16 %v647_v49  ;;  %v659_v58 = vunpack.i.l.bf16 %v658_v50 }
  0x51   : > { %v1239_v63 = vpack.i.bf16 %v601_v51, %v601_v51  ;;  %v612_v0 = vmax.f32 %v610_v41, %v611_v52  ;;  %v631_v1 = vrot.slane %v630_v53, 2  ;;  %v640_v4 = vrot.slane %v639_v54, 4 }
  0x52   : > { %v622_v5 = vrot.slane %v621_v55, 1  ;;  %v650_v8 = vmax.f32 %v648_v56, %v649_v57  ;;  %v660_v9 = vunpack.i.h.bf16 %v658_v50  ;;  %v669_v10 = vsel %vm1119_vm2, %v1077_v37, 4286644096  ;;  %v1081_v50 = vld [vmem:[%s1114_s12 + $0xf0] sm:$0x1f]  }
  0x53   : > { %v1243_v11 = vpack.i.bf16 %v612_v0, %v612_v0  ;;  %v632_v12 = vmax.f32 %v630_v53, %v631_v1  ;;  %v641_v13 = vmax.f32 %v639_v54, %v640_v4  ;;  %v670_v14 = vunpack.i.l.bf16 %v669_v10 }
  0x54   : > { %v623_v17 = vmax.f32 %v621_v55, %v622_v5  ;;  %v651_v18 = vrot.slane %v650_v8, 4  ;;  %v661_v19 = vmax.f32 %v659_v58, %v660_v9  ;;  %v671_v20 = vunpack.i.h.bf16 %v669_v10  ;;  %v1082_v10 = vld [vmem:[%s1114_s12 + $0xf8] sm:$0x1f]  }
  0x55   : > { %v633_v22 = vrot.slane %v632_v12, 1  ;;  %v642_v24 = vrot.slane %v641_v13, 2  ;;  %v680_v26 = vsel %vm1119_vm2, %v1078_v59, 4286644096  ;;  %v691_v27 = vsel %vm1119_vm2, %v1079_v62, 4286644096 }
  0x56   : > { %v1250_v31 = vpack.i.bf16 %v623_v17, %v623_v17  ;;  %v652_v32 = vmax.f32 %v650_v8, %v651_v18  ;;  %v662_v34 = vrot.slane %v661_v19, 4  ;;  %v672_v35 = vmax.f32 %v670_v14, %v671_v20 }
  0x57   : > { %v634_v36 = vmax.f32 %v632_v12, %v633_v22  ;;  %v643_v37 = vmax.f32 %v641_v13, %v642_v24  ;;  %v681_v39 = vunpack.i.l.bf16 %v680_v26  ;;  %v682_v41 = vunpack.i.h.bf16 %v680_v26 }
  0x58   : > { %v653_v42 = vrot.slane %v652_v32, 2  ;;  %v663_v43 = vmax.f32 %v661_v19, %v662_v34  ;;  %v673_v45 = vrot.slane %v672_v35, 4  ;;  %v692_v49 = vunpack.i.l.bf16 %v691_v27 }
  0x59   : > { %v1253_v51 = vpack.i.bf16 %v634_v36, %v634_v36  ;;  %v644_v52 = vrot.slane %v643_v37, 1  ;;  %v683_v53 = vmax.f32 %v681_v39, %v682_v41  ;;  %v693_v54 = vunpack.i.h.bf16 %v691_v27 }
  0x5a   : > { %v654_v55 = vmax.f32 %v652_v32, %v653_v42  ;;  %v664_v56 = vrot.slane %v663_v43, 2  ;;  %v674_v57 = vmax.f32 %v672_v35, %v673_v45  ;;  %v702_v58 = vsel %vm1119_vm2, %v1080_v30, 4286644096 }
  0x5b   : > { %v645_v59 = vmax.f32 %v643_v37, %v644_v52  ;;  %v684_v62 = vrot.slane %v683_v53, 4  ;;  %v694_v0 = vmax.f32 %v692_v49, %v693_v54  ;;  %v703_v1 = vunpack.i.l.bf16 %v702_v58 }
  0x5c   : > { %v655_v4 = vrot.slane %v654_v55, 1  ;;  %v665_v5 = vmax.f32 %v663_v43, %v664_v56  ;;  %v675_v8 = vrot.slane %v674_v57, 2  ;;  %v704_v9 = vunpack.i.h.bf16 %v702_v58 }
  0x5d   : > { %v1258_v12 = vpack.i.bf16 %v645_v59, %v645_v59  ;;  %v685_v13 = vmax.f32 %v683_v53, %v684_v62  ;;  %v695_v14 = vrot.slane %v694_v0, 4  ;;  %v713_v17 = vsel %vm1119_vm2, %v1081_v50, 4286644096 }
  0x5e   : > { %v656_v18 = vmax.f32 %v654_v55, %v655_v4  ;;  %v666_v19 = vrot.slane %v665_v5, 1  ;;  %v676_v20 = vmax.f32 %v674_v57, %v675_v8  ;;  %v705_v22 = vmax.f32 %v703_v1, %v704_v9 }
  0x5f   : > { %v686_v24 = vrot.slane %v685_v13, 2  ;;  %v696_v26 = vmax.f32 %v694_v0, %v695_v14  ;;  %v714_v27 = vunpack.i.l.bf16 %v713_v17  ;;  %v715_v30 = vunpack.i.h.bf16 %v713_v17 }
  0x60   : > { %v1262_v32 = vpack.i.bf16 %v656_v18, %v656_v18  ;;  %v667_v34 = vmax.f32 %v665_v5, %v666_v19  ;;  %v677_v35 = vrot.slane %v676_v20, 1  ;;  %v706_v36 = vrot.slane %v705_v22, 4 }
  0x61   : > { %v687_v37 = vmax.f32 %v685_v13, %v686_v24  ;;  %v697_v39 = vrot.slane %v696_v26, 2  ;;  %v716_v41 = vmax.f32 %v714_v27, %v715_v30  ;;  %v724_v42 = vsel %vm1119_vm2, %v1082_v10, 4286644096 }
  0x62   : > { %v1266_v43 = vpack.i.bf16 %v667_v34, %v667_v34  ;;  %v678_v45 = vmax.f32 %v676_v20, %v677_v35  ;;  %v707_v49 = vmax.f32 %v705_v22, %v706_v36  ;;  %v725_v50 = vunpack.i.l.bf16 %v724_v42 }
  0x63   : > { %v688_v52 = vrot.slane %v687_v37, 1  ;;  %v698_v53 = vmax.f32 %v696_v26, %v697_v39  ;;  %v717_v54 = vrot.slane %v716_v41, 4  ;;  %v726_v55 = vunpack.i.h.bf16 %v724_v42 }
  0x64   : > { %v1268_v56 = vpack.i.bf16 %v678_v45, %v678_v45  ;;  %v708_v57 = vrot.slane %v707_v49, 2  ;;  %v1008_v58 = vcombine.low %v1146_v15, %v1146_v15  ;;  %v1009_v59 = vcombine.low %v1148_v16, %v1148_v16 }
  0x65   : > { %v689_v3 = vmax.f32 %v687_v37, %v688_v52  ;;  %v699_v62 = vrot.slane %v698_v53, 1  ;;  %v718_v0 = vmax.f32 %v716_v41, %v717_v54  ;;  %v727_v1 = vmax.f32 %v725_v50, %v726_v55 }
  0x66   : > { %v709_v4 = vmax.f32 %v707_v49, %v708_v57  ;;  %v1010_v5 = vcombine.low %v1152_v21, %v1152_v21  ;;  %v1011_v8 = vcombine.low %v1154_v25, %v1154_v25  ;;  %v1012_v9 = vcombine.low %v1160_v29, %v1160_v29 }
  0x67   : > { %v1280_v10 = vpack.i.bf16 %v689_v3, %v689_v3  ;;  %v700_v15 = vmax.f32 %v698_v53, %v699_v62  ;;  %v719_v13 = vrot.slane %v718_v0, 2  ;;  %v728_v14 = vrot.slane %v727_v1, 4 }
  0x68   : > { %v710_v16 = vrot.slane %v709_v4, 1  ;;  %v1013_v17 = vcombine.low %v1163_v38, %v1163_v38  ;;  %v1014_v18 = vcombine.low %v1170_v47, %v1170_v47  ;;  %v1015_v21 = vcombine.low %v1178_v6, %v1178_v6 }
  0x69   : > { %v1288_v19 = vpack.i.bf16 %v700_v15, %v700_v15  ;;  %v720_v25 = vmax.f32 %v718_v0, %v719_v13  ;;  %v729_v20 = vmax.f32 %v727_v1, %v728_v14  ;;  %v1016_v29 = vcombine.low %v1186_v46, %v1186_v46 }
  0x6a   : > { %v711_v22 = vmax.f32 %v709_v4, %v710_v16  ;;  %v1017_v24 = vcombine.low %v1188_v48, %v1188_v48  ;;  %v1018_v38 = vcombine.low %v1195_v60, %v1195_v60  ;;  %v1019_v47 = vcombine.low %v1197_v61, %v1197_v61 }
  0x6b   : > { %v721_v26 = vrot.slane %v720_v25, 1  ;;  %v730_v27 = vrot.slane %v729_v20, 2  ;;  %v1020_v6 = vcombine.low %v1200_v7, %v1200_v7  ;;  %v1021_v30 = vcombine.low %v1205_v23, %v1205_v23 }
  0x6c   : > { %v712_v34 = vpack.i.bf16 %v711_v22, %v711_v22  ;;  %v1022_v46 = vcombine.low %v1213_v40, %v1213_v40  ;;  %v1023_v48 = vcombine.low %v1220_v2, %v1220_v2  ;;  %v1024_v60 = vcombine.low %v1226_v28, %v1226_v28 }
  0x6d   : > { %v722_v35 = vmax.f32 %v720_v25, %v721_v26  ;;  %v731_v61 = vmax.f32 %v729_v20, %v730_v27  ;;  %v1025_v36 = vcombine.low %v1228_v33, %v1228_v33  ;;  %v1026_v7 = vcombine.low %v1231_v44, %v1231_v44 }
  0x6e   : > { %v1027_v23 = vcombine.low %v1239_v63, %v1239_v63  ;;  %v1028_v40 = vcombine.low %v1243_v11, %v1243_v11  ;;  %v1029_v2 = vcombine.low %v1250_v31, %v1250_v31  ;;  %v1030_v28 = vcombine.low %v1253_v51, %v1253_v51 }
  0x6f   : > { %v723_v37 = vpack.i.bf16 %v722_v35, %v722_v35  ;;  %v732_v39 = vrot.slane %v731_v61, 1  ;;  %v1031_v33 = vcombine.low %v1258_v12, %v1258_v12  ;;  %v1032_v44 = vcombine.low %v1262_v32, %v1262_v32 }
  0x70   : > { %v1033_v63 = vcombine.low %v1266_v43, %v1266_v43  ;;  %v1034_v11 = vcombine.low %v1268_v56, %v1268_v56  ;;  %v1035_v31 = vcombine.low %v1280_v10, %v1280_v10  ;;  %v1036_v51 = vcombine.low %v1288_v19, %v1288_v19 }
  0x71   : > { %v733_v41 = vmax.f32 %v731_v61, %v732_v39  ;;  %v1037_v42 = vcombine.low %v712_v34, %v712_v34  ;;  %v1038_v45 = vcombine.low %v723_v37, %v723_v37  ;;  %v831_v49 = vunpack.c.l.b16 %v1008_v58 }
  0x72   : > { %v832_v12 = vunpack.c.l.b16 %v1009_v59  ;;  %v833_v50 = vunpack.c.l.b16 %v1010_v5  ;;  %v834_v52 = vunpack.c.l.b16 %v1011_v8  ;;  %v835_v32 = vunpack.c.l.b16 %v1012_v9 }
  0x73   : > { %v734_v43 = vpack.i.bf16 %v733_v41, %v733_v41  ;;  %v836_v53 = vunpack.c.l.b16 %v1013_v17  ;;  %v837_v54 = vunpack.c.l.b16 %v1014_v18  ;;  %v838_v55 = vunpack.c.l.b16 %v1015_v21 }
  0x74   : > { %v839_v56 = vunpack.c.l.b16 %v1016_v29  ;;  %v840_v57 = vunpack.c.l.b16 %v1017_v24  ;;  %v841_v3 = vunpack.c.l.b16 %v1018_v38  ;;  %v842_v62 = vunpack.c.l.b16 %v1019_v47 }
  0x75   : > { %v1039_v0 = vcombine.low %v734_v43, %v734_v43  ;;  %v843_v1 = vunpack.c.l.b16 %v1020_v6  ;;  %v844_v4 = vunpack.c.l.b16 %v1021_v30  ;;  %v845_v58 = vunpack.c.l.b16 %v1022_v46 }
  0x76   : > { %v846_v59 = vunpack.c.l.b16 %v1023_v48  ;;  %v847_v5 = vunpack.c.l.b16 %v1024_v60  ;;  %v848_v8 = vunpack.c.l.b16 %v1025_v36  ;;  %v849_v9 = vunpack.c.l.b16 %v1026_v7 }
  0x77   : > { %v850_v10 = vunpack.c.l.b16 %v1027_v23  ;;  %v851_v15 = vunpack.c.l.b16 %v1028_v40  ;;  %v852_v13 = vunpack.c.l.b16 %v1029_v2  ;;  %v853_v14 = vunpack.c.l.b16 %v1030_v28 }
  0x78   : > { %v854_v16 = vunpack.c.l.b16 %v1031_v33  ;;  %v855_v17 = vunpack.c.l.b16 %v1032_v44  ;;  %v856_v18 = vunpack.c.l.b16 %v1033_v63  ;;  %v857_v21 = vunpack.c.l.b16 %v1034_v11 }
  0x79   : > { %v858_v19 = vunpack.c.l.b16 %v1035_v31  ;;  %v859_v25 = vunpack.c.l.b16 %v1036_v51  ;;  %v860_v20 = vunpack.c.l.b16 %v1037_v42  ;;  %v861_v29 = vunpack.c.l.b16 %v1038_v45 }
  0x7a   : > { %v862_v22 = vunpack.c.l.b16 %v1039_v0  ;;  %v864_v24 = vsel %vm863_vm3, %v832_v12, %v831_v49  ;;  %v877_v47 = vsel %vm863_vm3, %v840_v57, %v839_v56  ;;  %v884_v26 = vsel %vm863_vm3, %v848_v8, %v847_v5 }
  0x7b   : > { %v866_v38 = vsel %vm865_vm4, %v833_v50, %v864_v24  ;;  %v878_v6 = vsel %vm865_vm4, %v841_v3, %v877_v47  ;;  %v885_v30 = vsel %vm865_vm4, %v849_v9, %v884_v26  ;;  %v891_v34 = vsel %vm863_vm3, %v856_v18, %v855_v17 }
  0x7c   : > { %v868_v27 = vsel %vm867_vm5, %v834_v52, %v866_v38  ;;  %v879_v48 = vsel %vm867_vm5, %v842_v62, %v878_v6  ;;  %v886_v60 = vsel %vm867_vm5, %v850_v10, %v885_v30  ;;  %v892_v35 = vsel %vm865_vm4, %v857_v21, %v891_v34 }
  0x7d   : > { %v870_v46 = vsel %vm869_vm6, %v835_v32, %v868_v27  ;;  %v880_v36 = vsel %vm869_vm6, %v843_v1, %v879_v48  ;;  %v887_v7 = vsel %vm869_vm6, %v851_v15, %v886_v60  ;;  %v893_v23 = vsel %vm867_vm5, %v858_v19, %v892_v35 }
  0x7e   : > { %v872_v61 = vsel %vm871_vm7, %v836_v53, %v870_v46  ;;  %v881_v2 = vsel %vm871_vm7, %v844_v4, %v880_v36  ;;  %v888_v28 = vsel %vm871_vm7, %v852_v13, %v887_v7  ;;  %v894_v37 = vsel %vm869_vm6, %v859_v25, %v893_v23 }
  0x7f   : > { %v874_v40 = vsel %vm873_vm8, %v837_v54, %v872_v61  ;;  %v882_v33 = vsel %vm873_vm8, %v845_v58, %v881_v2  ;;  %v889_v44 = vsel %vm873_vm8, %v853_v14, %v888_v28  ;;  %v895_v63 = vsel %vm871_vm7, %v860_v20, %v894_v37 }
  0x80   : > { %v876_v39 = vsel %vm875_vm9, %v838_v55, %v874_v40  ;;  %v883_v11 = vsel %vm875_vm9, %v846_v59, %v882_v33  ;;  %v890_v31 = vsel %vm875_vm9, %v854_v16, %v889_v44  ;;  %v896_v51 = vsel %vm873_vm8, %v861_v29, %v895_v63 }
  0x81   : > { %v898_v41 = vpack.c.b16 %v876_v39, %v876_v39  ;;  %v897_v42 = vsel %vm875_vm9, %v862_v22, %v896_v51  ;;  %v899_v45 = vpack.c.b16 %v883_v11, %v883_v11  ;;  %v900_v49 = vpack.c.b16 %v890_v31, %v890_v31 }
  0x82   : > { %v901_v12 = vpack.c.b16 %v897_v42, %v897_v42 }
  0x83   : > { %906 = vst [vmem:[%s121_s17] sm:$0xf] %v898_v41  ;;  %907 = vst [vmem:[%s121_s17 + $0x4] sm:$0xf] %v899_v45 }
  0x84   : > { %908 = vst [vmem:[%s121_s17 + $0x8] sm:$0xf] %v900_v49  ;;  %909 = vst [vmem:[%s121_s17 + $0xc] sm:$0xf] %v901_v12 }
  0x85 PF: > { %s11_s6 = sadd.s32 1, %s1089_s6  }
  0x86   : > { %p8_p5 = scmp.ge.s32.totalorder %s11_s6, 4  }
  0x88   :  { %10 = sbr.rel (!%p8_p5) target bundleno = 1 (0x1), region = 54 }

// kernel: linear_eval_forward.7
= control target key start
LH: loop header
LB: loop body
LE: loop exit
PB: predicated region body
PF: predicated region fallthrough
CT: control target
= control target key end

     0   :  { %s987_s18 = smov 0   ;;  %s989_s19 = smov 0   ;;  %s1124_s0 = inlined_call_operand.vmem [shape: bf16[128,64], index: 0, kind: input, shape index: {}]   ;;  %s1125_s1 = inlined_call_operand.vmem [shape: bf16[64,384], index: 1, kind: input, shape index: {}]   ;;  %s1126_s2 = inlined_call_operand.vmem [shape: f32[1,384], index: 2, kind: input, shape index: {}]   ;;  %s1127_s3 = inlined_call_operand.vmem [shape: f32[1,384], index: 3, kind: input, shape index: {}]   ;;  %s1128_s4 = inlined_call_operand.vmem [shape: f32[1,384], index: 4, kind: input, shape index: {}]   ;;  %s1129_s5 = inlined_call_operand.vmem [shape: f32[128,384], index: 5, kind: output, shape index: {}]  }
   0x1   :  { %s991_s20 = smov 0   ;;  %s993_s21 = smov 0  }
   0x2   :  { %s995_s22 = smov 0   ;;  %s997_s23 = smov 0  }
   0x3   :  { %s999_s24 = smov 0   ;;  %s1001_s25 = smov 0  }
   0x4   :  { %s1003_s26 = smov 0  }
   0x5 LB: > { %s740_s27 = sadd.s32 4294967295, %s955_s26   ;;  %s24_s28 = sadd.s32 1, %s947_s24  ;;  %s955_s26 = sphi %s1003_s26, %s15_s26   ;;  %s951_s25 = sphi %s1001_s25, %s1138_s25   ;;  %s947_s24 = sphi %s999_s24, %s1137_s24   ;;  %s943_s23 = sphi %s997_s23, %s1136_s23   ;;  %s939_s22 = sphi %s995_s22, %s1135_s22   ;;  %s935_s21 = sphi %s993_s21, %s1134_s21   ;;  %s931_s20 = sphi %s991_s20, %s1133_s20   ;;  %s927_s19 = sphi %s989_s19, %s1132_s19   ;;  %s923_s18 = sphi %s987_s18, %s1131_s18  }
   0x6   : > { %p25_p0 = scmp.ge.s32.totalorder %s24_s28, 3  ;;  %s27_s29 = sadd.s32 1, %s951_s25 }
   0x7   : > { %s60_s30 = sadd.s32 1, %s935_s21  ;;  %p67_p1 = scmp.ne.s32.totalorder %s935_s21, %s931_s20 }
   0x8   : > { %s1140_s28 = smov (%p25_p0, %s24_s28), 0  ;;  %s1142_s29 = smov (!%p25_p0, %s27_s29), %s951_s25 }
   0x9   : > { %s57_s6 = ssub.s32 %s947_s24, %s1140_s28  ;;  %p68_p2 = scmp.eq.s32.totalorder %s955_s26, 0 }
   0xa   : > { %p29_p3 = scmp.ge.s32.totalorder %s1142_s29, 2  ;;  %p58_p4 = scmp.eq.s32.totalorder %s57_s6, 0 }
   0xb   : > { %p69_p5 = por %p68_p2, %p67_p1  ;;  %s166_s7 = sadd.s32 1, %s927_s19 }
   0xc   : > { %s1144_s29 = smov (%p29_p3, %s1142_s29), 0  ;;  %p176_p6 = scmp.ne.s32.totalorder %s927_s19, %s923_s18 }
   0xd   : > { %s1048_s8 = scalar_select %p58_p4, %s935_s21, %s60_s30  }
   0xe   : > { %s161_s9 = ssub.s32 %s951_s25, %s1144_s29  ;;  %p177_p7 = scmp.eq.s32.totalorder %s740_s27, 5 }
   0xf   : > { %s163_s10 = sor.u32 %s161_s9, %s57_s6  ;;  %p743_p10 = scmp.ge.s32.totalorder %s955_s26, 6 }
  0x10   : > { %p164_p8 = scmp.eq.s32.totalorder %s163_s10, 0  ;;  %p1054_p9 = por %p177_p7, %p176_p6 }
  0x11   : > { %199 = sbr.rel (%p743_p10) target bundleno = 33 (0x21), region = 16 }
  0x12   : > { %s1059_s12 = scalar_select %p164_p8, %s927_s19, %s166_s7  }
  0x18   : > { %211 = sbr.rel (!%p69_p5) target bundleno = 33 (0x21), region = 24  ;;  %s213_s13 = sand.u32 (%p69_p5), 1, %s935_s21  }
  0x19   : > { %s745_s14 = sshll.u32 (%p69_p5), %s947_s24, 2  ;;  %s744_s15 = sshll.u32 (%p69_p5), %s213_s13, 5 }
  0x1a   : > { %s217_s27 = scalar_lea.vmem (%p69_p5), %s1125_s1, %s745_s14  ;;  %s215_s30 = scalar_lea.vmem (%p69_p5), [#allocation2], %s744_s15 }
  0x1b   : > { %v233_v0 = vld [vmem:[%s217_s27] sm:$0xf] (%p69_p5)  ;;  %v235_v1 = vld [vmem:[%s217_s27 + $0xc] sm:$0xf] (%p69_p5)  ;;  %v237_v2 = vld [vmem:[%s217_s27 + $0x18] sm:$0xf] (%p69_p5) }
  0x1c   : > { %234 = vst [vmem:[%s215_s30] sm:$0xf] (%p69_p5), %v233_v0  ;;  %236 = vst [vmem:[%s215_s30 + $0x4] sm:$0xf] (%p69_p5), %v235_v1  ;;  %v239_v3 = vld [vmem:[%s217_s27 + $0x24] sm:$0xf] (%p69_p5) }
  0x1d   : > { %v241_v4 = vld [vmem:[%s217_s27 + $0x30] sm:$0xf] (%p69_p5)  ;;  %238 = vst [vmem:[%s215_s30 + $0x8] sm:$0xf] (%p69_p5), %v237_v2  ;;  %240 = vst [vmem:[%s215_s30 + $0xc] sm:$0xf] (%p69_p5), %v239_v3 }
  0x1e   : > { %242 = vst [vmem:[%s215_s30 + $0x10] sm:$0xf] (%p69_p5), %v241_v4  ;;  %v243_v5 = vld [vmem:[%s217_s27 + $0x3c] sm:$0xf] (%p69_p5)  ;;  %v245_v6 = vld [vmem:[%s217_s27 + $0x48] sm:$0xf] (%p69_p5) }
  0x1f   : > { %v247_v7 = vld [vmem:[%s217_s27 + $0x54] sm:$0xf]  ;;  %244 = vst [vmem:[%s215_s30 + $0x14] sm:$0xf] %v243_v5  ;;  %246 = vst [vmem:[%s215_s30 + $0x18] sm:$0xf] %v245_v6 }
  0x20   : > { %248 = vst [vmem:[%s215_s30 + $0x1c] sm:$0xf] %v247_v7 }
  0x21 PF: > { %p746_p11 = scmp.ge.s32.totalorder %s955_s26, 1  ;;  %p304_p12 = scmp.lt.s32.totalorder %s955_s26, 7 }
  0x23   : > { %p305_p13 = pnand %p746_p11, %p304_p12 }
  0x24   : > { %s311_s6 = sand.u32 (!%p305_p13), 1, %s931_s20   ;;  %s749_s7 = sshll.u32 (!%p305_p13), %s943_s23, 3  ;;  %vm428_vm0 = vcmask (!%p305_p13), 523264  }
  0x25   : > { %308 = sbr.rel (%p305_p13) target bundleno = 287 (0x11f), region = 77  ;;  %s747_s9 = sshll.u32 (!%p305_p13), %s311_s6, 5 }
  0x26   : > { %p352_p0 = scmp.lt.s32.totalorder (!%p305_p13), %s749_s7, 15  ;;  %s313_s10 = scalar_lea.vmem (!%p305_p13), [#allocation2], %s747_s9 }
  0x27   : > { %v877_v8 = vld [vmem:[%s313_s10] sm:$0xff] (!%p305_p13)   ;;  %v878_v9 = vld [vmem:[%s313_s10 + $0x8] sm:$0xff] (!%p305_p13)   ;;  %v879_v10 = vld [vmem:[%s313_s10 + $0x10] sm:$0xff] (!%p305_p13)   ;;  %p357_p1 = scmp.lt.s32.totalorder (!%p305_p13), %s939_s22, 2 }
  0x28   : > { %780 = vmatprep.subr.bf16.mxu0 (!%p305_p13), %v877_v8  ;;  %796 = vmatprep.subr.bf16.mxu1 (!%p305_p13), %v877_v8  ;;  %v880_v13 = vld [vmem:[%s313_s10 + $0x18] sm:$0xff] (!%p305_p13)   ;;  %s348_s10 = sand.u32 (!%p305_p13), 1, %s923_s18  }
  0x29   : > { %781 = vmatpush3.bf16.msra.mxu0 (!%p305_p13), %v877_v8  ;;  %800 = vmatpush3.bf16.msra.mxu1 (!%p305_p13), %v877_v8 }
  0x2a   : > { %782 = vmatprep.subr.bf16.mxu0 (!%p305_p13), %v878_v9  ;;  %797 = vmatprep.subr.bf16.mxu1 (!%p305_p13), %v878_v9 }
  0x2c   : > { %s1146_s7 = smov (!%p352_p0, %s749_s7), 15 }
  0x2d   : > { %s750_s13 = sshll.u32 %s1146_s7, 2  ;;  %783 = vmatpush3.bf16.msra.mxu0 %v878_v9  ;;  %801 = vmatpush3.bf16.msra.mxu1 %v878_v9 }
  0x2e   : > { %s355_s16 = scalar_lea.vmem %s1124_s0, %s750_s13  ;;  %784 = vmatprep.subr.bf16.mxu0 %v879_v10  ;;  %798 = vmatprep.subr.bf16.mxu1 %v879_v10 }
  0x2f   : > { %v881_v11 = vld [vmem:[%s355_s16] sm:$0xff]   ;;  %v882_v12 = vld [vmem:[%s355_s16 + $0x10] sm:$0xff]   ;;  %v883_v14 = vld [vmem:[%s355_s16 + $0x8] sm:$0xff]   ;;  %s358_s20 = scalar_select %p357_p1, %s939_s22, 2 }
  0x30   : > { %788 = vmatprep.mubr.msk.bf16.mxu0 %vm428_vm0, %v881_v11  ;;  %792 = vmatprep.mubr.msk.bf16.mxu1 %vm428_vm0, %v882_v12  ;;  %v884_v15 = vld [vmem:[%s355_s16 + $0x18] sm:$0xff]   ;;  %s748_s16 = sshll.u32 %s348_s10, 6 }
  0x31   : > { %785 = vmatpush3.bf16.msra.mxu0 %v879_v10  ;;  %802 = vmatpush3.bf16.msra.mxu1 %v879_v10  ;;  %s359_s30 = scalar_lea.vmem %s1126_s2, %s358_s20  ;;  %s362_s9 = scalar_lea.vmem %s1127_s3, %s358_s20 }
  0x32   : > { %786 = vmatprep.subr.bf16.mxu0 %v880_v13  ;;  %799 = vmatprep.subr.bf16.mxu1 %v880_v13  ;;  %v763_v16 = vld [vmem:[%s359_s30] ss:$0 sm:$0xff]  ;;  %s365_s15 = scalar_lea.vmem %s1128_s4, %s358_s20  ;;  %s350_s18 = scalar_lea.vmem [#allocation3], %s748_s16 }
  0x33   : > { %v764_v18 = vld [vmem:[%s362_s9] ss:$0 sm:$0xff]  ;;  %s804_s20 = smul.u32 (%p1054_p9), 24, %s943_s23 }
  0x34   : > { %v765_v24 = vld [vmem:[%s365_s15] ss:$0 sm:$0xff] }
  0x35   : > { %787 = vmatpush3.bf16.msra.mxu0 %v880_v13  ;;  %803 = vmatpush3.bf16.msra.mxu1 %v880_v13  ;;  %s568_s17 = sadd.s32 (%p1054_p9), %s939_s22, %s804_s20 }
  0x36   : > { %s769_s27 = sshll.u32 (%p1054_p9), %s568_s17, 3 }
  0x37   : > { %s570_s7 = scalar_lea.vmem (%p1054_p9), %s1129_s5, %s769_s27 }
  0x38   : > { %789 = vmatmul.mubr.msk.bf16.vlgmr.msra.gmra.mrb[0].mxu0 %vm428_vm0, %v883_v14  ;;  %793 = vmatmul.mubr.msk.bf16.vlgmr.msra.gmra.mrb[0].mxu1 %vm428_vm0, %v884_v15 }
 0x10b   : > { %v790_v17 = vpop.f32.mrb[0].mxu0  ;;  %v794_v19 = vpop.f32.mrb[0].mxu1 }
 0x10c   : > { %v515_v20 = vmul.f32 %v790_v17, %v763_v16  ;;  %v519_v21 = vmul.f32 %v794_v19, %v763_v16  ;;  %v475_v22 = vpop.f32.mrb[1].mxu0  ;;  %v491_v23 = vpop.f32.mrb[1].mxu1 }
 0x10d   : > { %v513_v25 = vmul.f32 %v763_v16, %v475_v22  ;;  %v517_v26 = vmul.f32 %v763_v16, %v491_v23  ;;  %v791_v27 = vpop.f32.mrb[2].mxu0  ;;  %v795_v28 = vpop.f32.mrb[2].mxu1 }
 0x10e   : > { %v530_v29 = vadd.f32 %v764_v18, %v515_v20  ;;  %v534_v30 = vadd.f32 %v764_v18, %v519_v21  ;;  %v516_v31 = vmul.f32 %v791_v27, %v763_v16  ;;  %v520_v32 = vmul.f32 %v795_v28, %v763_v16  ;;  %v478_v33 = vpop.f32.mrb[3].mxu0  ;;  %v494_v34 = vpop.f32.mrb[3].mxu1 }
 0x10f   : > { %v528_v35 = vadd.f32 %v764_v18, %v513_v25  ;;  %v532_v36 = vadd.f32 %v764_v18, %v517_v26  ;;  %v514_v37 = vmul.f32 %v763_v16, %v478_v33  ;;  %v518_v38 = vmul.f32 %v763_v16, %v494_v34  ;;  %565 = sbr.rel (!%p1054_p9) target bundleno = 287 (0x11f), region = 85 }
 0x110   : > { %v545_v39 = vmax.f32 %v530_v29, %v765_v24  ;;  %v549_v40 = vmax.f32 %v534_v30, %v765_v24  ;;  %v531_v41 = vadd.f32 %v764_v18, %v516_v31  ;;  %v535_v42 = vadd.f32 %v764_v18, %v520_v32 }
 0x111   : > { %v543_v43 = vmax.f32 %v528_v35, %v765_v24  ;;  %v547_v44 = vmax.f32 %v532_v36, %v765_v24  ;;  %v529_v45 = vadd.f32 %v764_v18, %v514_v37  ;;  %v533_v46 = vadd.f32 %v764_v18, %v518_v38 }
 0x112   : > { %553 = vst [vmem:[%s350_s18 + $0x10] sm:$0xff] %v545_v39  ;;  %557 = vst [vmem:[%s350_s18 + $0x30] sm:$0xff] %v549_v40  ;;  %v546_v47 = vmax.f32 %v531_v41, %v765_v24  ;;  %v550_v48 = vmax.f32 %v535_v42, %v765_v24 }
 0x113   : > { %551 = vst [vmem:[%s350_s18] sm:$0xff] %v543_v43  ;;  %555 = vst [vmem:[%s350_s18 + $0x20] sm:$0xff] %v547_v44  ;;  %v544_v49 = vmax.f32 %v529_v45, %v765_v24  ;;  %v548_v50 = vmax.f32 %v533_v46, %v765_v24 }
 0x114   : > { %554 = vst [vmem:[%s350_s18 + $0x18] sm:$0xff] %v546_v47  ;;  %558 = vst [vmem:[%s350_s18 + $0x38] sm:$0xff] %v550_v48 }
 0x115   : > { %552 = vst [vmem:[%s350_s18 + $0x8] sm:$0xff] %v544_v49  ;;  %556 = vst [vmem:[%s350_s18 + $0x28] sm:$0xff] %v548_v50 }
 0x119   : > { %v616_v53 = vld [vmem:[%s350_s18 + $0x10] sm:$0xff] }
 0x11a   : > { %v612_v51 = vld [vmem:[%s350_s18] sm:$0xff]  ;;  %v624_v57 = vld [vmem:[%s350_s18 + $0x30] sm:$0xff]  ;;  %617 = vst [vmem:[%s570_s7 + $0x30] sm:$0xff] %v616_v53 }
 0x11b   : > { %v618_v54 = vld [vmem:[%s350_s18 + $0x18] sm:$0xff]  ;;  %v620_v55 = vld [vmem:[%s350_s18 + $0x20] sm:$0xff]  ;;  %613 = vst [vmem:[%s570_s7] sm:$0xff] %v612_v51  ;;  %625 = vst [vmem:[%s570_s7 + $0x90] sm:$0xff] %v624_v57 }
 0x11c   : > { %v614_v52 = vld [vmem:[%s350_s18 + $0x8] sm:$0xff]  ;;  %v626_v58 = vld [vmem:[%s350_s18 + $0x38] sm:$0xff]  ;;  %619 = vst [vmem:[%s570_s7 + $0x48] sm:$0xff] %v618_v54  ;;  %621 = vst [vmem:[%s570_s7 + $0x60] sm:$0xff] %v620_v55 }
 0x11d   : > { %v622_v56 = vld [vmem:[%s350_s18 + $0x28] sm:$0xff]  ;;  %615 = vst [vmem:[%s570_s7 + $0x18] sm:$0xff] %v614_v52  ;;  %627 = vst [vmem:[%s570_s7 + $0xa8] sm:$0xff] %v626_v58 }
 0x11e   : > { %623 = vst [vmem:[%s570_s7 + $0x78] sm:$0xff] %v622_v56 }
 0x11f PF: > { %s15_s26 = sadd.s32 1, %s955_s26   ;;  %s1131_s18 = smov %s927_s19 }
 0x120   : > { %p12_p2 = scmp.ge.s32.totalorder %s15_s26, 8   ;;  %s1132_s19 = smov %s1059_s12 }
 0x121   : > { %s1133_s20 = smov %s935_s21  ;;  %s1134_s21 = smov %s1048_s8 }
 0x122   : > { %s1135_s22 = smov %s947_s24  ;;  %s1136_s23 = smov %s951_s25 }
 0x123   : > { %s1137_s24 = smov %s1140_s28  ;;  %s1138_s25 = smov %s1144_s29 }
 0x124   :  { %14 = sbr.rel (!%p12_p2) target bundleno = 5 (0x5), region = 166 }

// kernel: linear_eval_forward.9
= control target key start
LH: loop header
LB: loop body
LE: loop exit
PB: predicated region body
PF: predicated region fallthrough
CT: control target
= control target key end

     0   :  { %s1036_s18 = smov 0   ;;  %s1038_s19 = smov 0   ;;  %s1196_s0 = inlined_call_operand.vmem [shape: bf16[128,64], index: 0, kind: input, shape index: {}]   ;;  %s1197_s1 = inlined_call_operand.vmem [shape: bf16[64,256], index: 1, kind: input, shape index: {}]   ;;  %s1198_s2 = inlined_call_operand.vmem [shape: f32[1,256], index: 2, kind: input, shape index: {}]   ;;  %s1199_s3 = inlined_call_operand.vmem [shape: f32[1,256], index: 3, kind: input, shape index: {}]   ;;  %s1200_s4 = inlined_call_operand.vmem [shape: f32[128,256], index: 4, kind: input, shape index: {}]   ;;  %s1201_s5 = inlined_call_operand.vmem [shape: f32[2,1,256], index: 5, kind: output, shape index: {}]  }
   0x1   :  { %s1040_s20 = smov 0   ;;  %s1042_s21 = smov 0  }
   0x2   :  { %s1044_s22 = smov 0   ;;  %s1046_s23 = smov 0  }
   0x3   :  { %s1048_s24 = smov 0   ;;  %s1050_s25 = smov 0  }
   0x4   :  { %s1052_s26 = smov 0  }
   0x5 LB: > { %s24_s27 = sadd.s32 1, %s996_s24  ;;  %s27_s28 = sadd.s32 1, %s1000_s25  ;;  %s1004_s26 = sphi %s1052_s26, %s15_s26   ;;  %s1000_s25 = sphi %s1050_s25, %s1211_s25   ;;  %s996_s24 = sphi %s1048_s24, %s1210_s24   ;;  %s992_s23 = sphi %s1046_s23, %s1209_s23   ;;  %s988_s22 = sphi %s1044_s22, %s1208_s22   ;;  %s984_s21 = sphi %s1042_s21, %s1207_s21   ;;  %s980_s20 = sphi %s1040_s20, %s1206_s20   ;;  %s976_s19 = sphi %s1038_s19, %s1205_s19   ;;  %s972_s18 = sphi %s1036_s18, %s1204_s18  }
   0x6   : > { %p25_p0 = scmp.ge.s32.totalorder %s24_s27, 2  ;;  %s60_s29 = sadd.s32 1, %s984_s21 }
   0x7   : > { %p67_p1 = scmp.ne.s32.totalorder %s984_s21, %s980_s20  ;;  %p68_p2 = scmp.eq.s32.totalorder %s1004_s26, 0 }
   0x8   : > { %s1213_s27 = smov (%p25_p0, %s24_s27), 0  ;;  %s1215_s28 = smov (!%p25_p0, %s27_s28), %s1000_s25 }
   0x9   : > { %s57_s30 = ssub.s32 %s996_s24, %s1213_s27  ;;  %p1092_p3 = por %p68_p2, %p67_p1 }
   0xa   : > { %p29_p4 = scmp.ge.s32.totalorder %s1215_s28, 2  ;;  %p58_p5 = scmp.eq.s32.totalorder %s57_s30, 0 }
   0xb   : > { %p147_p6 = scmp.ne.s32.totalorder %s976_s19, %s972_s18  ;;  %s140_s11 = sadd.s32 1, %s976_s19 }
   0xc   : > { %s1217_s28 = smov (%p29_p4, %s1215_s28), 0  ;;  %p792_p9 = scmp.ge.s32.totalorder %s1004_s26, 4 }
   0xd   : > { %s1101_s7 = scalar_select %p58_p5, %s984_s21, %s60_s29  }
   0xe   : > { %s135_s8 = ssub.s32 %s1000_s25, %s1217_s28  ;;  %p1105_p7 = por %p147_p6, %p68_p2 }
   0xf   : > { %s137_s10 = sor.u32 %s135_s8, %s57_s30  ;;  %201 = sbr.rel (%p792_p9) target bundleno = 41 (0x29), region = 16 }
  0x10   : > { %p138_p8 = scmp.eq.s32.totalorder %s137_s10, 0 }
  0x12   : > { %s1111_s12 = scalar_select %p138_p8, %s976_s19, %s140_s11  }
  0x16   : > { %213 = sbr.rel (!%p1092_p3) target bundleno = 31 (0x1f), region = 24  ;;  %s215_s13 = sand.u32 (%p1092_p3), 1, %s984_s21  }
  0x17   : > { %s794_s14 = sshll.u32 (%p1092_p3), %s996_s24, 2  ;;  %s793_s15 = sshll.u32 (%p1092_p3), %s215_s13, 5 }
  0x18   : > { %s219_s29 = scalar_lea.vmem (%p1092_p3), %s1197_s1, %s794_s14  ;;  %s217_s30 = scalar_lea.vmem (%p1092_p3), [#allocation2], %s793_s15 }
  0x19   : > { %v235_v0 = vld [vmem:[%s219_s29] sm:$0xf] (%p1092_p3)  ;;  %v237_v1 = vld [vmem:[%s219_s29 + $0x8] sm:$0xf] (%p1092_p3)  ;;  %v239_v2 = vld [vmem:[%s219_s29 + $0x10] sm:$0xf] (%p1092_p3) }
  0x1a   : > { %236 = vst [vmem:[%s217_s30] sm:$0xf] (%p1092_p3), %v235_v0  ;;  %238 = vst [vmem:[%s217_s30 + $0x4] sm:$0xf] (%p1092_p3), %v237_v1  ;;  %v241_v3 = vld [vmem:[%s219_s29 + $0x18] sm:$0xf] (%p1092_p3) }
  0x1b   : > { %v243_v4 = vld [vmem:[%s219_s29 + $0x20] sm:$0xf] (%p1092_p3)  ;;  %240 = vst [vmem:[%s217_s30 + $0x8] sm:$0xf] (%p1092_p3), %v239_v2  ;;  %242 = vst [vmem:[%s217_s30 + $0xc] sm:$0xf] (%p1092_p3), %v241_v3 }
  0x1c   : > { %244 = vst [vmem:[%s217_s30 + $0x10] sm:$0xf] (%p1092_p3), %v243_v4  ;;  %v245_v5 = vld [vmem:[%s219_s29 + $0x28] sm:$0xf] (%p1092_p3)  ;;  %v247_v6 = vld [vmem:[%s219_s29 + $0x30] sm:$0xf] (%p1092_p3) }
  0x1d   : > { %v249_v7 = vld [vmem:[%s219_s29 + $0x38] sm:$0xf]  ;;  %246 = vst [vmem:[%s217_s30 + $0x14] sm:$0xf] %v245_v5  ;;  %248 = vst [vmem:[%s217_s30 + $0x18] sm:$0xf] %v247_v6 }
  0x1e   : > { %250 = vst [vmem:[%s217_s30 + $0x1c] sm:$0xf] %v249_v7 }
  0x1f PF: > { %301 = sbr.rel (!%p1105_p7) target bundleno = 41 (0x29), region = 73  ;;  %s303_s6 = sand.u32 (%p1105_p7), 1, %s976_s19  }
  0x20   : > { %s821_s8 = sshll.u32 (%p1105_p7), %s1000_s25, 4  ;;  %s795_s10 = sshll.u32 (%p1105_p7), %s303_s6, 6 }
  0x21   : > { %s308_s11 = sadd.s32 (%p1105_p7), %s996_s24, %s821_s8  ;;  %s305_s17 = scalar_lea.vmem (%p1105_p7), [#allocation3], %s795_s10 }
  0x22   : > { %s798_s13 = sshll.u32 (%p1105_p7), %s308_s11, 3 }
  0x23   : > { %s310_s16 = scalar_lea.vmem (%p1105_p7), %s1200_s4, %s798_s13 }
  0x24   : > { %v352_v8 = vld [vmem:[%s310_s16] sm:$0xff] (%p1105_p7)  ;;  %v354_v9 = vld [vmem:[%s310_s16 + $0x10] sm:$0xff] (%p1105_p7) }
  0x25   : > { %v356_v10 = vld [vmem:[%s310_s16 + $0x20] sm:$0xff] (%p1105_p7)  ;;  %353 = vst [vmem:[%s305_s17] sm:$0xff] (%p1105_p7), %v352_v8  ;;  %355 = vst [vmem:[%s305_s17 + $0x8] sm:$0xff] (%p1105_p7), %v354_v9  ;;  %v358_v11 = vld [vmem:[%s310_s16 + $0x30] sm:$0xff] (%p1105_p7) }
  0x26   : > { %357 = vst [vmem:[%s305_s17 + $0x10] sm:$0xff] %v356_v10  ;;  %v360_v12 = vld [vmem:[%s310_s16 + $0x40] sm:$0xff]  ;;  %v362_v13 = vld [vmem:[%s310_s16 + $0x50] sm:$0xff]  ;;  %359 = vst [vmem:[%s305_s17 + $0x18] sm:$0xff] %v358_v11 }
  0x27   : > { %361 = vst [vmem:[%s305_s17 + $0x20] sm:$0xff] %v360_v12  ;;  %363 = vst [vmem:[%s305_s17 + $0x28] sm:$0xff] %v362_v13  ;;  %v364_v14 = vld [vmem:[%s310_s16 + $0x60] sm:$0xff]  ;;  %v366_v15 = vld [vmem:[%s310_s16 + $0x70] sm:$0xff] }
  0x28   : > { %365 = vst [vmem:[%s305_s17 + $0x30] sm:$0xff] %v364_v14  ;;  %367 = vst [vmem:[%s305_s17 + $0x38] sm:$0xff] %v366_v15 }
  0x29 PF: > { %p799_p10 = scmp.ge.s32.totalorder %s1004_s26, 1  ;;  %p372_p11 = scmp.lt.s32.totalorder %s1004_s26, 5 }
  0x2b   : > { %p373_p12 = pnand %p799_p10, %p372_p11 }
  0x2c   : > { %s379_s9 = sand.u32 (!%p373_p12), 1, %s980_s20   ;;  %s802_s29 = sshll.u32 (!%p373_p12), %s992_s23, 3  ;;  %vm511_vm0 = vcmask (!%p373_p12), 523264  }
  0x2d   : > { %376 = sbr.rel (%p373_p12) target bundleno = 316 (0x13c), region = 111  ;;  %s800_s30 = sshll.u32 (!%p373_p12), %s379_s9, 5 }
  0x2e   : > { %p431_p13 = scmp.lt.s32.totalorder (!%p373_p12), %s802_s29, 15  ;;  %s381_s6 = scalar_lea.vmem (!%p373_p12), [#allocation2], %s800_s30 }
  0x2f   : > { %v926_v16 = vld [vmem:[%s381_s6] sm:$0xff] (!%p373_p12)   ;;  %v927_v17 = vld [vmem:[%s381_s6 + $0x8] sm:$0xff] (!%p373_p12)   ;;  %v928_v18 = vld [vmem:[%s381_s6 + $0x10] sm:$0xff] (!%p373_p12)   ;;  %p436_p0 = scmp.lt.s32.totalorder (!%p373_p12), %s988_s22, 1  ;;  %s386_s20 = sand.u32 (!%p373_p12), 1, %s972_s18  }
  0x30   : > { %830 = vmatprep.subr.bf16.mxu0 (!%p373_p12), %v926_v16  ;;  %846 = vmatprep.subr.bf16.mxu1 (!%p373_p12), %v926_v16  ;;  %v929_v21 = vld [vmem:[%s381_s6 + $0x18] sm:$0xff] (!%p373_p12)   ;;  %s801_s17 = sshll.u32 (!%p373_p12), %s386_s20, 6  ;;  %p443_p1 = scmp.lt.s32.totalorder (!%p373_p12), %s992_s23, 1 }
  0x31   : > { %831 = vmatpush3.bf16.msra.mxu0 (!%p373_p12), %v926_v16  ;;  %850 = vmatpush3.bf16.msra.mxu1 (!%p373_p12), %v926_v16  ;;  %s1153_s18 = scalar_lea.vmem (!%p373_p12), [#allocation3], %s801_s17 }
  0x32   : > { %832 = vmatprep.subr.bf16.mxu0 (!%p373_p12), %v927_v17  ;;  %847 = vmatprep.subr.bf16.mxu1 (!%p373_p12), %v927_v17  ;;  %v619_v35 = vld [vmem:[%s1153_s18] sm:$0xff] (!%p373_p12)  ;;  %v621_v42 = vld [vmem:[%s1153_s18 + $0x10] sm:$0xff] (!%p373_p12)  ;;  %v620_v43 = vld [vmem:[%s1153_s18 + $0x8] sm:$0xff] (!%p373_p12) }
  0x33   : > { %v623_v48 = vld [vmem:[%s1153_s18 + $0x20] sm:$0xff] (!%p373_p12)  ;;  %v622_v50 = vld [vmem:[%s1153_s18 + $0x18] sm:$0xff] (!%p373_p12)  ;;  %v624_v60 = vld [vmem:[%s1153_s18 + $0x28] sm:$0xff] (!%p373_p12) }
  0x34   : > { %s1219_s29 = smov (!%p431_p13, %s802_s29), 15  ;;  %s1221_s22 = smov (!%p436_p0, %s988_s22), 1  ;;  %v625_v0 = vld [vmem:[%s1153_s18 + $0x30] sm:$0xff]  ;;  %v626_v6 = vld [vmem:[%s1153_s18 + $0x38] sm:$0xff] }
  0x35   : > { %s803_s8 = sshll.u32 %s1219_s29, 2  ;;  %833 = vmatpush3.bf16.msra.mxu0 %v927_v17  ;;  %851 = vmatpush3.bf16.msra.mxu1 %v927_v17  ;;  %s438_s16 = scalar_lea.vmem %s1198_s2, %s1221_s22 }
  0x36   : > { %s434_s13 = scalar_lea.vmem %s1196_s0, %s803_s8  ;;  %834 = vmatprep.subr.bf16.mxu0 %v928_v18  ;;  %848 = vmatprep.subr.bf16.mxu1 %v928_v18  ;;  %s441_s30 = scalar_lea.vmem %s1199_s3, %s1221_s22  ;;  %v817_v24 = vld [vmem:[%s438_s16] ss:$0 sm:$0xff] }
  0x37   : > { %v930_v19 = vld [vmem:[%s434_s13] sm:$0xff]   ;;  %v932_v20 = vld [vmem:[%s434_s13 + $0x10] sm:$0xff]   ;;  %v931_v22 = vld [vmem:[%s434_s13 + $0x8] sm:$0xff]   ;;  %s1223_s23 = smov (!%p443_p1, %s992_s23), 1 }
  0x38   : > { %838 = vmatprep.mubr.msk.bf16.mxu0 %vm511_vm0, %v930_v19  ;;  %842 = vmatprep.mubr.msk.bf16.mxu1 %vm511_vm0, %v932_v20  ;;  %v933_v23 = vld [vmem:[%s434_s13 + $0x18] sm:$0xff]   ;;  %v818_v28 = vld [vmem:[%s441_s30] ss:$0 sm:$0xff]  ;;  %s804_s6 = sshll.u32 %s1223_s23, 1 }
  0x39   : > { %835 = vmatpush3.bf16.msra.mxu0 %v928_v18  ;;  %852 = vmatpush3.bf16.msra.mxu1 %v928_v18  ;;  %s448_s8 = sadd.s32 %s804_s6, %s1221_s22 }
  0x3a   : > { %836 = vmatprep.subr.bf16.mxu0 %v929_v21  ;;  %849 = vmatprep.subr.bf16.mxu1 %v929_v21  ;;  %s449_s13 = scalar_lea.vmem %s1201_s5, %s448_s8 }
  0x3d   : > { %837 = vmatpush3.bf16.msra.mxu0 %v929_v21  ;;  %853 = vmatpush3.bf16.msra.mxu1 %v929_v21 }
  0x40   : > { %839 = vmatmul.mubr.msk.bf16.vlgmr.msra.gmra.mrb[0].mxu0 %vm511_vm0, %v931_v22  ;;  %843 = vmatmul.mubr.msk.bf16.vlgmr.msra.gmra.mrb[0].mxu1 %vm511_vm0, %v933_v23 }
 0x113   : > { %v840_v25 = vpop.f32.mrb[0].mxu0  ;;  %v844_v26 = vpop.f32.mrb[0].mxu1 }
 0x114   : > { %v598_v27 = vmul.f32 %v840_v25, %v817_v24  ;;  %v558_v29 = vpop.f32.mrb[1].mxu0  ;;  %v574_v30 = vpop.f32.mrb[1].mxu1  ;;  %v602_v53 = vmul.f32 %v844_v26, %v817_v24 }
 0x115   : > { %v596_v31 = vmul.f32 %v817_v24, %v558_v29  ;;  %v841_v32 = vpop.f32.mrb[2].mxu0  ;;  %v600_v33 = vmul.f32 %v817_v24, %v574_v30  ;;  %v845_v34 = vpop.f32.mrb[2].mxu1 }
 0x116   : > { %v599_v36 = vmul.f32 %v841_v32, %v817_v24  ;;  %v561_v37 = vpop.f32.mrb[3].mxu0  ;;  %v577_v38 = vpop.f32.mrb[3].mxu1  ;;  %v613_v39 = vadd.f32 %v818_v28, %v598_v27  ;;  %v603_v55 = vmul.f32 %v845_v34, %v817_v24  ;;  %v617_v63 = vadd.f32 %v818_v28, %v602_v53 }
 0x117   : > { %v611_v40 = vadd.f32 %v818_v28, %v596_v31  ;;  %v597_v41 = vmul.f32 %v817_v24, %v561_v37  ;;  %v615_v44 = vadd.f32 %v818_v28, %v600_v33  ;;  %v601_v49 = vmul.f32 %v817_v24, %v577_v38 }
 0x118   : > { %v614_v46 = vadd.f32 %v818_v28, %v599_v36  ;;  %v629_v51 = vadd.f32 %v621_v42, %v613_v39  ;;  %v618_v1 = vadd.f32 %v818_v28, %v603_v55  ;;  %v633_v7 = vadd.f32 %v625_v0, %v617_v63 }
 0x119   : > { %v627_v45 = vadd.f32 %v619_v35, %v611_v40  ;;  %v612_v47 = vadd.f32 %v818_v28, %v597_v41  ;;  %v631_v54 = vadd.f32 %v623_v48, %v615_v44  ;;  %v616_v59 = vadd.f32 %v818_v28, %v601_v49 }
 0x11a   : > { %v630_v57 = vadd.f32 %v622_v50, %v614_v46  ;;  %v637_v61 = vmax.f32 %v629_v51, 0.0  ;;  %v634_v10 = vadd.f32 %v626_v6, %v618_v1  ;;  %v641_v12 = vmax.f32 %v633_v7, 0.0 }
 0x11b   : > { %v628_v52 = vadd.f32 %v620_v43, %v612_v47  ;;  %v635_v56 = vmax.f32 %v627_v45, 0.0  ;;  %v639_v4 = vmax.f32 %v631_v54, 0.0  ;;  %v632_v5 = vadd.f32 %v624_v60, %v616_v59 }
 0x11c   : > { %v638_v2 = vmax.f32 %v630_v57, 0.0  ;;  %v642_v14 = vmax.f32 %v634_v10, 0.0 }
 0x11d   : > { %v636_v58 = vmax.f32 %v628_v52, 0.0  ;;  %v640_v11 = vmax.f32 %v632_v5, 0.0 }
 0x11f   : > { %v643_v62 = vadd.f32 %v636_v58, %v635_v56 }
 0x121   : > { %v644_v3 = vadd.f32 %v643_v62, %v637_v61 }
 0x123   : > { %v645_v8 = vadd.f32 %v644_v3, %v638_v2 }
 0x125   : > { %v646_v9 = vadd.f32 %v645_v8, %v639_v4 }
 0x127   : > { %v647_v13 = vadd.f32 %v646_v9, %v640_v11 }
 0x129   : > { %v648_v15 = vadd.f32 %v647_v13, %v641_v12 }
 0x12b   : > { %v649_v16 = vadd.f32 %v648_v15, %v642_v14 }
 0x12d   : > { %v650_v17 = vrot.slane %v649_v16, 4 }
 0x12f   : > { %v651_v18 = vadd.f32 %v650_v17, %v649_v16 }
 0x131   : > { %v652_v19 = vrot.slane %v651_v18, 2 }
 0x133   : > { %v653_v20 = vadd.f32 %v652_v19, %v651_v18 }
 0x135   : > { %v654_v21 = vrot.slane %v653_v20, 1 }
 0x137   : > { %v655_v22 = vadd.f32 %v654_v21, %v653_v20 }
 0x139   : > { %v657_v23 = vmul.f32 0.015625, %v655_v22 }
 0x13b   : > { %658 = vst [vmem:[%s449_s13] sm:$0x1] %v657_v23 }
 0x13c PF: > { %s15_s26 = sadd.s32 1, %s1004_s26   ;;  %s1204_s18 = smov %s976_s19 }
 0x13d   : > { %p12_p2 = scmp.ge.s32.totalorder %s15_s26, 6   ;;  %s1205_s19 = smov %s1111_s12 }
 0x13e   : > { %s1206_s20 = smov %s984_s21  ;;  %s1207_s21 = smov %s1101_s7 }
 0x13f   : > { %s1208_s22 = smov %s996_s24  ;;  %s1209_s23 = smov %s1000_s25 }
 0x140   : > { %s1210_s24 = smov %s1213_s27  ;;  %s1211_s25 = smov %s1217_s28 }
 0x141   :  { %14 = sbr.rel (!%p12_p2) target bundleno = 5 (0x5), region = 171 }

// kernel: linear_eval_forward.8
= control target key start
LH: loop header
LB: loop body
LE: loop exit
PB: predicated region body
PF: predicated region fallthrough
CT: control target
= control target key end

     0   :  { %s2396_s15 = smov 0   ;;  %s2944_s0 = inlined_call_operand.vmem [shape: f32[2,10,10,64], index: 0, kind: input, shape index: {}]   ;;  %s2945_s1 = inlined_call_operand.vmem [shape: f32[9,64,64], index: 1, kind: input, shape index: {}]   ;;  %s2946_s2 = inlined_call_operand.vmem [shape: f32[1,64], index: 2, kind: input, shape index: {}]   ;;  %s2947_s3 = inlined_call_operand.vmem [shape: f32[1,64], index: 3, kind: input, shape index: {}]   ;;  %s2948_s4 = inlined_call_operand.vmem [shape: bf16[128,64], index: 4, kind: output, shape index: {}]  }
   0x1 LB: > { %s2402_s16 = sadd.s32 4294967295, %s2369_s15   ;;  %p1582_p0 = scmp.ge.s32.totalorder %s2369_s15, 1  ;;  %s2369_s15 = sphi %s2396_s15, %s14_s15  }
   0x2   : > { %p162_p1 = scmp.lt.s32.totalorder %s2369_s15, 3 }
   0x4   : > { %p163_p2 = pnand %p1582_p0, %p162_p1 }
   0x5   : > { %v1586_v0 = vld [vmem:[%s2945_s1 + $0x40] sm:$0xff] (!%p163_p2)  ;;  %v1587_v1 = vld [vmem:[%s2945_s1 + $0x48] sm:$0xff] (!%p163_p2)  ;;  %p188_p3 = scmp.lt.s32.totalorder (!%p163_p2), %s2402_s16, 1  ;;  %v1588_v5 = vld [vmem:[%s2945_s1 + $0x50] sm:$0xff] (!%p163_p2)  ;;  %vm243_vm0 = vcmask (!%p163_p2), 1046528   ;;  %vm277_vm1 = vcmask (!%p163_p2), 523264  }
   0x6   : > { %166 = sbr.rel (%p163_p2) target bundleno = 317 (0x13d), region = 36  ;;  %v1642_v2 = vld [vmem:[%s2945_s1 + $0x100] sm:$0xff] (!%p163_p2)  ;;  %v2138_v3 = vpack.c.bf16 (!%p163_p2), %v1587_v1, %v1586_v0  ;;  %v1643_v4 = vld [vmem:[%s2945_s1 + $0x108] sm:$0xff] (!%p163_p2)  ;;  %v1589_v6 = vld [vmem:[%s2945_s1 + $0x58] sm:$0xff] (!%p163_p2)  ;;  %vm520_vm2 = vcmask (!%p163_p2), 1045504   ;;  %s1584_s23 = sshll.u32 (!%p163_p2), %s2402_s16, 3 }
   0x7   : > { %v2202_v7 = vpack.c.bf16 (!%p163_p2), %v1643_v4, %v1642_v2  ;;  %v2142_v8 = vpack.c.bf16 (!%p163_p2), %v1589_v6, %v1588_v5  ;;  %v1644_v9 = vld [vmem:[%s2945_s1 + $0x110] sm:$0xff] (!%p163_p2)  ;;  %v1645_v10 = vld [vmem:[%s2945_s1 + $0x118] sm:$0xff] (!%p163_p2)  ;;  %v1590_v11 = vld [vmem:[%s2945_s1 + $0x60] sm:$0xff] (!%p163_p2)  ;;  %p194_p4 = scmp.lt.s32.totalorder (!%p163_p2), %s1584_s23, 15  ;;  %vm1513_vm3 = vcmask (!%p163_p2), 519168  }
   0x8   : > { %2139 = vmatprep.subr.bf16.mxu1 (!%p163_p2), %v2138_v3  ;;  %v2206_v12 = vpack.c.bf16 (!%p163_p2), %v1645_v10, %v1644_v9  ;;  %v1591_v13 = vld [vmem:[%s2945_s1 + $0x68] sm:$0xff] (!%p163_p2)  ;;  %v1646_v14 = vld [vmem:[%s2945_s1 + $0x120] sm:$0xff] (!%p163_p2)  ;;  %v1592_v17 = vld [vmem:[%s2945_s1 + $0x70] sm:$0xff] (!%p163_p2) }
   0x9   : > { %v1647_v15 = vld [vmem:[%s2945_s1 + $0x128] sm:$0xff] (!%p163_p2)  ;;  %2203 = vmatprep.subr.bf16.mxu0 (!%p163_p2), %v2202_v7  ;;  %2141 = vmatpush3.bf16.msra.mxu1 (!%p163_p2), %v2138_v3  ;;  %v2146_v16 = vpack.c.bf16 (!%p163_p2), %v1591_v13, %v1590_v11  ;;  %v1593_v19 = vld [vmem:[%s2945_s1 + $0x78] sm:$0xff] (!%p163_p2)  ;;  %v1648_v20 = vld [vmem:[%s2945_s1 + $0x130] sm:$0xff] (!%p163_p2) }
   0xa   : > { %2205 = vmatpush3.bf16.msra.mxu0 (!%p163_p2), %v2202_v7  ;;  %2143 = vmatprep.subr.bf16.mxu1 (!%p163_p2), %v2142_v8  ;;  %v2210_v18 = vpack.c.bf16 (!%p163_p2), %v1647_v15, %v1646_v14  ;;  %v1649_v21 = vld [vmem:[%s2945_s1 + $0x138] sm:$0xff] (!%p163_p2)  ;;  %v2150_v29 = vpack.c.bf16 (!%p163_p2), %v1593_v19, %v1592_v17  ;;  %v219_v31 = vld [vmem:[%s2945_s1] sm:$0xff] (!%p163_p2)  ;;  %v220_v34 = vld [vmem:[%s2945_s1 + $0x8] sm:$0xff] (!%p163_p2) }
   0xb   : > { %2207 = vmatprep.subr.bf16.mxu0 (!%p163_p2), %v2206_v12  ;;  %v2214_v32 = vpack.c.bf16 (!%p163_p2), %v1649_v21, %v1648_v20  ;;  %v1658_v38 = vld [vmem:[%s2945_s1 + $0x140] sm:$0xff] (!%p163_p2)  ;;  %v1659_v39 = vld [vmem:[%s2945_s1 + $0x148] sm:$0xff] (!%p163_p2)  ;;  %v2154_v42 = vpack.c.bf16 (!%p163_p2), %v220_v34, %v219_v31  ;;  %v221_v50 = vld [vmem:[%s2945_s1 + $0x10] sm:$0xff] (!%p163_p2) }
   0xc   : > { %v2218_v45 = vpack.c.bf16 (!%p163_p2), %v1659_v39, %v1658_v38  ;;  %v222_v51 = vld [vmem:[%s2945_s1 + $0x18] sm:$0xff] (!%p163_p2)  ;;  %v1660_v52 = vld [vmem:[%s2945_s1 + $0x150] sm:$0xff] (!%p163_p2)  ;;  %v223_v2 = vld [vmem:[%s2945_s1 + $0x20] sm:$0xff] (!%p163_p2) }
   0xd   : > { %s189_s9 = scalar_select %p188_p3, %s2402_s16, 1  ;;  %2145 = vmatpush3.bf16.msra.mxu1 %v2142_v8  ;;  %v1661_v53 = vld [vmem:[%s2945_s1 + $0x158] sm:$0xff]  ;;  %v2158_v59 = vpack.c.bf16 %v222_v51, %v221_v50  ;;  %v224_v3 = vld [vmem:[%s2945_s1 + $0x28] sm:$0xff]  ;;  %v1662_v4 = vld [vmem:[%s2945_s1 + $0x160] sm:$0xff] }
   0xe   : > { %2209 = vmatpush3.bf16.msra.mxu0 %v2206_v12  ;;  %2147 = vmatprep.subr.bf16.mxu1 %v2146_v16  ;;  %v2222_v63 = vpack.c.bf16 %v1661_v53, %v1660_v52  ;;  %v1663_v5 = vld [vmem:[%s2945_s1 + $0x168] sm:$0xff]  ;;  %v2162_v11 = vpack.c.bf16 %v224_v3, %v223_v2  ;;  %v226_v19 = vld [vmem:[%s2945_s1 + $0x38] sm:$0xff]  ;;  %v1664_v20 = vld [vmem:[%s2945_s1 + $0x170] sm:$0xff]  ;;  %s2950_s23 = smov (!%p194_p4, %s1584_s23), 15 }
   0xf   : > { %s2354_s18 = smul.u32 160, %s189_s9  ;;  %2211 = vmatprep.subr.bf16.mxu0 %v2210_v18  ;;  %v2226_v15 = vpack.c.bf16 %v1663_v5, %v1662_v4  ;;  %v1665_v21 = vld [vmem:[%s2945_s1 + $0x178] sm:$0xff]  ;;  %v1611_v34 = vld [vmem:[%s2945_s1 + $0x88] sm:$0xff]  ;;  %v1612_v53 = vld [vmem:[%s2945_s1 + $0x90] sm:$0xff] }
  0x10   : > { %v1675_v38 = vld [vmem:[%s2945_s1 + $0x188] sm:$0xff] }
  0x11   : > { %s2459_s29 = scalar_lea.vmem %s2944_s0, %s2354_s18  ;;  %2149 = vmatpush3.bf16.msra.mxu1 %v2146_v16 }
  0x12   : > { %v2462_v22 = vld [vmem:[%s2459_s29] sm:$0xff]  ;;  %v2465_v23 = vld [vmem:[%s2459_s29 + $0x8] sm:$0x3]  ;;  %v2468_v24 = vld [vmem:[%s2459_s29 + $0x10] sm:$0xff]  ;;  %2213 = vmatpush3.bf16.msra.mxu0 %v2210_v18  ;;  %2151 = vmatprep.subr.bf16.mxu1 %v2150_v29 }
  0x13   : > { %v244_v25 = vrot.slane %v2462_v22, 1  ;;  %v245_v26 = vrot.slane %v2465_v23, 1  ;;  %v2473_v27 = vld [vmem:[%s2459_s29 + $0x18] sm:$0x3]  ;;  %v247_v28 = vrot.slane %v2468_v24, 1  ;;  %v2485_v35 = vld [vmem:[%s2459_s29 + $0x20] sm:$0xff]  ;;  %2215 = vmatprep.subr.bf16.mxu0 %v2214_v32 }
  0x14   : > { %v248_v30 = vrot.slane %v2473_v27, 1  ;;  %v2488_v36 = vld [vmem:[%s2459_s29 + $0x28] sm:$0x3]  ;;  %v2500_v40 = vld [vmem:[%s2459_s29 + $0x30] sm:$0xff]  ;;  %v2503_v41 = vld [vmem:[%s2459_s29 + $0x38] sm:$0x3] }
  0x15   : > { %v246_v33 = vsel %vm243_vm0, %v244_v25, %v245_v26  ;;  %v250_v43 = vrot.slane %v2485_v35, 1  ;;  %v251_v44 = vrot.slane %v2488_v36, 1  ;;  %v2508_v46 = vld [vmem:[%s2459_s29 + $0x40] sm:$0xff]  ;;  %v2511_v47 = vld [vmem:[%s2459_s29 + $0x48] sm:$0x3]  ;;  %v253_v48 = vrot.slane %v2500_v40, 1  ;;  %2153 = vmatpush3.bf16.msra.mxu1 %v2150_v29 }
  0x16   : > { %1902 = vmatprep.mubr.msk.f32.mxu1 %vm277_vm1, %v246_v33  ;;  %v249_v37 = vsel %vm243_vm0, %v247_v28, %v248_v30  ;;  %v254_v49 = vrot.slane %v2503_v41, 1  ;;  %v2528_v54 = vld [vmem:[%s2459_s29 + $0x50] sm:$0xff]  ;;  %v2531_v55 = vld [vmem:[%s2459_s29 + $0x58] sm:$0x3]  ;;  %2217 = vmatpush3.bf16.msra.mxu0 %v2214_v32  ;;  %v256_v57 = vrot.slane %v2508_v46, 1  ;;  %v257_v58 = vrot.slane %v2511_v47, 1 }
  0x17   : > { %2014 = vmatprep.mubr.msk.f32.mxu0 %vm277_vm1, %v249_v37  ;;  %2155 = vmatprep.subr.bf16.mxu1 %v2154_v42  ;;  %v2534_v56 = vsel %vm243_vm0, %v250_v43, %v251_v44  ;;  %v2539_v60 = vld [vmem:[%s2459_s29 + $0x60] sm:$0xff]  ;;  %v2542_v61 = vld [vmem:[%s2459_s29 + $0x68] sm:$0x3]  ;;  %v259_v0 = vrot.slane %v2528_v54, 1  ;;  %v260_v1 = vrot.slane %v2531_v55, 1  ;;  %v2565_v6 = vld [vmem:[%s2459_s29 + $0x70] sm:$0xff]  ;;  %v2230_v33 = vpack.c.bf16 %v1665_v21, %v1664_v20 }
  0x18   : > { %2219 = vmatprep.subr.bf16.mxu0 %v2218_v45  ;;  %1903 = vmatmul.mubr.msk.f32.vlgmr.msra.gmra.mrb[0].mxu1 %vm277_vm1, %v249_v37  ;;  %v2546_v62 = vsel %vm243_vm0, %v253_v48, %v254_v49  ;;  %v2568_v7 = vld [vmem:[%s2459_s29 + $0x78] sm:$0x3]  ;;  %v2573_v8 = vsel %vm243_vm0, %v256_v57, %v257_v58  ;;  %v262_v9 = vrot.slane %v2539_v60, 1  ;;  %v263_v10 = vrot.slane %v2542_v61, 1  ;;  %v2580_v12 = vld [vmem:[%s2459_s29 + $0x80] sm:$0xff]  ;;  %v225_v18 = vld [vmem:[%s2945_s1 + $0x30] sm:$0xff] }
  0x19   : > { %2015 = vmatmul.mubr.msk.f32.vlgmr.msra.gmra.mrb[0].mxu0 %vm277_vm1, %v2534_v56  ;;  %2157 = vmatpush3.bf16.msra.mxu1 %v2154_v42  ;;  %v2583_v13 = vld [vmem:[%s2459_s29 + $0x88] sm:$0x3]  ;;  %v2588_v14 = vsel %vm243_vm0, %v259_v0, %v260_v1  ;;  %v265_v16 = vrot.slane %v2565_v6, 1  ;;  %v266_v17 = vrot.slane %v2568_v7, 1  ;;  %v809_v26 = vrot.slane %v2580_v12, 1  ;;  %v1674_v37 = vld [vmem:[%s2945_s1 + $0x180] sm:$0xff] }
  0x1a   : > { %2221 = vmatpush3.bf16.msra.mxu0 %v2218_v45  ;;  %1905 = vmatprep.mubr.msk.f32.mxu1 %vm277_vm1, %v2534_v56  ;;  %v2609_v25 = vsel %vm243_vm0, %v262_v9, %v263_v10  ;;  %v810_v28 = vrot.slane %v2583_v13, 1  ;;  %v525_v29 = vrot.slane %v2473_v27, 2  ;;  %v2166_v30 = vpack.c.bf16 %v226_v19, %v225_v18  ;;  %v1610_v27 = vld [vmem:[%s2945_s1 + $0x80] sm:$0xff]  ;;  %v2637_v39 = vld [vmem:[%s2459_s29 + $0x90] sm:$0xff]  ;;  %v1613_v57 = vld [vmem:[%s2945_s1 + $0x98] sm:$0xff] }
  0x1b   : > { %2017 = vmatprep.mubr.msk.f32.mxu0 %vm277_vm1, %v2546_v62  ;;  %2159 = vmatprep.subr.bf16.mxu1 %v2158_v59  ;;  %v524_v31 = vrot.slane %v2468_v24, 2  ;;  %v2620_v32 = vsel %vm243_vm0, %v265_v16, %v266_v17  ;;  %v528_v42 = vrot.slane %v2488_v36, 2  ;;  %v527_v44 = vrot.slane %v2485_v35, 2  ;;  %v2653_v36 = vld [vmem:[%s2459_s29 + $0x98] sm:$0x3]  ;;  %v1614_v10 = vld [vmem:[%s2945_s1 + $0xa0] sm:$0xff] }
  0x1c   : > { %1906 = vmatmul.mubr.msk.f32.gmra.mrb[2].mxu1 %vm277_vm1, %v2546_v62  ;;  %2223 = vmatprep.subr.bf16.mxu0 %v2222_v63  ;;  %v2643_v43 = vsel %vm243_vm0, %v809_v26, %v810_v28  ;;  %v1189_v45 = vrot.slane %v2637_v39, 1  ;;  %v2170_v49 = vpack.c.bf16 %v1611_v34, %v1610_v27  ;;  %v2234_v50 = vpack.c.bf16 %v1675_v38, %v1674_v37  ;;  %s1585_s29 = sshll.u32 %s2950_s23, 2 }
  0x1d   : > { %2018 = vmatmul.mubr.msk.f32.gmra.mrb[2].mxu0 %vm277_vm1, %v2573_v8  ;;  %2161 = vmatpush3.bf16.msra.mxu1 %v2158_v59  ;;  %v2650_v48 = vsel %vm520_vm2, %v524_v31, %v525_v29  ;;  %v530_v51 = vrot.slane %v2500_v40, 2  ;;  %v531_v52 = vrot.slane %v2503_v41, 2  ;;  %v1190_v58 = vrot.slane %v2653_v36, 1  ;;  %v1676_v59 = vld [vmem:[%s2945_s1 + $0x190] sm:$0xff]  ;;  %v1677_v41 = vld [vmem:[%s2945_s1 + $0x198] sm:$0xff]  ;;  %s197_s30 = scalar_lea.vmem %s2948_s4, %s1585_s29 }
  0x1e   : > { %2225 = vmatpush3.bf16.msra.mxu0 %v2222_v63  ;;  %1908 = vmatprep.mubr.msk.f32.mxu1 %vm277_vm1, %v2573_v8  ;;  %v2677_v63 = vsel %vm520_vm2, %v527_v44, %v528_v42  ;;  %v533_v0 = vrot.slane %v2508_v46, 2  ;;  %v534_v1 = vrot.slane %v2511_v47, 2  ;;  %v2174_v3 = vpack.c.bf16 %v1613_v57, %v1612_v53  ;;  %v1617_v29 = vld [vmem:[%s2945_s1 + $0xb8] sm:$0xff]  ;;  %v1628_v53 = vld [vmem:[%s2945_s1 + $0xd0] sm:$0xff] }
  0x1f   : > { %2020 = vmatprep.mubr.msk.f32.mxu0 %vm277_vm1, %v2588_v14  ;;  %2163 = vmatprep.subr.bf16.mxu1 %v2162_v11  ;;  %v2682_v2 = vsel %vm243_vm0, %v1189_v45, %v1190_v58  ;;  %v2689_v4 = vsel %vm520_vm2, %v530_v51, %v531_v52  ;;  %v2238_v5 = vpack.c.bf16 %v1677_v41, %v1676_v59  ;;  %v536_v9 = vrot.slane %v2528_v54, 2  ;;  %v1691_v45 = vld [vmem:[%s2945_s1 + $0x1c8] sm:$0xff]  ;;  %v1629_v57 = vld [vmem:[%s2945_s1 + $0xd8] sm:$0xff]  ;;  %v1692_v58 = vld [vmem:[%s2945_s1 + $0x1d0] sm:$0xff] }
  0x20   : > { %1909 = vmatmul.mubr.msk.f32.gmra.mrb[4].mxu1 %vm277_vm1, %v2588_v14  ;;  %2227 = vmatprep.subr.bf16.mxu0 %v2226_v15  ;;  %v537_v47 = vrot.slane %v2531_v55, 2  ;;  %v1679_v55 = vld [vmem:[%s2945_s1 + $0x1a8] sm:$0xff]  ;;  %v2710_v16 = vsel %vm520_vm2, %v533_v0, %v534_v1  ;;  %v539_v17 = vrot.slane %v2539_v60, 2  ;;  %v540_v18 = vrot.slane %v2542_v61, 2  ;;  %v1616_v61 = vld [vmem:[%s2945_s1 + $0xb0] sm:$0xff]  ;;  %v1693_v59 = vld [vmem:[%s2945_s1 + $0x1d8] sm:$0xff] }
  0x21   : > { %2021 = vmatmul.mubr.msk.f32.gmra.mrb[4].mxu0 %vm277_vm1, %v2609_v25  ;;  %2165 = vmatpush3.bf16.msra.mxu1 %v2162_v11  ;;  %v1615_v11 = vld [vmem:[%s2945_s1 + $0xa8] sm:$0xff]  ;;  %v542_v26 = vrot.slane %v2565_v6, 2  ;;  %v543_v28 = vrot.slane %v2568_v7, 2  ;;  %v1681_v7 = vld [vmem:[%s2945_s1 + $0x1b8] sm:$0xff]  ;;  %v937_v27 = vrot.slane %v2583_v13, 2  ;;  %v522_v34 = vrot.slane %v2465_v23, 2 }
  0x22   : > { %2229 = vmatpush3.bf16.msra.mxu0 %v2226_v15  ;;  %1911 = vmatprep.mubr.msk.f32.mxu1 %vm277_vm1, %v2609_v25  ;;  %v1678_v15 = vld [vmem:[%s2945_s1 + $0x1a0] sm:$0xff]  ;;  %v2178_v19 = vpack.c.bf16 %v1615_v11, %v1614_v10  ;;  %v2719_v20 = vsel %vm520_vm2, %v536_v9, %v537_v47  ;;  %v2740_v31 = vsel %vm520_vm2, %v539_v17, %v540_v18  ;;  %v521_v38 = vrot.slane %v2462_v22, 2  ;;  %v1627_v23 = vld [vmem:[%s2945_s1 + $0xc8] sm:$0xff]  ;;  %v1632_v10 = vld [vmem:[%s2945_s1 + $0xf0] sm:$0xff] }
  0x23   : > { %2023 = vmatprep.mubr.msk.f32.mxu0 %vm277_vm1, %v2620_v32  ;;  %2167 = vmatprep.subr.bf16.mxu1 %v2166_v30  ;;  %v2242_v21 = vpack.c.bf16 %v1679_v55, %v1678_v15  ;;  %v2182_v37 = vpack.c.bf16 %v1617_v29, %v1616_v61  ;;  %v2751_v42 = vsel %vm520_vm2, %v542_v26, %v543_v28  ;;  %v1626_v13 = vld [vmem:[%s2945_s1 + $0xc0] sm:$0xff]  ;;  %v1633_v11 = vld [vmem:[%s2945_s1 + $0xf8] sm:$0xff]  ;;  %v1696_v15 = vld [vmem:[%s2945_s1 + $0x1f0] sm:$0xff] }
  0x24   : > { %1912 = vmatmul.mubr.msk.f32.gmra.mrb[6].mxu1 %vm277_vm1, %v2620_v32  ;;  %2231 = vmatprep.subr.bf16.mxu0 %v2230_v33  ;;  %v2186_v51 = vpack.c.bf16 %v1627_v23, %v1626_v13  ;;  %v2190_v41 = vpack.c.bf16 %v1629_v57, %v1628_v53  ;;  %v2254_v0 = vpack.c.bf16 %v1693_v59, %v1692_v58  ;;  %v1630_v1 = vld [vmem:[%s2945_s1 + $0xe0] sm:$0xff]  ;;  %v1697_v55 = vld [vmem:[%s2945_s1 + $0x1f8] sm:$0xff]  ;;  %v1708_v28 = vld [vmem:[%s2945_s1 + $0x210] sm:$0xff] }
  0x25   : > { %2024 = vmatmul.mubr.msk.f32.gmra.mrb[6].mxu0 %vm277_vm1, %v2643_v43  ;;  %2169 = vmatpush3.bf16.msra.mxu1 %v2166_v30  ;;  %v1680_v30 = vld [vmem:[%s2945_s1 + $0x1b0] sm:$0xff]  ;;  %v2198_v17 = vpack.c.bf16 %v1633_v11, %v1632_v10  ;;  %v2262_v18 = vpack.c.bf16 %v1697_v55, %v1696_v15  ;;  %v1709_v61 = vld [vmem:[%s2945_s1 + $0x218] sm:$0xff] }
  0x26   : > { %2233 = vmatpush3.bf16.msra.mxu0 %v2230_v33  ;;  %1930 = vmatprep.mubr.msk.f32.mxu1 %vm277_vm1, %v2462_v22  ;;  %v936_v33 = vrot.slane %v2580_v12, 2  ;;  %v2246_v44 = vpack.c.bf16 %v1681_v7, %v1680_v30  ;;  %v1690_v22 = vld [vmem:[%s2945_s1 + $0x1c0] sm:$0xff]  ;;  %v2270_v29 = vpack.c.bf16 %v1709_v61, %v1708_v28  ;;  %v1711_v7 = vld [vmem:[%s2945_s1 + $0x228] sm:$0xff] }
  0x27   : > { %2042 = vmatprep.mubr.msk.f32.mxu0 %vm277_vm1, %v2650_v48  ;;  %2171 = vmatprep.subr.bf16.mxu1 %v2170_v49  ;;  %v2250_v52 = vpack.c.bf16 %v1691_v45, %v1690_v22  ;;  %v1710_v30 = vld [vmem:[%s2945_s1 + $0x220] sm:$0xff] }
  0x28   : > { %1931 = vmatmul.mubr.msk.f32.vlgmr.msra.gmra.mrb[0].mxu1 %vm277_vm1, %v2468_v24  ;;  %2235 = vmatprep.subr.bf16.mxu0 %v2234_v50 }
  0x29   : > { %2043 = vmatmul.mubr.msk.f32.vlgmr.msra.gmra.mrb[0].mxu0 %vm277_vm1, %v2677_v63  ;;  %2173 = vmatpush3.bf16.msra.mxu1 %v2170_v49  ;;  %v2770_v49 = vsel %vm520_vm2, %v936_v33, %v937_v27 }
  0x2a   : > { %2237 = vmatpush3.bf16.msra.mxu0 %v2234_v50  ;;  %1933 = vmatprep.mubr.msk.f32.mxu1 %vm277_vm1, %v2485_v35  ;;  %v523_v50 = vsel %vm520_vm2, %v521_v38, %v522_v34 }
  0x2b   : > { %2045 = vmatprep.mubr.msk.f32.mxu0 %vm277_vm1, %v2689_v4  ;;  %2175 = vmatprep.subr.bf16.mxu1 %v2174_v3 }
  0x2c   : > { %1934 = vmatmul.mubr.msk.f32.gmra.mrb[2].mxu1 %vm277_vm1, %v2500_v40  ;;  %2239 = vmatprep.subr.bf16.mxu0 %v2238_v5 }
  0x2d   : > { %2046 = vmatmul.mubr.msk.f32.gmra.mrb[2].mxu0 %vm277_vm1, %v2710_v16  ;;  %2177 = vmatpush3.bf16.msra.mxu1 %v2174_v3  ;;  %v1631_v3 = vld [vmem:[%s2945_s1 + $0xe8] sm:$0xff] }
  0x2e   : > { %2241 = vmatpush3.bf16.msra.mxu0 %v2238_v5  ;;  %1936 = vmatprep.mubr.msk.f32.mxu1 %vm277_vm1, %v2508_v46  ;;  %v1694_v5 = vld [vmem:[%s2945_s1 + $0x1e0] sm:$0xff]  ;;  %v2194_v9 = vpack.c.bf16 %v1631_v3, %v1630_v1 }
  0x2f   : > { %2048 = vmatprep.mubr.msk.f32.mxu0 %vm277_vm1, %v2719_v20  ;;  %2179 = vmatprep.subr.bf16.mxu1 %v2178_v19 }
  0x30   : > { %1937 = vmatmul.mubr.msk.f32.gmra.mrb[4].mxu1 %vm277_vm1, %v2528_v54  ;;  %2243 = vmatprep.subr.bf16.mxu0 %v2242_v21 }
  0x31   : > { %2049 = vmatmul.mubr.msk.f32.gmra.mrb[4].mxu0 %vm277_vm1, %v2740_v31  ;;  %2181 = vmatpush3.bf16.msra.mxu1 %v2178_v19  ;;  %v1706_v19 = vld [vmem:[%s2945_s1 + $0x200] sm:$0xff] }
  0x32   : > { %2245 = vmatpush3.bf16.msra.mxu0 %v2242_v21  ;;  %1939 = vmatprep.mubr.msk.f32.mxu1 %vm277_vm1, %v2539_v60  ;;  %v1707_v21 = vld [vmem:[%s2945_s1 + $0x208] sm:$0xff] }
  0x33   : > { %2051 = vmatprep.mubr.msk.f32.mxu0 %vm277_vm1, %v2751_v42  ;;  %2183 = vmatprep.subr.bf16.mxu1 %v2182_v37  ;;  %v2266_v26 = vpack.c.bf16 %v1707_v21, %v1706_v19 }
  0x34   : > { %1940 = vmatmul.mubr.msk.f32.gmra.mrb[6].mxu1 %vm277_vm1, %v2565_v6  ;;  %2247 = vmatprep.subr.bf16.mxu0 %v2246_v44 }
  0x35   : > { %2052 = vmatmul.mubr.msk.f32.gmra.mrb[6].mxu0 %vm277_vm1, %v2770_v49  ;;  %2185 = vmatpush3.bf16.msra.mxu1 %v2182_v37 }
  0x36   : > { %2249 = vmatpush3.bf16.msra.mxu0 %v2246_v44  ;;  %1958 = vmatprep.mubr.msk.f32.mxu1 %vm277_vm1, %v523_v50  ;;  %v1723_v44 = vld [vmem:[%s2947_s3] ss:$0 sm:$0xff] }
  0x37   : > { %2070 = vmatprep.mubr.msk.f32.mxu0 %vm277_vm1, %v2485_v35  ;;  %2187 = vmatprep.subr.bf16.mxu1 %v2186_v51 }
  0x38   : > { %1959 = vmatmul.mubr.msk.f32.vlgmr.msra.gmra.mrb[0].mxu1 %vm277_vm1, %v2650_v48  ;;  %2251 = vmatprep.subr.bf16.mxu0 %v2250_v52  ;;  %v1695_v48 = vld [vmem:[%s2945_s1 + $0x1e8] sm:$0xff] }
  0x39   : > { %2071 = vmatmul.mubr.msk.f32.vlgmr.msra.gmra.mrb[0].mxu0 %vm277_vm1, %v2500_v40  ;;  %2189 = vmatpush3.bf16.msra.mxu1 %v2186_v51  ;;  %v2258_v47 = vpack.c.bf16 %v1695_v48, %v1694_v5 }
  0x3a   : > { %2253 = vmatpush3.bf16.msra.mxu0 %v2250_v52  ;;  %1961 = vmatprep.mubr.msk.f32.mxu1 %vm277_vm1, %v2677_v63 }
  0x3b   : > { %2073 = vmatprep.mubr.msk.f32.mxu0 %vm277_vm1, %v2508_v46  ;;  %2191 = vmatprep.subr.bf16.mxu1 %v2190_v41 }
  0x3c   : > { %1962 = vmatmul.mubr.msk.f32.gmra.mrb[2].mxu1 %vm277_vm1, %v2689_v4  ;;  %2255 = vmatprep.subr.bf16.mxu0 %v2254_v0 }
  0x3d   : > { %2074 = vmatmul.mubr.msk.f32.gmra.mrb[2].mxu0 %vm277_vm1, %v2528_v54  ;;  %2193 = vmatpush3.bf16.msra.mxu1 %v2190_v41 }
  0x3e   : > { %2257 = vmatpush3.bf16.msra.mxu0 %v2254_v0  ;;  %1964 = vmatprep.mubr.msk.f32.mxu1 %vm277_vm1, %v2710_v16 }
  0x3f   : > { %2076 = vmatprep.mubr.msk.f32.mxu0 %vm277_vm1, %v2539_v60  ;;  %2195 = vmatprep.subr.bf16.mxu1 %v2194_v9 }
  0x40   : > { %1965 = vmatmul.mubr.msk.f32.gmra.mrb[4].mxu1 %vm277_vm1, %v2719_v20  ;;  %2259 = vmatprep.subr.bf16.mxu0 %v2258_v47 }
  0x41   : > { %2077 = vmatmul.mubr.msk.f32.gmra.mrb[4].mxu0 %vm277_vm1, %v2565_v6  ;;  %2197 = vmatpush3.bf16.msra.mxu1 %v2194_v9 }
  0x42   : > { %2261 = vmatpush3.bf16.msra.mxu0 %v2258_v47  ;;  %1967 = vmatprep.mubr.msk.f32.mxu1 %vm277_vm1, %v2740_v31 }
  0x43   : > { %2079 = vmatprep.mubr.msk.f32.mxu0 %vm277_vm1, %v2580_v12  ;;  %2199 = vmatprep.subr.bf16.mxu1 %v2198_v17 }
  0x44   : > { %1968 = vmatmul.mubr.msk.f32.gmra.mrb[6].mxu1 %vm277_vm1, %v2751_v42  ;;  %2263 = vmatprep.subr.bf16.mxu0 %v2262_v18 }
  0x45   : > { %2080 = vmatmul.mubr.msk.f32.gmra.mrb[6].mxu0 %vm277_vm1, %v2637_v39  ;;  %2201 = vmatpush3.bf16.msra.mxu1 %v2198_v17 }
  0x46   : > { %2265 = vmatpush3.bf16.msra.mxu0 %v2262_v18  ;;  %1986 = vmatprep.mubr.msk.f32.mxu1 %vm277_vm1, %v2468_v24  ;;  %v2274_v24 = vpack.c.bf16 %v1711_v7, %v1710_v30 }
  0x47   : > { %2098 = vmatprep.mubr.msk.f32.mxu0 %vm277_vm1, %v2534_v56  ;;  %2267 = vmatprep.subr.bf16.mxu0 %v2266_v26  ;;  %v1713_v56 = vld [vmem:[%s2945_s1 + $0x238] sm:$0xff] }
  0x48   : > { %1987 = vmatmul.mubr.msk.f32.vlgmr.msra.gmra.mrb[0].mxu1 %vm277_vm1, %v2485_v35  ;;  %2282 = vmatprep.subr.bf16.mxu1 %v2266_v26  ;;  %v1712_v35 = vld [vmem:[%s2945_s1 + $0x230] sm:$0xff] }
  0x49   : > { %2099 = vmatmul.mubr.msk.f32.vlgmr.msra.gmra.mrb[0].mxu0 %vm277_vm1, %v2546_v62  ;;  %2286 = vmatpush3.bf16.msra.mxu1 %v2266_v26 }
  0x4a   : > { %2269 = vmatpush3.bf16.msra.mxu0 %v2266_v26  ;;  %1989 = vmatprep.mubr.msk.f32.mxu1 %vm277_vm1, %v2500_v40  ;;  %v2278_v40 = vpack.c.bf16 %v1713_v56, %v1712_v35 }
  0x4b   : > { %2101 = vmatprep.mubr.msk.f32.mxu0 %vm277_vm1, %v2573_v8  ;;  %2271 = vmatprep.subr.bf16.mxu0 %v2270_v29 }
  0x4c   : > { %1990 = vmatmul.mubr.msk.f32.gmra.mrb[2].mxu1 %vm277_vm1, %v2508_v46  ;;  %2283 = vmatprep.subr.bf16.mxu1 %v2270_v29  ;;  %v1316_v46 = vrot.slane %v2637_v39, 2 }
  0x4d   : > { %2102 = vmatmul.mubr.msk.f32.gmra.mrb[2].mxu0 %vm277_vm1, %v2588_v14  ;;  %2287 = vmatpush3.bf16.msra.mxu1 %v2270_v29 }
  0x4e   : > { %2273 = vmatpush3.bf16.msra.mxu0 %v2270_v29  ;;  %1992 = vmatprep.mubr.msk.f32.mxu1 %vm277_vm1, %v2528_v54  ;;  %v1317_v54 = vrot.slane %v2653_v36, 2 }
  0x4f   : > { %2104 = vmatprep.mubr.msk.f32.mxu0 %vm277_vm1, %v2609_v25  ;;  %2275 = vmatprep.subr.bf16.mxu0 %v2274_v24 }
  0x50   : > { %1993 = vmatmul.mubr.msk.f32.gmra.mrb[4].mxu1 %vm277_vm1, %v2539_v60  ;;  %2284 = vmatprep.subr.bf16.mxu1 %v2274_v24  ;;  %v1318_v60 = vsel %vm520_vm2, %v1316_v46, %v1317_v54 }
  0x51   : > { %2105 = vmatmul.mubr.msk.f32.gmra.mrb[4].mxu0 %vm277_vm1, %v2620_v32  ;;  %2288 = vmatpush3.bf16.msra.mxu1 %v2274_v24 }
  0x52   : > { %2277 = vmatpush3.bf16.msra.mxu0 %v2274_v24  ;;  %1995 = vmatprep.mubr.msk.f32.mxu1 %vm277_vm1, %v2565_v6 }
  0x53   : > { %2107 = vmatprep.mubr.msk.f32.mxu0 %vm277_vm1, %v2643_v43  ;;  %2279 = vmatprep.subr.bf16.mxu0 %v2278_v40 }
  0x54   : > { %1996 = vmatmul.mubr.msk.f32.gmra.mrb[6].mxu1 %vm277_vm1, %v2580_v12  ;;  %2285 = vmatprep.subr.bf16.mxu1 %v2278_v40 }
  0x55   : > { %2108 = vmatmul.mubr.msk.f32.gmra.mrb[6].mxu0 %vm277_vm1, %v2682_v2  ;;  %2289 = vmatpush3.bf16.msra.mxu1 %v2278_v40 }
  0x56   : > { %2281 = vmatpush3.bf16.msra.mxu0 %v2278_v40  ;;  %2126 = vmatprep.mubr.msk.f32.mxu0 %vm277_vm1, %v2677_v63 }
  0x57   : > { %2132 = vmatprep.mubr.msk.f32.mxu1 %vm277_vm1, %v2740_v31 }
  0x58   : > { %2133 = vmatmul.mubr.msk.f32.vlgmr.msra.gmra.mrb[8].mxu1 %vm277_vm1, %v2751_v42 }
  0x59   : > { %2127 = vmatmul.mubr.msk.f32.vlgmr.msra.gmra.mrb[0].mxu0 %vm277_vm1, %v2689_v4  ;;  %2135 = vmatprep.mubr.msk.f32.mxu1 %vm277_vm1, %v2770_v49 }
  0x5a   : > { %2129 = vmatprep.mubr.msk.f32.mxu0 %vm277_vm1, %v2710_v16 }
  0x5c   : > { %2136 = vmatmul.mubr.msk.f32.gmra.mrb[10].mxu1 %vm277_vm1, %v1318_v60 }
  0x5d   : > { %2130 = vmatmul.mubr.msk.f32.gmra.mrb[2].mxu0 %vm277_vm1, %v2719_v20  ;;  %v1722_v20 = vld [vmem:[%s2946_s2] ss:$0 sm:$0xff] }
 0x11b   : > { %v1988_v62 = vpop.f32.mrb[0].mxu1 }
 0x11c   : > { %v761_v6 = vpop.f32.mrb[1].mxu1 }
 0x11f   : > { %v1991_v8 = vpop.f32.mrb[2].mxu1 }
 0x120   : > { %v771_v12 = vpop.f32.mrb[3].mxu1 }
 0x123   : > { %v1994_v14 = vpop.f32.mrb[4].mxu1 }
 0x124   : > { %v2106_v25 = vpop.f32.mrb[4].mxu0  ;;  %v781_v32 = vpop.f32.mrb[5].mxu1 }
 0x125   : > { %v2294_v39 = vadd.f32 %v2106_v25, %v1994_v14  ;;  %v1289_v43 = vpop.f32.mrb[5].mxu0 }
 0x126   : > { %v2296_v36 = vadd.f32 %v1289_v43, %v781_v32 }
 0x127   : > { %v1997_v63 = vpop.f32.mrb[6].mxu1 }
 0x128   : > { %v2109_v2 = vpop.f32.mrb[6].mxu0  ;;  %v791_v4 = vpop.f32.mrb[7].mxu1 }
 0x129   : > { %v2298_v16 = vadd.f32 %v2109_v2, %v1997_v63  ;;  %v1299_v31 = vpop.f32.mrb[7].mxu0 }
 0x12a   : > { %v2300_v33 = vadd.f32 %v1299_v31, %v791_v4 }
 0x12b   : > { %v2134_v27 = vpop.f32.mrb[8].mxu1 }
 0x12c   : > { %v2128_v34 = vpop.f32.mrb[0].mxu0  ;;  %v2295_v37 = vadd.f32 %v2294_v39, %v2134_v27  ;;  %v1416_v38 = vpop.f32.mrb[9].mxu1 }
 0x12d   : > { %v2290_v42 = vadd.f32 %v2128_v34, %v1988_v62  ;;  %v1396_v13 = vpop.f32.mrb[1].mxu0  ;;  %v2297_v23 = vadd.f32 %v2296_v36, %v1416_v38 }
 0x12e   : > { %v1455_v22 = vmul.f32 %v2295_v37, %v1722_v20  ;;  %v2291_v45 = vadd.f32 %v1396_v13, %v761_v6 }
 0x12f   : > { %v1451_v49 = vmul.f32 %v2290_v42, %v1722_v20  ;;  %v1454_v50 = vmul.f32 %v2297_v23, %v1722_v20  ;;  %v2137_v51 = vpop.f32.mrb[10].mxu1 }
 0x130   : > { %v1470_v52 = vadd.f32 %v1723_v44, %v1455_v22  ;;  %v1450_v53 = vmul.f32 %v2291_v45, %v1722_v20  ;;  %v2131_v57 = vpop.f32.mrb[2].mxu0  ;;  %v2299_v58 = vadd.f32 %v2298_v16, %v2137_v51  ;;  %v1426_v59 = vpop.f32.mrb[11].mxu1 }
 0x131   : > { %v1466_v41 = vadd.f32 %v1723_v44, %v1451_v49  ;;  %v1469_v0 = vadd.f32 %v1723_v44, %v1454_v50  ;;  %v2292_v1 = vadd.f32 %v2131_v57, %v1991_v8  ;;  %v1406_v3 = vpop.f32.mrb[3].mxu0  ;;  %v2301_v5 = vadd.f32 %v2300_v33, %v1426_v59 }
 0x132   : > { %v1478_v48 = vmax.f32 %v1470_v52, 0.0  ;;  %v1465_v9 = vadd.f32 %v1723_v44, %v1450_v53  ;;  %v1457_v47 = vmul.f32 %v2299_v58, %v1722_v20  ;;  %v2293_v10 = vadd.f32 %v1406_v3, %v771_v12 }
 0x133   : > { %v1474_v11 = vmax.f32 %v1466_v41, 0.0  ;;  %v1477_v15 = vmax.f32 %v1469_v0, 0.0  ;;  %v1453_v55 = vmul.f32 %v2292_v1, %v1722_v20  ;;  %v1456_v17 = vmul.f32 %v2301_v5, %v1722_v20 }
 0x134   : > { %v1739_v18 = vpack.c.bf16 %v1478_v48, %v1478_v48  ;;  %v1473_v19 = vmax.f32 %v1465_v9, 0.0  ;;  %v1472_v21 = vadd.f32 %v1723_v44, %v1457_v47  ;;  %v1452_v26 = vmul.f32 %v2293_v10, %v1722_v20 }
 0x135   : > { %v1735_v28 = vpack.c.bf16 %v1474_v11, %v1474_v11  ;;  %v1738_v61 = vpack.c.bf16 %v1477_v15, %v1477_v15  ;;  %v1468_v29 = vadd.f32 %v1723_v44, %v1453_v55  ;;  %v1471_v30 = vadd.f32 %v1723_v44, %v1456_v17 }
 0x136   : > { %1519 = vst.msk [vmem:[%s197_s30 + $0x14] sm:$0xf] %vm1513_vm3, %v1739_v18  ;;  %v1734_v7 = vpack.c.bf16 %v1473_v19, %v1473_v19  ;;  %v1480_v24 = vmax.f32 %v1472_v21, 0.0  ;;  %v1467_v35 = vadd.f32 %v1723_v44, %v1452_v26 }
 0x137   : > { %1515 = vst.msk [vmem:[%s197_s30 + $0x4] sm:$0xf] %vm1513_vm3, %v1735_v28  ;;  %1518 = vst.msk [vmem:[%s197_s30 + $0x10] sm:$0xf] %vm1513_vm3, %v1738_v61  ;;  %v1476_v56 = vmax.f32 %v1468_v29, 0.0  ;;  %v1479_v40 = vmax.f32 %v1471_v30, 0.0 }
 0x138   : > { %1514 = vst.msk [vmem:[%s197_s30] sm:$0xf] %vm1513_vm3, %v1734_v7  ;;  %v1741_v46 = vpack.c.bf16 %v1480_v24, %v1480_v24  ;;  %v1475_v54 = vmax.f32 %v1467_v35, 0.0 }
 0x139   : > { %v1737_v60 = vpack.c.bf16 %v1476_v56, %v1476_v56  ;;  %v1740_v62 = vpack.c.bf16 %v1479_v40, %v1479_v40 }
 0x13a   : > { %1521 = vst.msk [vmem:[%s197_s30 + $0x1c] sm:$0xf] %vm1513_vm3, %v1741_v46  ;;  %v1736_v6 = vpack.c.bf16 %v1475_v54, %v1475_v54 }
 0x13b   : > { %1517 = vst.msk [vmem:[%s197_s30 + $0xc] sm:$0xf] %vm1513_vm3, %v1737_v60  ;;  %1520 = vst.msk [vmem:[%s197_s30 + $0x18] sm:$0xf] %vm1513_vm3, %v1740_v62 }
 0x13c   : > { %1516 = vst.msk [vmem:[%s197_s30 + $0x8] sm:$0xf] %vm1513_vm3, %v1736_v6 }
 0x13d PF: > { %s14_s15 = sadd.s32 1, %s2369_s15  }
 0x13e   : > { %p11_p5 = scmp.ge.s32.totalorder %s14_s15, 4  }
 0x140   :  { %13 = sbr.rel (!%p11_p5) target bundleno = 1 (0x1), region = 74 }

</bundles_post_ra>
